<compile_context>
chip_gen: v7x
topology: tpu7x:2x2x1
jax: 0.10.0
libtpu: 0.0.40
codegen_flags: <defaults>
</compile_context>

<pallas_src>
import jax
import jax.numpy as jnp
from jax.experimental import pallas as pl
from jax.experimental.pallas import tpu as pltpu

# ---------------- problem sizes (small, consistent with the module) ----------------
BATCH = 8            # rows per independent batch (BN statistics computed over these)
INPUT_SIZE = 16
HIDDEN_SIZE = 32
OUTPUT_SIZE = 8
LAYERS = 10
BN_EPS = 1e-5
N_BATCHES = 8        # independent batches stacked into one pallas_call


# ---------------- Pallas kernel factory (nb_per_step baked in statically) ----------------
def _make_kernel(nb_per_step: int):
    rows = nb_per_step * BATCH

    def batch_norm(z2d, gamma, beta):
        # training-mode BatchNorm1d (biased variance), computed per-batch over each
        # batch's BATCH rows.  Both reductions (mean, E[z^2]) are fused into ONE
        # cross-sublane mean by concatenating z and z*z along the lane axis.
        f = z2d.shape[-1]
        z = z2d.reshape(nb_per_step, BATCH, f)
        stats = jnp.mean(jnp.concatenate([z, z * z], axis=-1), axis=1, keepdims=True)
        mean, mean_sq = stats[..., :f], stats[..., f:]
        var = jnp.maximum(mean_sq - mean * mean, 0.0)        # guard cancellation
        scale = gamma * jax.lax.rsqrt(var + BN_EPS)          # folded scale/shift
        shift = beta - mean * scale
        return (z * scale + shift).reshape(rows, f)

    def kernel(
        x_ref,        # (1, rows, In)      f32
        w1_ref,       # (In, H)            bf16
        wh_ref,       # (L, H, H)          bf16
        bn_ref,       # (L, 2, H)          f32  [gamma; beta] per layer
        wl_ref,       # (H, O)             bf16
        misc_ref,     # (3, H)             f32  [b1; gamma_out(pad); beta_out(pad)]
        out_ref,      # (1, rows, O)       f32
    ):
        misc = misc_ref[...]
        b1 = misc[0:1, :]                                    # (1, H)
        gamma_l = misc[1:2, :OUTPUT_SIZE]                    # (1, O)
        beta_l = misc[2:3, :OUTPUT_SIZE]                     # (1, O)

        x = x_ref[0].astype(jnp.bfloat16)                    # (rows, In)

        # first layer (no BN afterwards -> bias kept) + tanh
        h = jnp.tanh(jnp.dot(x, w1_ref[...],
                             preferred_element_type=jnp.float32) + b1)

        # hidden stack: Linear -> BatchNorm -> tanh -> (dropout = identity).
        # Linear bias dropped: a per-feature bias before train-mode BN cancels exactly.
        for i in range(LAYERS):
            bn_i = bn_ref[i]                                 # (2, H)
            z = jnp.dot(h.astype(jnp.bfloat16), wh_ref[i],
                        preferred_element_type=jnp.float32)
            h = jnp.tanh(batch_norm(z, bn_i[0:1, :], bn_i[1:2, :]))

        # last layer (bias dropped, cancels in BN) -> BatchNorm -> sigmoid
        z = jnp.dot(h.astype(jnp.bfloat16), wl_ref[...],
                    preferred_element_type=jnp.float32)
        out_ref[0] = jax.nn.sigmoid(batch_norm(z, gamma_l, beta_l))

    return kernel


# ---------------- wrapper ----------------
def vanilla_forward(x, params):
    """x: (B, In) for a single batch, or (N, B, In) for N independent batches."""
    squeeze = (x.ndim == 2)
    if squeeze:
        x = x[None]
    n, b, in_dim = x.shape
    assert b == BATCH and in_dim == INPUT_SIZE

    # Grid sizing: one meaty packed block per TensorCore (v7x has 2 TCs); on the
    # single-TC v5e/v6e the grid is a serial loop, so fewer / larger steps win.
    n_steps = 2 if n % 2 == 0 else 1
    nb_per_step = n // n_steps
    rows = nb_per_step * BATCH
    x_packed = x.reshape(n_steps, rows, INPUT_SIZE)

    args = (x_packed, params["w1"], params["wh"], params["bn_h"],
            params["wl"], params["misc"])

    in_specs = [
        pl.BlockSpec((1, rows, INPUT_SIZE), lambda i: (i, 0, 0)),
        # Weights / BN params are tiny (~23 KiB bf16 + ~3 KiB f32) and grid-invariant:
        # full-array blocks with a constant index (Pallas skips the re-DMA).
        pl.BlockSpec((INPUT_SIZE, HIDDEN_SIZE), lambda i: (0, 0)),
        pl.BlockSpec((LAYERS, HIDDEN_SIZE, HIDDEN_SIZE), lambda i: (0, 0, 0)),
        pl.BlockSpec((LAYERS, 2, HIDDEN_SIZE), lambda i: (0, 0, 0)),
        pl.BlockSpec((HIDDEN_SIZE, OUTPUT_SIZE), lambda i: (0, 0)),
        pl.BlockSpec((3, HIDDEN_SIZE), lambda i: (0, 0)),
    ]
    out_spec = pl.BlockSpec((1, rows, OUTPUT_SIZE), lambda i: (i, 0, 0))

    # Advisory cost so XLA schedules/overlaps this tiny, latency-bound kernel.
    total_rows = n * BATCH
    flops = 2 * total_rows * (INPUT_SIZE * HIDDEN_SIZE
                              + LAYERS * HIDDEN_SIZE * HIDDEN_SIZE
                              + HIDDEN_SIZE * OUTPUT_SIZE)
    transcendentals = total_rows * (HIDDEN_SIZE * (LAYERS + 1) + OUTPUT_SIZE)
    param_bytes = sum(int(p.size) * p.dtype.itemsize for p in args[1:])
    bytes_accessed = (param_bytes + x.size * x.dtype.itemsize
                      + total_rows * OUTPUT_SIZE * 4)

    out = pl.pallas_call(
        _make_kernel(nb_per_step),
        out_shape=jax.ShapeDtypeStruct((n_steps, rows, OUTPUT_SIZE), jnp.float32),
        grid=(n_steps,),
        in_specs=in_specs,
        out_specs=out_spec,
        compiler_params=pltpu.CompilerParams(
            dimension_semantics=("parallel",)),
        cost_estimate=pl.CostEstimate(
            flops=flops,
            transcendentals=transcendentals,
            bytes_accessed=bytes_accessed),
    )(*args)

    out = out.reshape(n, BATCH, OUTPUT_SIZE)
    return out[0] if squeeze else out


# ---------------- deterministic parameter init (shapes from __init__) ----------------
def xavier_uniform(key, fan_in, fan_out):
    bound = jnp.sqrt(6.0 / (fan_in + fan_out))
    # stored transposed: (in, out) so the kernel computes y = x @ W (+ b) directly.
    return jax.random.uniform(key, (fan_in, fan_out), jnp.float32, -bound, bound)


def linear_bias(key, fan_in, fan_out):
    bound = 1.0 / jnp.sqrt(float(fan_in))
    return jax.random.uniform(key, (fan_out,), jnp.float32, -bound, bound)


def init_params(key):
    keys = jax.random.split(key, 3 + LAYERS)
    p = {}
    # weights pre-cast to bf16 once (halves weight DMA, removes per-call casts)
    p["w1"] = xavier_uniform(keys[0], INPUT_SIZE, HIDDEN_SIZE).astype(jnp.bfloat16)
    p["wh"] = jnp.stack([xavier_uniform(keys[3 + i], HIDDEN_SIZE, HIDDEN_SIZE)
                         for i in range(LAYERS)]).astype(jnp.bfloat16)
    p["wl"] = xavier_uniform(keys[1], HIDDEN_SIZE, OUTPUT_SIZE).astype(jnp.bfloat16)

    # hidden BN params packed: (L, 2, H) with [:,0]=gamma, [:,1]=beta
    p["bn_h"] = jnp.stack([jnp.ones((LAYERS, HIDDEN_SIZE), jnp.float32),
                           jnp.zeros((LAYERS, HIDDEN_SIZE), jnp.float32)], axis=1)

    # misc f32 pack: row 0 = b1, row 1 = gamma_out (padded), row 2 = beta_out (padded)
    b1 = linear_bias(keys[2], INPUT_SIZE, HIDDEN_SIZE)
    pad = HIDDEN_SIZE - OUTPUT_SIZE
    p["misc"] = jnp.stack([
        b1,
        jnp.pad(jnp.ones((OUTPUT_SIZE,), jnp.float32), (0, pad)),
        jnp.pad(jnp.zeros((OUTPUT_SIZE,), jnp.float32), (0, pad)),
    ])
    return p


# ---------------- pure-JAX reference mirroring the kernel numerics ----------------
def reference_forward(x, p):
    def bn(z, gamma, beta):
        m = jnp.mean(z, axis=0, keepdims=True)
        ms = jnp.mean(z * z, axis=0, keepdims=True)
        var = jnp.maximum(ms - m * m, 0.0)
        scale = gamma * jax.lax.rsqrt(var + BN_EPS)
        return z * scale + (beta - m * scale)

    b1 = p["misc"][0:1, :]
    gamma_l = p["misc"][1:2, :OUTPUT_SIZE]
    beta_l = p["misc"][2:3, :OUTPUT_SIZE]

    h = jnp.tanh(jnp.dot(x.astype(jnp.bfloat16), p["w1"],
                         preferred_element_type=jnp.float32) + b1)
    for i in range(LAYERS):
        z = jnp.dot(h.astype(jnp.bfloat16), p["wh"][i],
                    preferred_element_type=jnp.float32)
        h = jnp.tanh(bn(z, p["bn_h"][i, 0:1, :], p["bn_h"][i, 1:2, :]))
    z = jnp.dot(h.astype(jnp.bfloat16), p["wl"],
                preferred_element_type=jnp.float32)
    return jax.nn.sigmoid(bn(z, gamma_l, beta_l))


if __name__ == "__main__":
    key = jax.random.PRNGKey(0)
    k_x, k_p = jax.random.split(key)
    # N_BATCHES independent batches of BATCH rows each, processed in one pallas_call
    # (2 grid steps, 4 batches packed per step).
    x = jax.random.normal(k_x, (N_BATCHES, BATCH, INPUT_SIZE), jnp.float32)
    params = init_params(k_p)

    out = jax.block_until_ready(vanilla_forward(x, params))
    assert out.shape == (N_BATCHES, BATCH, OUTPUT_SIZE)

    ref = jnp.stack([reference_forward(x[i], params) for i in range(N_BATCHES)])
    assert jnp.allclose(out, ref, atol=1e-4, rtol=1e-4), "mismatch vs JAX reference"
    print("KERNEL_OK")
</pallas_src>

<mosaic_0001>
module attributes {stable_mosaic.version = 11 : i64} {
  func.func @kernel(%arg0: i32, %arg1: memref<1x32x16xf32, #tpu.memory_space<vmem>>, %arg2: memref<16x32xbf16, #tpu.memory_space<vmem>>, %arg3: memref<10x32x32xbf16, #tpu.memory_space<vmem>>, %arg4: memref<10x2x32xf32, #tpu.memory_space<vmem>>, %arg5: memref<32x8xbf16, #tpu.memory_space<vmem>>, %arg6: memref<3x32xf32, #tpu.memory_space<vmem>>, %arg7: memref<1x32x8xf32, #tpu.memory_space<vmem>>) attributes {dimension_semantics = [#tpu.dimension_semantics<parallel>], iteration_bounds = array<i64: 2>, scalar_prefetch = 0 : i64, scratch_operands = 0 : i64, tpu.core_type = #tpu.core_type<tc>, window_params = [{transform_indices = @transform_0, window_bounds = array<i64: 1, 32, 16>}, {pipeline_mode = #tpu.pipeline_mode<synchronous>, transform_indices = @transform_1, window_bounds = array<i64: 16, 32>}, {pipeline_mode = #tpu.pipeline_mode<synchronous>, transform_indices = @transform_2, window_bounds = array<i64: 10, 32, 32>}, {pipeline_mode = #tpu.pipeline_mode<synchronous>, transform_indices = @transform_3, window_bounds = array<i64: 10, 2, 32>}, {pipeline_mode = #tpu.pipeline_mode<synchronous>, transform_indices = @transform_4, window_bounds = array<i64: 32, 8>}, {pipeline_mode = #tpu.pipeline_mode<synchronous>, transform_indices = @transform_5, window_bounds = array<i64: 3, 32>}, {transform_indices = @transform_6, window_bounds = array<i64: 1, 32, 8>}]} {
    %c0 = arith.constant 0 : index
    %c0_0 = arith.constant 0 : index
    %0 = vector.load %arg6[%c0, %c0_0] : memref<3x32xf32, #tpu.memory_space<vmem>>, vector<3x32xf32>
    %1 = vector.extract_strided_slice %0 {offsets = [0, 0], sizes = [1, 32], strides = [1, 1]} : vector<3x32xf32> to vector<1x32xf32>
    %2 = vector.extract_strided_slice %0 {offsets = [1, 0], sizes = [1, 8], strides = [1, 1]} : vector<3x32xf32> to vector<1x8xf32>
    %3 = vector.extract_strided_slice %0 {offsets = [2, 0], sizes = [1, 8], strides = [1, 1]} : vector<3x32xf32> to vector<1x8xf32>
    %c0_1 = arith.constant 0 : index
    %c0_2 = arith.constant 0 : index
    %c0_3 = arith.constant 0 : index
    %4 = vector.load %arg1[%c0_1, %c0_2, %c0_3] : memref<1x32x16xf32, #tpu.memory_space<vmem>>, vector<1x32x16xf32>
    %5 = vector.shape_cast %4 : vector<1x32x16xf32> to vector<32x16xf32>
    %6 = arith.truncf %5 : vector<32x16xf32> to vector<32x16xbf16>
    %c0_4 = arith.constant 0 : index
    %c0_5 = arith.constant 0 : index
    %7 = vector.load %arg2[%c0_4, %c0_5] : memref<16x32xbf16, #tpu.memory_space<vmem>>, vector<16x32xbf16>
    %cst = arith.constant dense<0.000000e+00> : vector<32x32xf32>
    %8 = tpu.matmul %6, %7, %cst {dimension_numbers = #tpu.dot_dimension_numbers<[1], [0], [0], [1], [0, 0, 1, 1], [], []>} : vector<32x16xbf16>, vector<16x32xbf16>, vector<32x32xf32> -> vector<32x32xf32>
    %9 = vector.broadcast %1 : vector<1x32xf32> to vector<32x32xf32>
    %10 = arith.addf %8, %9 : vector<32x32xf32>
    %11 = math.tanh %10 : vector<32x32xf32>
    %c0_6 = arith.constant 0 : index
    %c0_7 = arith.constant 0 : index
    %c0_8 = arith.constant 0 : index
    %12 = vector.load %arg4[%c0_6, %c0_7, %c0_8] : memref<10x2x32xf32, #tpu.memory_space<vmem>>, vector<1x2x32xf32>
    %13 = vector.shape_cast %12 : vector<1x2x32xf32> to vector<2x32xf32>
    %14 = arith.truncf %11 : vector<32x32xf32> to vector<32x32xbf16>
    %c0_9 = arith.constant 0 : index
    %c0_10 = arith.constant 0 : index
    %c0_11 = arith.constant 0 : index
    %15 = vector.load %arg3[%c0_9, %c0_10, %c0_11] : memref<10x32x32xbf16, #tpu.memory_space<vmem>>, vector<1x32x32xbf16>
    %16 = vector.shape_cast %15 : vector<1x32x32xbf16> to vector<32x32xbf16>
    %cst_12 = arith.constant dense<0.000000e+00> : vector<32x32xf32>
    %17 = tpu.matmul %14, %16, %cst_12 {dimension_numbers = #tpu.dot_dimension_numbers<[1], [0], [0], [1], [0, 0, 1, 1], [], []>} : vector<32x32xbf16>, vector<32x32xbf16>, vector<32x32xf32> -> vector<32x32xf32>
    %18 = vector.extract_strided_slice %13 {offsets = [0, 0], sizes = [1, 32], strides = [1, 1]} : vector<2x32xf32> to vector<1x32xf32>
    %19 = vector.extract_strided_slice %13 {offsets = [1, 0], sizes = [1, 32], strides = [1, 1]} : vector<2x32xf32> to vector<1x32xf32>
    %20 = vector.shape_cast %17 : vector<32x32xf32> to vector<4x8x32xf32>
    %21 = arith.mulf %20, %20 : vector<4x8x32xf32>
    %22 = tpu.concatenate %20, %21 in 2 : vector<4x8x32xf32>, vector<4x8x32xf32> -> vector<4x8x64xf32>
    %cst_13 = arith.constant dense<0.000000e+00> : vector<4x64xf32>
    %23 = vector.multi_reduction <add>, %22, %cst_13 [1] : vector<4x8x64xf32> to vector<4x64xf32>
    %24 = vector.shape_cast %23 : vector<4x64xf32> to vector<4x1x64xf32>
    %cst_14 = arith.constant 8.000000e+00 : f32
    %25 = vector.broadcast %cst_14 : f32 to vector<4x1x64xf32>
    %26 = arith.divf %24, %25 : vector<4x1x64xf32>
    %27 = vector.extract_strided_slice %26 {offsets = [0, 0, 0], sizes = [4, 1, 32], strides = [1, 1, 1]} : vector<4x1x64xf32> to vector<4x1x32xf32>
    %28 = vector.extract_strided_slice %26 {offsets = [0, 0, 32], sizes = [4, 1, 32], strides = [1, 1, 1]} : vector<4x1x64xf32> to vector<4x1x32xf32>
    %29 = arith.mulf %27, %27 : vector<4x1x32xf32>
    %30 = arith.subf %28, %29 : vector<4x1x32xf32>
    %cst_15 = arith.constant 0.000000e+00 : f32
    %31 = vector.broadcast %cst_15 : f32 to vector<4x1x32xf32>
    %32 = arith.maximumf %30, %31 : vector<4x1x32xf32>
    %cst_16 = arith.constant 9.99999974E-6 : f32
    %33 = vector.broadcast %cst_16 : f32 to vector<4x1x32xf32>
    %34 = arith.addf %32, %33 : vector<4x1x32xf32>
    %35 = math.rsqrt %34 : vector<4x1x32xf32>
    %36 = vector.shape_cast %18 : vector<1x32xf32> to vector<1x1x32xf32>
    %37 = vector.broadcast %36 : vector<1x1x32xf32> to vector<4x1x32xf32>
    %38 = arith.mulf %37, %35 : vector<4x1x32xf32>
    %39 = arith.mulf %27, %38 : vector<4x1x32xf32>
    %40 = vector.shape_cast %19 : vector<1x32xf32> to vector<1x1x32xf32>
    %41 = vector.broadcast %40 : vector<1x1x32xf32> to vector<4x1x32xf32>
    %42 = arith.subf %41, %39 : vector<4x1x32xf32>
    %43 = vector.broadcast %38 : vector<4x1x32xf32> to vector<4x8x32xf32>
    %44 = arith.mulf %20, %43 : vector<4x8x32xf32>
    %45 = vector.broadcast %42 : vector<4x1x32xf32> to vector<4x8x32xf32>
    %46 = arith.addf %44, %45 : vector<4x8x32xf32>
    %47 = vector.shape_cast %46 : vector<4x8x32xf32> to vector<32x32xf32>
    %48 = math.tanh %47 : vector<32x32xf32>
    %c1 = arith.constant 1 : index
    %c0_17 = arith.constant 0 : index
    %c0_18 = arith.constant 0 : index
    %49 = vector.load %arg4[%c1, %c0_17, %c0_18] : memref<10x2x32xf32, #tpu.memory_space<vmem>>, vector<1x2x32xf32>
    %50 = vector.shape_cast %49 : vector<1x2x32xf32> to vector<2x32xf32>
    %51 = arith.truncf %48 : vector<32x32xf32> to vector<32x32xbf16>
    %c1_19 = arith.constant 1 : index
    %c0_20 = arith.constant 0 : index
    %c0_21 = arith.constant 0 : index
    %52 = vector.load %arg3[%c1_19, %c0_20, %c0_21] : memref<10x32x32xbf16, #tpu.memory_space<vmem>>, vector<1x32x32xbf16>
    %53 = vector.shape_cast %52 : vector<1x32x32xbf16> to vector<32x32xbf16>
    %cst_22 = arith.constant dense<0.000000e+00> : vector<32x32xf32>
    %54 = tpu.matmul %51, %53, %cst_22 {dimension_numbers = #tpu.dot_dimension_numbers<[1], [0], [0], [1], [0, 0, 1, 1], [], []>} : vector<32x32xbf16>, vector<32x32xbf16>, vector<32x32xf32> -> vector<32x32xf32>
    %55 = vector.extract_strided_slice %50 {offsets = [0, 0], sizes = [1, 32], strides = [1, 1]} : vector<2x32xf32> to vector<1x32xf32>
    %56 = vector.extract_strided_slice %50 {offsets = [1, 0], sizes = [1, 32], strides = [1, 1]} : vector<2x32xf32> to vector<1x32xf32>
    %57 = vector.shape_cast %54 : vector<32x32xf32> to vector<4x8x32xf32>
    %58 = arith.mulf %57, %57 : vector<4x8x32xf32>
    %59 = tpu.concatenate %57, %58 in 2 : vector<4x8x32xf32>, vector<4x8x32xf32> -> vector<4x8x64xf32>
    %cst_23 = arith.constant dense<0.000000e+00> : vector<4x64xf32>
    %60 = vector.multi_reduction <add>, %59, %cst_23 [1] : vector<4x8x64xf32> to vector<4x64xf32>
    %61 = vector.shape_cast %60 : vector<4x64xf32> to vector<4x1x64xf32>
    %cst_24 = arith.constant 8.000000e+00 : f32
    %62 = vector.broadcast %cst_24 : f32 to vector<4x1x64xf32>
    %63 = arith.divf %61, %62 : vector<4x1x64xf32>
    %64 = vector.extract_strided_slice %63 {offsets = [0, 0, 0], sizes = [4, 1, 32], strides = [1, 1, 1]} : vector<4x1x64xf32> to vector<4x1x32xf32>
    %65 = vector.extract_strided_slice %63 {offsets = [0, 0, 32], sizes = [4, 1, 32], strides = [1, 1, 1]} : vector<4x1x64xf32> to vector<4x1x32xf32>
    %66 = arith.mulf %64, %64 : vector<4x1x32xf32>
    %67 = arith.subf %65, %66 : vector<4x1x32xf32>
    %cst_25 = arith.constant 0.000000e+00 : f32
    %68 = vector.broadcast %cst_25 : f32 to vector<4x1x32xf32>
    %69 = arith.maximumf %67, %68 : vector<4x1x32xf32>
    %cst_26 = arith.constant 9.99999974E-6 : f32
    %70 = vector.broadcast %cst_26 : f32 to vector<4x1x32xf32>
    %71 = arith.addf %69, %70 : vector<4x1x32xf32>
    %72 = math.rsqrt %71 : vector<4x1x32xf32>
    %73 = vector.shape_cast %55 : vector<1x32xf32> to vector<1x1x32xf32>
    %74 = vector.broadcast %73 : vector<1x1x32xf32> to vector<4x1x32xf32>
    %75 = arith.mulf %74, %72 : vector<4x1x32xf32>
    %76 = arith.mulf %64, %75 : vector<4x1x32xf32>
    %77 = vector.shape_cast %56 : vector<1x32xf32> to vector<1x1x32xf32>
    %78 = vector.broadcast %77 : vector<1x1x32xf32> to vector<4x1x32xf32>
    %79 = arith.subf %78, %76 : vector<4x1x32xf32>
    %80 = vector.broadcast %75 : vector<4x1x32xf32> to vector<4x8x32xf32>
    %81 = arith.mulf %57, %80 : vector<4x8x32xf32>
    %82 = vector.broadcast %79 : vector<4x1x32xf32> to vector<4x8x32xf32>
    %83 = arith.addf %81, %82 : vector<4x8x32xf32>
    %84 = vector.shape_cast %83 : vector<4x8x32xf32> to vector<32x32xf32>
    %85 = math.tanh %84 : vector<32x32xf32>
    %c2 = arith.constant 2 : index
    %c0_27 = arith.constant 0 : index
    %c0_28 = arith.constant 0 : index
    %86 = vector.load %arg4[%c2, %c0_27, %c0_28] : memref<10x2x32xf32, #tpu.memory_space<vmem>>, vector<1x2x32xf32>
    %87 = vector.shape_cast %86 : vector<1x2x32xf32> to vector<2x32xf32>
    %88 = arith.truncf %85 : vector<32x32xf32> to vector<32x32xbf16>
    %c2_29 = arith.constant 2 : index
    %c0_30 = arith.constant 0 : index
    %c0_31 = arith.constant 0 : index
    %89 = vector.load %arg3[%c2_29, %c0_30, %c0_31] : memref<10x32x32xbf16, #tpu.memory_space<vmem>>, vector<1x32x32xbf16>
    %90 = vector.shape_cast %89 : vector<1x32x32xbf16> to vector<32x32xbf16>
    %cst_32 = arith.constant dense<0.000000e+00> : vector<32x32xf32>
    %91 = tpu.matmul %88, %90, %cst_32 {dimension_numbers = #tpu.dot_dimension_numbers<[1], [0], [0], [1], [0, 0, 1, 1], [], []>} : vector<32x32xbf16>, vector<32x32xbf16>, vector<32x32xf32> -> vector<32x32xf32>
    %92 = vector.extract_strided_slice %87 {offsets = [0, 0], sizes = [1, 32], strides = [1, 1]} : vector<2x32xf32> to vector<1x32xf32>
    %93 = vector.extract_strided_slice %87 {offsets = [1, 0], sizes = [1, 32], strides = [1, 1]} : vector<2x32xf32> to vector<1x32xf32>
    %94 = vector.shape_cast %91 : vector<32x32xf32> to vector<4x8x32xf32>
    %95 = arith.mulf %94, %94 : vector<4x8x32xf32>
    %96 = tpu.concatenate %94, %95 in 2 : vector<4x8x32xf32>, vector<4x8x32xf32> -> vector<4x8x64xf32>
    %cst_33 = arith.constant dense<0.000000e+00> : vector<4x64xf32>
    %97 = vector.multi_reduction <add>, %96, %cst_33 [1] : vector<4x8x64xf32> to vector<4x64xf32>
    %98 = vector.shape_cast %97 : vector<4x64xf32> to vector<4x1x64xf32>
    %cst_34 = arith.constant 8.000000e+00 : f32
    %99 = vector.broadcast %cst_34 : f32 to vector<4x1x64xf32>
    %100 = arith.divf %98, %99 : vector<4x1x64xf32>
    %101 = vector.extract_strided_slice %100 {offsets = [0, 0, 0], sizes = [4, 1, 32], strides = [1, 1, 1]} : vector<4x1x64xf32> to vector<4x1x32xf32>
    %102 = vector.extract_strided_slice %100 {offsets = [0, 0, 32], sizes = [4, 1, 32], strides = [1, 1, 1]} : vector<4x1x64xf32> to vector<4x1x32xf32>
    %103 = arith.mulf %101, %101 : vector<4x1x32xf32>
    %104 = arith.subf %102, %103 : vector<4x1x32xf32>
    %cst_35 = arith.constant 0.000000e+00 : f32
    %105 = vector.broadcast %cst_35 : f32 to vector<4x1x32xf32>
    %106 = arith.maximumf %104, %105 : vector<4x1x32xf32>
    %cst_36 = arith.constant 9.99999974E-6 : f32
    %107 = vector.broadcast %cst_36 : f32 to vector<4x1x32xf32>
    %108 = arith.addf %106, %107 : vector<4x1x32xf32>
    %109 = math.rsqrt %108 : vector<4x1x32xf32>
    %110 = vector.shape_cast %92 : vector<1x32xf32> to vector<1x1x32xf32>
    %111 = vector.broadcast %110 : vector<1x1x32xf32> to vector<4x1x32xf32>
    %112 = arith.mulf %111, %109 : vector<4x1x32xf32>
    %113 = arith.mulf %101, %112 : vector<4x1x32xf32>
    %114 = vector.shape_cast %93 : vector<1x32xf32> to vector<1x1x32xf32>
    %115 = vector.broadcast %114 : vector<1x1x32xf32> to vector<4x1x32xf32>
    %116 = arith.subf %115, %113 : vector<4x1x32xf32>
    %117 = vector.broadcast %112 : vector<4x1x32xf32> to vector<4x8x32xf32>
    %118 = arith.mulf %94, %117 : vector<4x8x32xf32>
    %119 = vector.broadcast %116 : vector<4x1x32xf32> to vector<4x8x32xf32>
    %120 = arith.addf %118, %119 : vector<4x8x32xf32>
    %121 = vector.shape_cast %120 : vector<4x8x32xf32> to vector<32x32xf32>
    %122 = math.tanh %121 : vector<32x32xf32>
    %c3 = arith.constant 3 : index
    %c0_37 = arith.constant 0 : index
    %c0_38 = arith.constant 0 : index
    %123 = vector.load %arg4[%c3, %c0_37, %c0_38] : memref<10x2x32xf32, #tpu.memory_space<vmem>>, vector<1x2x32xf32>
    %124 = vector.shape_cast %123 : vector<1x2x32xf32> to vector<2x32xf32>
    %125 = arith.truncf %122 : vector<32x32xf32> to vector<32x32xbf16>
    %c3_39 = arith.constant 3 : index
    %c0_40 = arith.constant 0 : index
    %c0_41 = arith.constant 0 : index
    %126 = vector.load %arg3[%c3_39, %c0_40, %c0_41] : memref<10x32x32xbf16, #tpu.memory_space<vmem>>, vector<1x32x32xbf16>
    %127 = vector.shape_cast %126 : vector<1x32x32xbf16> to vector<32x32xbf16>
    %cst_42 = arith.constant dense<0.000000e+00> : vector<32x32xf32>
    %128 = tpu.matmul %125, %127, %cst_42 {dimension_numbers = #tpu.dot_dimension_numbers<[1], [0], [0], [1], [0, 0, 1, 1], [], []>} : vector<32x32xbf16>, vector<32x32xbf16>, vector<32x32xf32> -> vector<32x32xf32>
    %129 = vector.extract_strided_slice %124 {offsets = [0, 0], sizes = [1, 32], strides = [1, 1]} : vector<2x32xf32> to vector<1x32xf32>
    %130 = vector.extract_strided_slice %124 {offsets = [1, 0], sizes = [1, 32], strides = [1, 1]} : vector<2x32xf32> to vector<1x32xf32>
    %131 = vector.shape_cast %128 : vector<32x32xf32> to vector<4x8x32xf32>
    %132 = arith.mulf %131, %131 : vector<4x8x32xf32>
    %133 = tpu.concatenate %131, %132 in 2 : vector<4x8x32xf32>, vector<4x8x32xf32> -> vector<4x8x64xf32>
    %cst_43 = arith.constant dense<0.000000e+00> : vector<4x64xf32>
    %134 = vector.multi_reduction <add>, %133, %cst_43 [1] : vector<4x8x64xf32> to vector<4x64xf32>
    %135 = vector.shape_cast %134 : vector<4x64xf32> to vector<4x1x64xf32>
    %cst_44 = arith.constant 8.000000e+00 : f32
    %136 = vector.broadcast %cst_44 : f32 to vector<4x1x64xf32>
    %137 = arith.divf %135, %136 : vector<4x1x64xf32>
    %138 = vector.extract_strided_slice %137 {offsets = [0, 0, 0], sizes = [4, 1, 32], strides = [1, 1, 1]} : vector<4x1x64xf32> to vector<4x1x32xf32>
    %139 = vector.extract_strided_slice %137 {offsets = [0, 0, 32], sizes = [4, 1, 32], strides = [1, 1, 1]} : vector<4x1x64xf32> to vector<4x1x32xf32>
    %140 = arith.mulf %138, %138 : vector<4x1x32xf32>
    %141 = arith.subf %139, %140 : vector<4x1x32xf32>
    %cst_45 = arith.constant 0.000000e+00 : f32
    %142 = vector.broadcast %cst_45 : f32 to vector<4x1x32xf32>
    %143 = arith.maximumf %141, %142 : vector<4x1x32xf32>
    %cst_46 = arith.constant 9.99999974E-6 : f32
    %144 = vector.broadcast %cst_46 : f32 to vector<4x1x32xf32>
    %145 = arith.addf %143, %144 : vector<4x1x32xf32>
    %146 = math.rsqrt %145 : vector<4x1x32xf32>
    %147 = vector.shape_cast %129 : vector<1x32xf32> to vector<1x1x32xf32>
    %148 = vector.broadcast %147 : vector<1x1x32xf32> to vector<4x1x32xf32>
    %149 = arith.mulf %148, %146 : vector<4x1x32xf32>
    %150 = arith.mulf %138, %149 : vector<4x1x32xf32>
    %151 = vector.shape_cast %130 : vector<1x32xf32> to vector<1x1x32xf32>
    %152 = vector.broadcast %151 : vector<1x1x32xf32> to vector<4x1x32xf32>
    %153 = arith.subf %152, %150 : vector<4x1x32xf32>
    %154 = vector.broadcast %149 : vector<4x1x32xf32> to vector<4x8x32xf32>
    %155 = arith.mulf %131, %154 : vector<4x8x32xf32>
    %156 = vector.broadcast %153 : vector<4x1x32xf32> to vector<4x8x32xf32>
    %157 = arith.addf %155, %156 : vector<4x8x32xf32>
    %158 = vector.shape_cast %157 : vector<4x8x32xf32> to vector<32x32xf32>
    %159 = math.tanh %158 : vector<32x32xf32>
    %c4 = arith.constant 4 : index
    %c0_47 = arith.constant 0 : index
    %c0_48 = arith.constant 0 : index
    %160 = vector.load %arg4[%c4, %c0_47, %c0_48] : memref<10x2x32xf32, #tpu.memory_space<vmem>>, vector<1x2x32xf32>
    %161 = vector.shape_cast %160 : vector<1x2x32xf32> to vector<2x32xf32>
    %162 = arith.truncf %159 : vector<32x32xf32> to vector<32x32xbf16>
    %c4_49 = arith.constant 4 : index
    %c0_50 = arith.constant 0 : index
    %c0_51 = arith.constant 0 : index
    %163 = vector.load %arg3[%c4_49, %c0_50, %c0_51] : memref<10x32x32xbf16, #tpu.memory_space<vmem>>, vector<1x32x32xbf16>
    %164 = vector.shape_cast %163 : vector<1x32x32xbf16> to vector<32x32xbf16>
    %cst_52 = arith.constant dense<0.000000e+00> : vector<32x32xf32>
    %165 = tpu.matmul %162, %164, %cst_52 {dimension_numbers = #tpu.dot_dimension_numbers<[1], [0], [0], [1], [0, 0, 1, 1], [], []>} : vector<32x32xbf16>, vector<32x32xbf16>, vector<32x32xf32> -> vector<32x32xf32>
    %166 = vector.extract_strided_slice %161 {offsets = [0, 0], sizes = [1, 32], strides = [1, 1]} : vector<2x32xf32> to vector<1x32xf32>
    %167 = vector.extract_strided_slice %161 {offsets = [1, 0], sizes = [1, 32], strides = [1, 1]} : vector<2x32xf32> to vector<1x32xf32>
    %168 = vector.shape_cast %165 : vector<32x32xf32> to vector<4x8x32xf32>
    %169 = arith.mulf %168, %168 : vector<4x8x32xf32>
    %170 = tpu.concatenate %168, %169 in 2 : vector<4x8x32xf32>, vector<4x8x32xf32> -> vector<4x8x64xf32>
    %cst_53 = arith.constant dense<0.000000e+00> : vector<4x64xf32>
    %171 = vector.multi_reduction <add>, %170, %cst_53 [1] : vector<4x8x64xf32> to vector<4x64xf32>
    %172 = vector.shape_cast %171 : vector<4x64xf32> to vector<4x1x64xf32>
    %cst_54 = arith.constant 8.000000e+00 : f32
    %173 = vector.broadcast %cst_54 : f32 to vector<4x1x64xf32>
    %174 = arith.divf %172, %173 : vector<4x1x64xf32>
    %175 = vector.extract_strided_slice %174 {offsets = [0, 0, 0], sizes = [4, 1, 32], strides = [1, 1, 1]} : vector<4x1x64xf32> to vector<4x1x32xf32>
    %176 = vector.extract_strided_slice %174 {offsets = [0, 0, 32], sizes = [4, 1, 32], strides = [1, 1, 1]} : vector<4x1x64xf32> to vector<4x1x32xf32>
    %177 = arith.mulf %175, %175 : vector<4x1x32xf32>
    %178 = arith.subf %176, %177 : vector<4x1x32xf32>
    %cst_55 = arith.constant 0.000000e+00 : f32
    %179 = vector.broadcast %cst_55 : f32 to vector<4x1x32xf32>
    %180 = arith.maximumf %178, %179 : vector<4x1x32xf32>
    %cst_56 = arith.constant 9.99999974E-6 : f32
    %181 = vector.broadcast %cst_56 : f32 to vector<4x1x32xf32>
    %182 = arith.addf %180, %181 : vector<4x1x32xf32>
    %183 = math.rsqrt %182 : vector<4x1x32xf32>
    %184 = vector.shape_cast %166 : vector<1x32xf32> to vector<1x1x32xf32>
    %185 = vector.broadcast %184 : vector<1x1x32xf32> to vector<4x1x32xf32>
    %186 = arith.mulf %185, %183 : vector<4x1x32xf32>
    %187 = arith.mulf %175, %186 : vector<4x1x32xf32>
    %188 = vector.shape_cast %167 : vector<1x32xf32> to vector<1x1x32xf32>
    %189 = vector.broadcast %188 : vector<1x1x32xf32> to vector<4x1x32xf32>
    %190 = arith.subf %189, %187 : vector<4x1x32xf32>
    %191 = vector.broadcast %186 : vector<4x1x32xf32> to vector<4x8x32xf32>
    %192 = arith.mulf %168, %191 : vector<4x8x32xf32>
    %193 = vector.broadcast %190 : vector<4x1x32xf32> to vector<4x8x32xf32>
    %194 = arith.addf %192, %193 : vector<4x8x32xf32>
    %195 = vector.shape_cast %194 : vector<4x8x32xf32> to vector<32x32xf32>
    %196 = math.tanh %195 : vector<32x32xf32>
    %c5 = arith.constant 5 : index
    %c0_57 = arith.constant 0 : index
    %c0_58 = arith.constant 0 : index
    %197 = vector.load %arg4[%c5, %c0_57, %c0_58] : memref<10x2x32xf32, #tpu.memory_space<vmem>>, vector<1x2x32xf32>
    %198 = vector.shape_cast %197 : vector<1x2x32xf32> to vector<2x32xf32>
    %199 = arith.truncf %196 : vector<32x32xf32> to vector<32x32xbf16>
    %c5_59 = arith.constant 5 : index
    %c0_60 = arith.constant 0 : index
    %c0_61 = arith.constant 0 : index
    %200 = vector.load %arg3[%c5_59, %c0_60, %c0_61] : memref<10x32x32xbf16, #tpu.memory_space<vmem>>, vector<1x32x32xbf16>
    %201 = vector.shape_cast %200 : vector<1x32x32xbf16> to vector<32x32xbf16>
    %cst_62 = arith.constant dense<0.000000e+00> : vector<32x32xf32>
    %202 = tpu.matmul %199, %201, %cst_62 {dimension_numbers = #tpu.dot_dimension_numbers<[1], [0], [0], [1], [0, 0, 1, 1], [], []>} : vector<32x32xbf16>, vector<32x32xbf16>, vector<32x32xf32> -> vector<32x32xf32>
    %203 = vector.extract_strided_slice %198 {offsets = [0, 0], sizes = [1, 32], strides = [1, 1]} : vector<2x32xf32> to vector<1x32xf32>
    %204 = vector.extract_strided_slice %198 {offsets = [1, 0], sizes = [1, 32], strides = [1, 1]} : vector<2x32xf32> to vector<1x32xf32>
    %205 = vector.shape_cast %202 : vector<32x32xf32> to vector<4x8x32xf32>
    %206 = arith.mulf %205, %205 : vector<4x8x32xf32>
    %207 = tpu.concatenate %205, %206 in 2 : vector<4x8x32xf32>, vector<4x8x32xf32> -> vector<4x8x64xf32>
    %cst_63 = arith.constant dense<0.000000e+00> : vector<4x64xf32>
    %208 = vector.multi_reduction <add>, %207, %cst_63 [1] : vector<4x8x64xf32> to vector<4x64xf32>
    %209 = vector.shape_cast %208 : vector<4x64xf32> to vector<4x1x64xf32>
    %cst_64 = arith.constant 8.000000e+00 : f32
    %210 = vector.broadcast %cst_64 : f32 to vector<4x1x64xf32>
    %211 = arith.divf %209, %210 : vector<4x1x64xf32>
    %212 = vector.extract_strided_slice %211 {offsets = [0, 0, 0], sizes = [4, 1, 32], strides = [1, 1, 1]} : vector<4x1x64xf32> to vector<4x1x32xf32>
    %213 = vector.extract_strided_slice %211 {offsets = [0, 0, 32], sizes = [4, 1, 32], strides = [1, 1, 1]} : vector<4x1x64xf32> to vector<4x1x32xf32>
    %214 = arith.mulf %212, %212 : vector<4x1x32xf32>
    %215 = arith.subf %213, %214 : vector<4x1x32xf32>
    %cst_65 = arith.constant 0.000000e+00 : f32
    %216 = vector.broadcast %cst_65 : f32 to vector<4x1x32xf32>
    %217 = arith.maximumf %215, %216 : vector<4x1x32xf32>
    %cst_66 = arith.constant 9.99999974E-6 : f32
    %218 = vector.broadcast %cst_66 : f32 to vector<4x1x32xf32>
    %219 = arith.addf %217, %218 : vector<4x1x32xf32>
    %220 = math.rsqrt %219 : vector<4x1x32xf32>
    %221 = vector.shape_cast %203 : vector<1x32xf32> to vector<1x1x32xf32>
    %222 = vector.broadcast %221 : vector<1x1x32xf32> to vector<4x1x32xf32>
    %223 = arith.mulf %222, %220 : vector<4x1x32xf32>
    %224 = arith.mulf %212, %223 : vector<4x1x32xf32>
    %225 = vector.shape_cast %204 : vector<1x32xf32> to vector<1x1x32xf32>
    %226 = vector.broadcast %225 : vector<1x1x32xf32> to vector<4x1x32xf32>
    %227 = arith.subf %226, %224 : vector<4x1x32xf32>
    %228 = vector.broadcast %223 : vector<4x1x32xf32> to vector<4x8x32xf32>
    %229 = arith.mulf %205, %228 : vector<4x8x32xf32>
    %230 = vector.broadcast %227 : vector<4x1x32xf32> to vector<4x8x32xf32>
    %231 = arith.addf %229, %230 : vector<4x8x32xf32>
    %232 = vector.shape_cast %231 : vector<4x8x32xf32> to vector<32x32xf32>
    %233 = math.tanh %232 : vector<32x32xf32>
    %c6 = arith.constant 6 : index
    %c0_67 = arith.constant 0 : index
    %c0_68 = arith.constant 0 : index
    %234 = vector.load %arg4[%c6, %c0_67, %c0_68] : memref<10x2x32xf32, #tpu.memory_space<vmem>>, vector<1x2x32xf32>
    %235 = vector.shape_cast %234 : vector<1x2x32xf32> to vector<2x32xf32>
    %236 = arith.truncf %233 : vector<32x32xf32> to vector<32x32xbf16>
    %c6_69 = arith.constant 6 : index
    %c0_70 = arith.constant 0 : index
    %c0_71 = arith.constant 0 : index
    %237 = vector.load %arg3[%c6_69, %c0_70, %c0_71] : memref<10x32x32xbf16, #tpu.memory_space<vmem>>, vector<1x32x32xbf16>
    %238 = vector.shape_cast %237 : vector<1x32x32xbf16> to vector<32x32xbf16>
    %cst_72 = arith.constant dense<0.000000e+00> : vector<32x32xf32>
    %239 = tpu.matmul %236, %238, %cst_72 {dimension_numbers = #tpu.dot_dimension_numbers<[1], [0], [0], [1], [0, 0, 1, 1], [], []>} : vector<32x32xbf16>, vector<32x32xbf16>, vector<32x32xf32> -> vector<32x32xf32>
    %240 = vector.extract_strided_slice %235 {offsets = [0, 0], sizes = [1, 32], strides = [1, 1]} : vector<2x32xf32> to vector<1x32xf32>
    %241 = vector.extract_strided_slice %235 {offsets = [1, 0], sizes = [1, 32], strides = [1, 1]} : vector<2x32xf32> to vector<1x32xf32>
    %242 = vector.shape_cast %239 : vector<32x32xf32> to vector<4x8x32xf32>
    %243 = arith.mulf %242, %242 : vector<4x8x32xf32>
    %244 = tpu.concatenate %242, %243 in 2 : vector<4x8x32xf32>, vector<4x8x32xf32> -> vector<4x8x64xf32>
    %cst_73 = arith.constant dense<0.000000e+00> : vector<4x64xf32>
    %245 = vector.multi_reduction <add>, %244, %cst_73 [1] : vector<4x8x64xf32> to vector<4x64xf32>
    %246 = vector.shape_cast %245 : vector<4x64xf32> to vector<4x1x64xf32>
    %cst_74 = arith.constant 8.000000e+00 : f32
    %247 = vector.broadcast %cst_74 : f32 to vector<4x1x64xf32>
    %248 = arith.divf %246, %247 : vector<4x1x64xf32>
    %249 = vector.extract_strided_slice %248 {offsets = [0, 0, 0], sizes = [4, 1, 32], strides = [1, 1, 1]} : vector<4x1x64xf32> to vector<4x1x32xf32>
    %250 = vector.extract_strided_slice %248 {offsets = [0, 0, 32], sizes = [4, 1, 32], strides = [1, 1, 1]} : vector<4x1x64xf32> to vector<4x1x32xf32>
    %251 = arith.mulf %249, %249 : vector<4x1x32xf32>
    %252 = arith.subf %250, %251 : vector<4x1x32xf32>
    %cst_75 = arith.constant 0.000000e+00 : f32
    %253 = vector.broadcast %cst_75 : f32 to vector<4x1x32xf32>
    %254 = arith.maximumf %252, %253 : vector<4x1x32xf32>
    %cst_76 = arith.constant 9.99999974E-6 : f32
    %255 = vector.broadcast %cst_76 : f32 to vector<4x1x32xf32>
    %256 = arith.addf %254, %255 : vector<4x1x32xf32>
    %257 = math.rsqrt %256 : vector<4x1x32xf32>
    %258 = vector.shape_cast %240 : vector<1x32xf32> to vector<1x1x32xf32>
    %259 = vector.broadcast %258 : vector<1x1x32xf32> to vector<4x1x32xf32>
    %260 = arith.mulf %259, %257 : vector<4x1x32xf32>
    %261 = arith.mulf %249, %260 : vector<4x1x32xf32>
    %262 = vector.shape_cast %241 : vector<1x32xf32> to vector<1x1x32xf32>
    %263 = vector.broadcast %262 : vector<1x1x32xf32> to vector<4x1x32xf32>
    %264 = arith.subf %263, %261 : vector<4x1x32xf32>
    %265 = vector.broadcast %260 : vector<4x1x32xf32> to vector<4x8x32xf32>
    %266 = arith.mulf %242, %265 : vector<4x8x32xf32>
    %267 = vector.broadcast %264 : vector<4x1x32xf32> to vector<4x8x32xf32>
    %268 = arith.addf %266, %267 : vector<4x8x32xf32>
    %269 = vector.shape_cast %268 : vector<4x8x32xf32> to vector<32x32xf32>
    %270 = math.tanh %269 : vector<32x32xf32>
    %c7 = arith.constant 7 : index
    %c0_77 = arith.constant 0 : index
    %c0_78 = arith.constant 0 : index
    %271 = vector.load %arg4[%c7, %c0_77, %c0_78] : memref<10x2x32xf32, #tpu.memory_space<vmem>>, vector<1x2x32xf32>
    %272 = vector.shape_cast %271 : vector<1x2x32xf32> to vector<2x32xf32>
    %273 = arith.truncf %270 : vector<32x32xf32> to vector<32x32xbf16>
    %c7_79 = arith.constant 7 : index
    %c0_80 = arith.constant 0 : index
    %c0_81 = arith.constant 0 : index
    %274 = vector.load %arg3[%c7_79, %c0_80, %c0_81] : memref<10x32x32xbf16, #tpu.memory_space<vmem>>, vector<1x32x32xbf16>
    %275 = vector.shape_cast %274 : vector<1x32x32xbf16> to vector<32x32xbf16>
    %cst_82 = arith.constant dense<0.000000e+00> : vector<32x32xf32>
    %276 = tpu.matmul %273, %275, %cst_82 {dimension_numbers = #tpu.dot_dimension_numbers<[1], [0], [0], [1], [0, 0, 1, 1], [], []>} : vector<32x32xbf16>, vector<32x32xbf16>, vector<32x32xf32> -> vector<32x32xf32>
    %277 = vector.extract_strided_slice %272 {offsets = [0, 0], sizes = [1, 32], strides = [1, 1]} : vector<2x32xf32> to vector<1x32xf32>
    %278 = vector.extract_strided_slice %272 {offsets = [1, 0], sizes = [1, 32], strides = [1, 1]} : vector<2x32xf32> to vector<1x32xf32>
    %279 = vector.shape_cast %276 : vector<32x32xf32> to vector<4x8x32xf32>
    %280 = arith.mulf %279, %279 : vector<4x8x32xf32>
    %281 = tpu.concatenate %279, %280 in 2 : vector<4x8x32xf32>, vector<4x8x32xf32> -> vector<4x8x64xf32>
    %cst_83 = arith.constant dense<0.000000e+00> : vector<4x64xf32>
    %282 = vector.multi_reduction <add>, %281, %cst_83 [1] : vector<4x8x64xf32> to vector<4x64xf32>
    %283 = vector.shape_cast %282 : vector<4x64xf32> to vector<4x1x64xf32>
    %cst_84 = arith.constant 8.000000e+00 : f32
    %284 = vector.broadcast %cst_84 : f32 to vector<4x1x64xf32>
    %285 = arith.divf %283, %284 : vector<4x1x64xf32>
    %286 = vector.extract_strided_slice %285 {offsets = [0, 0, 0], sizes = [4, 1, 32], strides = [1, 1, 1]} : vector<4x1x64xf32> to vector<4x1x32xf32>
    %287 = vector.extract_strided_slice %285 {offsets = [0, 0, 32], sizes = [4, 1, 32], strides = [1, 1, 1]} : vector<4x1x64xf32> to vector<4x1x32xf32>
    %288 = arith.mulf %286, %286 : vector<4x1x32xf32>
    %289 = arith.subf %287, %288 : vector<4x1x32xf32>
    %cst_85 = arith.constant 0.000000e+00 : f32
    %290 = vector.broadcast %cst_85 : f32 to vector<4x1x32xf32>
    %291 = arith.maximumf %289, %290 : vector<4x1x32xf32>
    %cst_86 = arith.constant 9.99999974E-6 : f32
    %292 = vector.broadcast %cst_86 : f32 to vector<4x1x32xf32>
    %293 = arith.addf %291, %292 : vector<4x1x32xf32>
    %294 = math.rsqrt %293 : vector<4x1x32xf32>
    %295 = vector.shape_cast %277 : vector<1x32xf32> to vector<1x1x32xf32>
    %296 = vector.broadcast %295 : vector<1x1x32xf32> to vector<4x1x32xf32>
    %297 = arith.mulf %296, %294 : vector<4x1x32xf32>
    %298 = arith.mulf %286, %297 : vector<4x1x32xf32>
    %299 = vector.shape_cast %278 : vector<1x32xf32> to vector<1x1x32xf32>
    %300 = vector.broadcast %299 : vector<1x1x32xf32> to vector<4x1x32xf32>
    %301 = arith.subf %300, %298 : vector<4x1x32xf32>
    %302 = vector.broadcast %297 : vector<4x1x32xf32> to vector<4x8x32xf32>
    %303 = arith.mulf %279, %302 : vector<4x8x32xf32>
    %304 = vector.broadcast %301 : vector<4x1x32xf32> to vector<4x8x32xf32>
    %305 = arith.addf %303, %304 : vector<4x8x32xf32>
    %306 = vector.shape_cast %305 : vector<4x8x32xf32> to vector<32x32xf32>
    %307 = math.tanh %306 : vector<32x32xf32>
    %c8 = arith.constant 8 : index
    %c0_87 = arith.constant 0 : index
    %c0_88 = arith.constant 0 : index
    %308 = vector.load %arg4[%c8, %c0_87, %c0_88] : memref<10x2x32xf32, #tpu.memory_space<vmem>>, vector<1x2x32xf32>
    %309 = vector.shape_cast %308 : vector<1x2x32xf32> to vector<2x32xf32>
    %310 = arith.truncf %307 : vector<32x32xf32> to vector<32x32xbf16>
    %c8_89 = arith.constant 8 : index
    %c0_90 = arith.constant 0 : index
    %c0_91 = arith.constant 0 : index
    %311 = vector.load %arg3[%c8_89, %c0_90, %c0_91] : memref<10x32x32xbf16, #tpu.memory_space<vmem>>, vector<1x32x32xbf16>
    %312 = vector.shape_cast %311 : vector<1x32x32xbf16> to vector<32x32xbf16>
    %cst_92 = arith.constant dense<0.000000e+00> : vector<32x32xf32>
    %313 = tpu.matmul %310, %312, %cst_92 {dimension_numbers = #tpu.dot_dimension_numbers<[1], [0], [0], [1], [0, 0, 1, 1], [], []>} : vector<32x32xbf16>, vector<32x32xbf16>, vector<32x32xf32> -> vector<32x32xf32>
    %314 = vector.extract_strided_slice %309 {offsets = [0, 0], sizes = [1, 32], strides = [1, 1]} : vector<2x32xf32> to vector<1x32xf32>
    %315 = vector.extract_strided_slice %309 {offsets = [1, 0], sizes = [1, 32], strides = [1, 1]} : vector<2x32xf32> to vector<1x32xf32>
    %316 = vector.shape_cast %313 : vector<32x32xf32> to vector<4x8x32xf32>
    %317 = arith.mulf %316, %316 : vector<4x8x32xf32>
    %318 = tpu.concatenate %316, %317 in 2 : vector<4x8x32xf32>, vector<4x8x32xf32> -> vector<4x8x64xf32>
    %cst_93 = arith.constant dense<0.000000e+00> : vector<4x64xf32>
    %319 = vector.multi_reduction <add>, %318, %cst_93 [1] : vector<4x8x64xf32> to vector<4x64xf32>
    %320 = vector.shape_cast %319 : vector<4x64xf32> to vector<4x1x64xf32>
    %cst_94 = arith.constant 8.000000e+00 : f32
    %321 = vector.broadcast %cst_94 : f32 to vector<4x1x64xf32>
    %322 = arith.divf %320, %321 : vector<4x1x64xf32>
    %323 = vector.extract_strided_slice %322 {offsets = [0, 0, 0], sizes = [4, 1, 32], strides = [1, 1, 1]} : vector<4x1x64xf32> to vector<4x1x32xf32>
    %324 = vector.extract_strided_slice %322 {offsets = [0, 0, 32], sizes = [4, 1, 32], strides = [1, 1, 1]} : vector<4x1x64xf32> to vector<4x1x32xf32>
    %325 = arith.mulf %323, %323 : vector<4x1x32xf32>
    %326 = arith.subf %324, %325 : vector<4x1x32xf32>
    %cst_95 = arith.constant 0.000000e+00 : f32
    %327 = vector.broadcast %cst_95 : f32 to vector<4x1x32xf32>
    %328 = arith.maximumf %326, %327 : vector<4x1x32xf32>
    %cst_96 = arith.constant 9.99999974E-6 : f32
    %329 = vector.broadcast %cst_96 : f32 to vector<4x1x32xf32>
    %330 = arith.addf %328, %329 : vector<4x1x32xf32>
    %331 = math.rsqrt %330 : vector<4x1x32xf32>
    %332 = vector.shape_cast %314 : vector<1x32xf32> to vector<1x1x32xf32>
    %333 = vector.broadcast %332 : vector<1x1x32xf32> to vector<4x1x32xf32>
    %334 = arith.mulf %333, %331 : vector<4x1x32xf32>
    %335 = arith.mulf %323, %334 : vector<4x1x32xf32>
    %336 = vector.shape_cast %315 : vector<1x32xf32> to vector<1x1x32xf32>
    %337 = vector.broadcast %336 : vector<1x1x32xf32> to vector<4x1x32xf32>
    %338 = arith.subf %337, %335 : vector<4x1x32xf32>
    %339 = vector.broadcast %334 : vector<4x1x32xf32> to vector<4x8x32xf32>
    %340 = arith.mulf %316, %339 : vector<4x8x32xf32>
    %341 = vector.broadcast %338 : vector<4x1x32xf32> to vector<4x8x32xf32>
    %342 = arith.addf %340, %341 : vector<4x8x32xf32>
    %343 = vector.shape_cast %342 : vector<4x8x32xf32> to vector<32x32xf32>
    %344 = math.tanh %343 : vector<32x32xf32>
    %c9 = arith.constant 9 : index
    %c0_97 = arith.constant 0 : index
    %c0_98 = arith.constant 0 : index
    %345 = vector.load %arg4[%c9, %c0_97, %c0_98] : memref<10x2x32xf32, #tpu.memory_space<vmem>>, vector<1x2x32xf32>
    %346 = vector.shape_cast %345 : vector<1x2x32xf32> to vector<2x32xf32>
    %347 = arith.truncf %344 : vector<32x32xf32> to vector<32x32xbf16>
    %c9_99 = arith.constant 9 : index
    %c0_100 = arith.constant 0 : index
    %c0_101 = arith.constant 0 : index
    %348 = vector.load %arg3[%c9_99, %c0_100, %c0_101] : memref<10x32x32xbf16, #tpu.memory_space<vmem>>, vector<1x32x32xbf16>
    %349 = vector.shape_cast %348 : vector<1x32x32xbf16> to vector<32x32xbf16>
    %cst_102 = arith.constant dense<0.000000e+00> : vector<32x32xf32>
    %350 = tpu.matmul %347, %349, %cst_102 {dimension_numbers = #tpu.dot_dimension_numbers<[1], [0], [0], [1], [0, 0, 1, 1], [], []>} : vector<32x32xbf16>, vector<32x32xbf16>, vector<32x32xf32> -> vector<32x32xf32>
    %351 = vector.extract_strided_slice %346 {offsets = [0, 0], sizes = [1, 32], strides = [1, 1]} : vector<2x32xf32> to vector<1x32xf32>
    %352 = vector.extract_strided_slice %346 {offsets = [1, 0], sizes = [1, 32], strides = [1, 1]} : vector<2x32xf32> to vector<1x32xf32>
    %353 = vector.shape_cast %350 : vector<32x32xf32> to vector<4x8x32xf32>
    %354 = arith.mulf %353, %353 : vector<4x8x32xf32>
    %355 = tpu.concatenate %353, %354 in 2 : vector<4x8x32xf32>, vector<4x8x32xf32> -> vector<4x8x64xf32>
    %cst_103 = arith.constant dense<0.000000e+00> : vector<4x64xf32>
    %356 = vector.multi_reduction <add>, %355, %cst_103 [1] : vector<4x8x64xf32> to vector<4x64xf32>
    %357 = vector.shape_cast %356 : vector<4x64xf32> to vector<4x1x64xf32>
    %cst_104 = arith.constant 8.000000e+00 : f32
    %358 = vector.broadcast %cst_104 : f32 to vector<4x1x64xf32>
    %359 = arith.divf %357, %358 : vector<4x1x64xf32>
    %360 = vector.extract_strided_slice %359 {offsets = [0, 0, 0], sizes = [4, 1, 32], strides = [1, 1, 1]} : vector<4x1x64xf32> to vector<4x1x32xf32>
    %361 = vector.extract_strided_slice %359 {offsets = [0, 0, 32], sizes = [4, 1, 32], strides = [1, 1, 1]} : vector<4x1x64xf32> to vector<4x1x32xf32>
    %362 = arith.mulf %360, %360 : vector<4x1x32xf32>
    %363 = arith.subf %361, %362 : vector<4x1x32xf32>
    %cst_105 = arith.constant 0.000000e+00 : f32
    %364 = vector.broadcast %cst_105 : f32 to vector<4x1x32xf32>
    %365 = arith.maximumf %363, %364 : vector<4x1x32xf32>
    %cst_106 = arith.constant 9.99999974E-6 : f32
    %366 = vector.broadcast %cst_106 : f32 to vector<4x1x32xf32>
    %367 = arith.addf %365, %366 : vector<4x1x32xf32>
    %368 = math.rsqrt %367 : vector<4x1x32xf32>
    %369 = vector.shape_cast %351 : vector<1x32xf32> to vector<1x1x32xf32>
    %370 = vector.broadcast %369 : vector<1x1x32xf32> to vector<4x1x32xf32>
    %371 = arith.mulf %370, %368 : vector<4x1x32xf32>
    %372 = arith.mulf %360, %371 : vector<4x1x32xf32>
    %373 = vector.shape_cast %352 : vector<1x32xf32> to vector<1x1x32xf32>
    %374 = vector.broadcast %373 : vector<1x1x32xf32> to vector<4x1x32xf32>
    %375 = arith.subf %374, %372 : vector<4x1x32xf32>
    %376 = vector.broadcast %371 : vector<4x1x32xf32> to vector<4x8x32xf32>
    %377 = arith.mulf %353, %376 : vector<4x8x32xf32>
    %378 = vector.broadcast %375 : vector<4x1x32xf32> to vector<4x8x32xf32>
    %379 = arith.addf %377, %378 : vector<4x8x32xf32>
    %380 = vector.shape_cast %379 : vector<4x8x32xf32> to vector<32x32xf32>
    %381 = math.tanh %380 : vector<32x32xf32>
    %382 = arith.truncf %381 : vector<32x32xf32> to vector<32x32xbf16>
    %c0_107 = arith.constant 0 : index
    %c0_108 = arith.constant 0 : index
    %383 = vector.load %arg5[%c0_107, %c0_108] : memref<32x8xbf16, #tpu.memory_space<vmem>>, vector<32x8xbf16>
    %cst_109 = arith.constant dense<0.000000e+00> : vector<32x8xf32>
    %384 = tpu.matmul %382, %383, %cst_109 {dimension_numbers = #tpu.dot_dimension_numbers<[1], [0], [0], [1], [0, 0, 1, 1], [], []>} : vector<32x32xbf16>, vector<32x8xbf16>, vector<32x8xf32> -> vector<32x8xf32>
    %385 = vector.shape_cast %384 : vector<32x8xf32> to vector<4x8x8xf32>
    %386 = arith.mulf %385, %385 : vector<4x8x8xf32>
    %387 = tpu.concatenate %385, %386 in 2 : vector<4x8x8xf32>, vector<4x8x8xf32> -> vector<4x8x16xf32>
    %cst_110 = arith.constant dense<0.000000e+00> : vector<4x16xf32>
    %388 = vector.multi_reduction <add>, %387, %cst_110 [1] : vector<4x8x16xf32> to vector<4x16xf32>
    %389 = vector.shape_cast %388 : vector<4x16xf32> to vector<4x1x16xf32>
    %cst_111 = arith.constant 8.000000e+00 : f32
    %390 = vector.broadcast %cst_111 : f32 to vector<4x1x16xf32>
    %391 = arith.divf %389, %390 : vector<4x1x16xf32>
    %392 = vector.extract_strided_slice %391 {offsets = [0, 0, 0], sizes = [4, 1, 8], strides = [1, 1, 1]} : vector<4x1x16xf32> to vector<4x1x8xf32>
    %393 = vector.extract_strided_slice %391 {offsets = [0, 0, 8], sizes = [4, 1, 8], strides = [1, 1, 1]} : vector<4x1x16xf32> to vector<4x1x8xf32>
    %394 = arith.mulf %392, %392 : vector<4x1x8xf32>
    %395 = arith.subf %393, %394 : vector<4x1x8xf32>
    %cst_112 = arith.constant 0.000000e+00 : f32
    %396 = vector.broadcast %cst_112 : f32 to vector<4x1x8xf32>
    %397 = arith.maximumf %395, %396 : vector<4x1x8xf32>
    %cst_113 = arith.constant 9.99999974E-6 : f32
    %398 = vector.broadcast %cst_113 : f32 to vector<4x1x8xf32>
    %399 = arith.addf %397, %398 : vector<4x1x8xf32>
    %400 = math.rsqrt %399 : vector<4x1x8xf32>
    %401 = vector.shape_cast %2 : vector<1x8xf32> to vector<1x1x8xf32>
    %402 = vector.broadcast %401 : vector<1x1x8xf32> to vector<4x1x8xf32>
    %403 = arith.mulf %402, %400 : vector<4x1x8xf32>
    %404 = arith.mulf %392, %403 : vector<4x1x8xf32>
    %405 = vector.shape_cast %3 : vector<1x8xf32> to vector<1x1x8xf32>
    %406 = vector.broadcast %405 : vector<1x1x8xf32> to vector<4x1x8xf32>
    %407 = arith.subf %406, %404 : vector<4x1x8xf32>
    %408 = vector.broadcast %403 : vector<4x1x8xf32> to vector<4x8x8xf32>
    %409 = arith.mulf %385, %408 : vector<4x8x8xf32>
    %410 = vector.broadcast %407 : vector<4x1x8xf32> to vector<4x8x8xf32>
    %411 = arith.addf %409, %410 : vector<4x8x8xf32>
    %412 = vector.shape_cast %411 : vector<4x8x8xf32> to vector<32x8xf32>
    %413 = arith.negf %412 : vector<32x8xf32>
    %414 = math.exp %413 : vector<32x8xf32>
    %cst_114 = arith.constant 1.000000e+00 : f32
    %415 = vector.broadcast %cst_114 : f32 to vector<32x8xf32>
    %416 = arith.addf %415, %414 : vector<32x8xf32>
    %417 = arith.divf %415, %416 : vector<32x8xf32>
    %c0_115 = arith.constant 0 : index
    %c0_116 = arith.constant 0 : index
    %c0_117 = arith.constant 0 : index
    %418 = vector.load %arg7[%c0_115, %c0_116, %c0_117] : memref<1x32x8xf32, #tpu.memory_space<vmem>>, vector<1x32x8xf32>
    %419 = vector.shape_cast %418 : vector<1x32x8xf32> to vector<32x8xf32>
    %420 = vector.shape_cast %417 : vector<32x8xf32> to vector<1x32x8xf32>
    tpu.vector_store %arg7[%c0_115, %c0_116, %c0_117], %420 {strides = array<i32>} : memref<1x32x8xf32, #tpu.memory_space<vmem>>, vector<1x32x8xf32>,
    return
  }
  func.func @transform_0(%arg0: i32) -> (i32, i32, i32) {
    %c0_i32 = arith.constant 0 : i32
    %c0_i32_0 = arith.constant 0 : i32
    %c0_i32_1 = arith.constant 0 : i32
    return %arg0, %c0_i32, %c0_i32_0 : i32, i32, i32
  }
  func.func @transform_1(%arg0: i32) -> (i32, i32) {
    %c0_i32 = arith.constant 0 : i32
    %c0_i32_0 = arith.constant 0 : i32
    %c0_i32_1 = arith.constant 0 : i32
    return %c0_i32, %c0_i32_0 : i32, i32
  }
  func.func @transform_2(%arg0: i32) -> (i32, i32, i32) {
    %c0_i32 = arith.constant 0 : i32
    %c0_i32_0 = arith.constant 0 : i32
    %c0_i32_1 = arith.constant 0 : i32
    %c0_i32_2 = arith.constant 0 : i32
    return %c0_i32, %c0_i32_0, %c0_i32_1 : i32, i32, i32
  }
  func.func @transform_3(%arg0: i32) -> (i32, i32, i32) {
    %c0_i32 = arith.constant 0 : i32
    %c0_i32_0 = arith.constant 0 : i32
    %c0_i32_1 = arith.constant 0 : i32
    %c0_i32_2 = arith.constant 0 : i32
    return %c0_i32, %c0_i32_0, %c0_i32_1 : i32, i32, i32
  }
  func.func @transform_4(%arg0: i32) -> (i32, i32) {
    %c0_i32 = arith.constant 0 : i32
    %c0_i32_0 = arith.constant 0 : i32
    %c0_i32_1 = arith.constant 0 : i32
    return %c0_i32, %c0_i32_0 : i32, i32
  }
  func.func @transform_5(%arg0: i32) -> (i32, i32) {
    %c0_i32 = arith.constant 0 : i32
    %c0_i32_0 = arith.constant 0 : i32
    %c0_i32_1 = arith.constant 0 : i32
    return %c0_i32, %c0_i32_0 : i32, i32
  }
  func.func @transform_6(%arg0: i32) -> (i32, i32, i32) {
    %c0_i32 = arith.constant 0 : i32
    %c0_i32_0 = arith.constant 0 : i32
    %c0_i32_1 = arith.constant 0 : i32
    return %arg0, %c0_i32, %c0_i32_0 : i32, i32, i32
  }
}

</mosaic_0001>

<bundles_post_ra>
// kernel: tpu_custom_call.1
= control target key start
LH: loop header
LB: loop body
LE: loop exit
PB: predicated region body
PF: predicated region fallthrough
CT: control target
= control target key end

     0   :  { %11 = vsyncpa [#allocation3], 0  ;;  %s3752_s21 = smov 0   ;;  %s4468_s0 = inlined_call_operand.vmem [shape: f32[2,32,16], index: 0, kind: input, shape index: {}]   ;;  %s4469_s1 = inlined_call_operand.vmem [shape: bf16[16,32], index: 1, kind: input, shape index: {}]   ;;  %s4470_s2 = inlined_call_operand.hbm [shape: bf16[10,32,32], index: 2, kind: input, shape index: {}]   ;;  %s4471_s3 = inlined_call_operand.vmem [shape: f32[10,2,32], index: 3, kind: input, shape index: {}]   ;;  %s4472_s4 = inlined_call_operand.vmem [shape: bf16[32,8], index: 4, kind: input, shape index: {}]   ;;  %s4473_s5 = inlined_call_operand.vmem [shape: f32[3,32], index: 5, kind: input, shape index: {}]   ;;  %s4474_s6 = inlined_call_operand.vmem [shape: f32[2,32,8], index: 6, kind: output, shape index: {}]  }
   0x1 LB: > { %s3758_s22 = sadd.s32 4294967295, %s3708_s21   ;;  %p3215_p0 = scmp.ge.s32.totalorder %s3708_s21, 1  ;;  %s3708_s21 = sphi %s3752_s21, %s17_s21  }
   0x2   : > { %p179_p1 = scmp.lt.s32.totalorder %s3708_s21, 3  ;;  %s3710_s23 = smov [#allocation2]  }
   0x3   : > { %s194_s24 = sshll.u32 %s3710_s23, 4  ;;  %p4475_p3 = scmp.eq.s32.totalorder %s3758_s22, 0  ;;  %s195_s24 = int_to_ptr.vmem [resolvable:$true] %s194_s24 }
   0x4   : > { %p3762_p2 = pnand %p3215_p0, %p179_p1  ;;  %s3670_s29 = scalar_lea.hbm %s4470_s2, 2560 }
   0x5   : > { %p3671_p6 = scmp.ne.s32.totalorder %s4470_s2, %s3670_s29  ;;  %p3677_p10 = scmp.lt.u32.totalorder %s3670_s29, %s4470_s2 }
   0x6   : > { %s4477_s25 = scalar_select %p3762_p2, 1, 0 }
   0x7   : > { %p3433_p4 = pneg %p3762_p2 }
   0x9   : > { %p3771_p5 = pnand %p4475_p3, %p3433_p4 }
   0xb   : > { %p3672_p7 = pneg %p3771_p5 }
   0xd   : > { %p3673_p8 = pnand %p3672_p7, %p3671_p6 }
   0xf   : > { %p3674_p9 = pneg %p3673_p8 }
  0x11   : > { %p3679_p11 = pnand %p3677_p10, %p3674_p9 }
  0x13   : > { %3682 = shalt.err (!%p3679_p11)
}
  0x14   : > { %s3683_s10 = scalar_lea.vmem %s195_s24, 2560  ;;  %p3691_p1 = scmp.lt.s32.totalorder %s195_s24, %s195_s24 }
  0x15   : > { %p3684_p12 = scmp.ne.s32.totalorder %s195_s24, %s3683_s10  ;;  %p3692_p4 = scmp.lt.s32.totalorder %s3683_s10, %s3683_s10 }
  0x17   : > { %p3686_p13 = pnand %p3684_p12, %p3672_p7  ;;  %p3693_p3 = por %p3692_p4, %p3691_p1 }
  0x19   : > { %p3687_p0 = pneg %p3686_p13 }
  0x1b   : > { %p3694_p2 = pnand %p3693_p3, %p3687_p0 }
  0x1d   : > { %3697 = shalt.err (!%p3694_p2)
}
  0x1e   : > { %s3711_s11 = smov 64   ;;  %s3712_s12 = smov 4  }
  0x1f   : > { %3436 = dma.hbm_to_vmem [thread:$0]  (!%p3771_p5), %s4470_s2, 2560, %s195_s24, [#allocation3], %s3711_s11, %s3711_s11, %s3712_s12  }
  0x20   : > { %p4479_p6 = scmp.ne.s32.totalorder %s4477_s25, 0 }
  0x21   : > { %p4480_p8 = scmp.eq.s32.totalorder (!%p4479_p6), %s3758_s22, 0 }
  0x22   : > { %227 = sbr.rel (%p4479_p6) target bundleno = 7186 (0x1c12), region = 44 }
  0x29   : > { %3703 = dma.done.wait (%p4480_p8), [#allocation3], 2560   ;;  %p4481_p7 = pmov %p4480_p8 }
  0x2a   : > { %p257_p2 = scmp.lt.s32.totalorder %s3758_s22, 1  ;;  %v3454_v0 = vld [vmem:[%s4469_s1] sm:$0xff]   ;;  %vm287_vm0 = vcmask 130048   ;;  %v3456_v8 = vld [vmem:[#allocation2 + $0x8] sm:$0xff]   ;;  %v277_v9 = vlaneseq  ;;  %vm366_vm1 = vcmask 261120   ;;  %s3713_s25 = smov 32  }
  0x2b   : > { %3705 = vsyncadd (%p4481_p7), [#allocation3], 4294964736  ;;  %3335 = vmatprep.subr.bf16.mxu0 %v3454_v0  ;;  %v3455_v7 = vld [vmem:[#allocation2] sm:$0xff]   ;;  %vm446_vm2 = vcmask 523264   ;;  %s3714_s26 = smov 96   ;;  %vm2961_vm3 = vcmask 64512  }
  0x2c   : > { %s4483_s22 = smov (!%p257_p2, %s3758_s22), 1  ;;  %3336 = vmatpush3.bf16.msra.mxu0 %v3454_v0  ;;  %3341 = vmatprep.subr.bf16.mxu1 %v3455_v7  ;;  %v3812_v10 = vshrl.u32 %v277_v9, 7  ;;  %v268_v12 = vld [vmem:[%s4473_s5] sm:$0x7]  ;;  %s3716_s7 = smov 120  }
  0x2d   : > { %s3286_s15 = sshll.u32 %s4483_s22, 5  ;;  %3342 = vmatpush3.bf16.msra.mxu1 %v3455_v7 }
  0x2e   : > { %s261_s18 = scalar_lea.vmem %s4468_s0, %s3286_s15  ;;  %3343 = vmatprep.subr.bf16.mxu1 %v3456_v8  ;;  %v3815_v11 = vsub.s32 0, %v3812_v10  ;;  %s266_s12 = scalar_lea.vmem %s4474_s6, %s3286_s15 }
  0x2f   : > { %v269_v1 = vld [vmem:[%s261_s18] sm:$0xff]  ;;  %v270_v2 = vld [vmem:[%s261_s18 + $0x8] sm:$0xff]  ;;  %v271_v3 = vld [vmem:[%s261_s18 + $0x10] sm:$0xff] }
  0x30   : > { %v273_v4 = vpack.c.bf16 %v270_v2, %v269_v1  ;;  %v272_v5 = vld [vmem:[%s261_s18 + $0x18] sm:$0xff]  ;;  %v280_v13 = vrot.slane %v268_v12, %v3815_v11 }
  0x31   : > { %v274_v6 = vpack.c.bf16 %v272_v5, %v271_v3  ;;  %3344 = vmatpush3.bf16.msra.mxu1 %v3456_v8 }
  0x32   : > { %3337 = vmatprep.mubr.msk.bf16.mxu0 %vm287_vm0, %v273_v4 }
  0x33   : > { %3338 = vmatmul.mubr.msk.bf16.vlgmr.msra.gmra.mrb[0].mxu0 %vm287_vm0, %v274_v6 }
 0x106   : > { %v3339_v14 = vpop.f32.mrb[0].mxu0 }
 0x107   : > { %v337_v15 = vadd.f32 %v3339_v14, %v280_v13  ;;  %v328_v16 = vpop.f32.mrb[1].mxu0 }
 0x108   : > { %v329_v17 = vadd.f32 %v328_v16, %v280_v13  ;;  %v3340_v18 = vpop.f32.mrb[2].mxu0 }
 0x109   : > { %3477 = vtanh.f32 %v337_v15  ;;  %v340_v19 = vadd.f32 %v3340_v18, %v280_v13  ;;  %v331_v20 = vpop.f32.mrb[3].mxu0 }
 0x10a   : > { %3479 = vtanh.f32 %v329_v17  ;;  %v332_v21 = vadd.f32 %v331_v20, %v280_v13 }
 0x10b   : > { %3481 = vtanh.f32 %v340_v19 }
 0x10c   : > { %3483 = vtanh.f32 %v332_v21 }
 0x113   : > { %v3478_v22 = vpop.eup %3477 }
 0x114   : > { %v3480_v23 = vpop.eup %3479 }
 0x115   : > { %v3482_v24 = vpop.eup %3481 }
 0x116   : > { %v3484_v25 = vpop.eup %3483  ;;  %v349_v26 = vpack.c.bf16 %v3482_v24, %v3478_v22 }
 0x117   : > { %v348_v27 = vpack.c.bf16 %v3484_v25, %v3480_v23 }
 0x119   : > { %3345 = vmatprep.mubr.msk.bf16.mxu1 %vm366_vm1, %v348_v27 }
 0x11a   : > { %3346 = vmatmul.mubr.msk.bf16.vlgmr.msra.gmra.mrb[0].mxu1 %vm366_vm1, %v349_v26 }
 0x1ed   : > { %v3823_v28 = vpop.f32.mrb[0].mxu1 }
 0x1ee   : > { %v3825_v29 = vpop.f32.mrb[1].mxu1  ;;  %v424_v30 = vmul.f32 %v3823_v28, %v3823_v28 }
 0x1ef   : > { %v3829_v31 = vpop.f32.mrb[2].mxu1  ;;  %v422_v32 = vmul.f32 %v3825_v29, %v3825_v29 }
 0x1f0   : > { %434 = vrot.lane.b32.xlu1 %v424_v30, %s3713_s25  ;;  %v3834_v33 = vpop.f32.mrb[3].mxu1  ;;  %v425_v34 = vmul.f32 %v3829_v31, %v3829_v31 }
 0x1f1   : > { %430 = vrot.lane.b32.xlu0 %v422_v32, %s3713_s25  ;;  %v423_v35 = vmul.f32 %v3834_v33, %v3834_v33 }
 0x1f4   : > { %436 = vrot.lane.b32.xlu1 %v425_v34, %s3713_s25 }
 0x1f5   : > { %432 = vrot.lane.b32.xlu0 %v423_v35, %s3713_s25 }
 0x262   : > { %v435_v36 = vpop.permute.xlu1 %434 }
 0x263   : > { %v444_v37 = vsel %vm366_vm1, %v3823_v28, %v435_v36  ;;  %v431_v38 = vpop.permute.xlu0 %430 }
 0x264   : > { %v461_v39 = vsel %vm446_vm2, %v444_v37, 0.0  ;;  %v442_v40 = vsel %vm366_vm1, %v3825_v29, %v431_v38 }
 0x265   : > { %v462_v41 = vrot.slane %v461_v39, 4  ;;  %v447_v42 = vsel %vm446_vm2, %v442_v40, 0.0 }
 0x266   : > { %v448_v43 = vrot.slane %v447_v42, 4  ;;  %v437_v44 = vpop.permute.xlu1 %436 }
 0x267   : > { %v463_v45 = vadd.f32 %v462_v41, %v461_v39  ;;  %v445_v46 = vsel %vm366_vm1, %v3829_v31, %v437_v44  ;;  %v433_v47 = vpop.permute.xlu0 %432  ;;  %v347_v44 = vld [vmem:[%s4471_s3] sm:$0x3] }
 0x268   : > { %v449_v48 = vadd.f32 %v448_v43, %v447_v42  ;;  %v468_v49 = vsel %vm446_vm2, %v445_v46, 0.0  ;;  %v443_v50 = vsel %vm366_vm1, %v3834_v33, %v433_v47  ;;  %v3457_v42 = vld [vmem:[#allocation2 + $0x10] sm:$0xff]   ;;  %v3458_v43 = vld [vmem:[#allocation2 + $0x18] sm:$0xff]  }
 0x269   : > { %v464_v51 = vrot.slane %v463_v45, 2  ;;  %v469_v52 = vrot.slane %v468_v49, 4  ;;  %v454_v53 = vsel %vm446_vm2, %v443_v50, 0.0  ;;  %3349 = vmatprep.subr.bf16.mxu0 %v3457_v42 }
 0x26a   : > { %v450_v54 = vrot.slane %v449_v48, 2  ;;  %v455_v55 = vrot.slane %v454_v53, 4  ;;  %3350 = vmatpush3.bf16.msra.mxu0 %v3457_v42 }
 0x26b   : > { %v465_v56 = vadd.f32 %v464_v51, %v463_v45  ;;  %v470_v57 = vadd.f32 %v469_v52, %v468_v49  ;;  %3351 = vmatprep.subr.bf16.mxu0 %v3458_v43  ;;  %v3872_v49 = vsub.s32 1, %v3812_v10 }
 0x26c   : > { %v451_v58 = vadd.f32 %v450_v54, %v449_v48  ;;  %v456_v59 = vadd.f32 %v455_v55, %v454_v53 }
 0x26d   : > { %v466_v60 = vrot.slane %v465_v56, 1  ;;  %v471_v61 = vrot.slane %v470_v57, 2 }
 0x26e   : > { %v452_v62 = vrot.slane %v451_v58, 1  ;;  %v457_v63 = vrot.slane %v456_v59, 2  ;;  %3352 = vmatpush3.bf16.msra.mxu0 %v3458_v43 }
 0x26f   : > { %v472_v0 = vadd.f32 %v471_v61, %v470_v57  ;;  %v467_v1 = vadd.f32 %v466_v60, %v465_v56 }
 0x270   : > { %v453_v2 = vadd.f32 %v452_v62, %v451_v58  ;;  %v458_v3 = vadd.f32 %v457_v63, %v456_v59 }
 0x271   : > { %v473_v4 = vrot.slane %v472_v0, 1  ;;  %v478_v7 = vmul.f32 0.125, %v467_v1 }
 0x272   : > { %v476_v5 = vmul.f32 0.125, %v453_v2  ;;  %v459_v6 = vrot.slane %v458_v3, 1 }
 0x273   : > { %v474_v8 = vadd.f32 %v473_v4, %v472_v0  ;;  %v482_v15 = vmul.f32 %v478_v7, %v478_v7 }
 0x274   : > { %v460_v9 = vadd.f32 %v459_v6, %v458_v3  ;;  %v480_v12 = vmul.f32 %v476_v5, %v476_v5 }
 0x275   : > { %v3856_v14 = vmul.f32 0.125, %v474_v8 }
 0x276   : > { %v477_v13 = vmul.f32 0.125, %v460_v9  ;;  %488 = vrot.lane.b32.xlu0 %v480_v12, %s3713_s25 }
 0x277   : > { %v483_v17 = vmul.f32 %v3856_v14, %v3856_v14 }
 0x278   : > { %v481_v16 = vmul.f32 %v477_v13, %v477_v13 }
 0x27a   : > { %492 = vrot.lane.b32.xlu0 %v482_v15, %s3713_s25  ;;  %490 = vrot.lane.b32.xlu1 %v481_v16, %s3713_s25 }
 0x27e   : > { %494 = vrot.lane.b32.xlu1 %v483_v17, %s3713_s25 }
 0x2e8   : > { %v489_v18 = vpop.permute.xlu0 %488 }
 0x2e9   : > { %v500_v19 = vsub.f32 %v476_v5, %v489_v18 }
 0x2eb   : > { %v504_v20 = vmax.f32 %v500_v19, 0.0 }
 0x2ec   : > { %v491_v21 = vpop.permute.xlu1 %490  ;;  %v493_v22 = vpop.permute.xlu0 %492 }
 0x2ed   : > { %v508_v23 = vadd.f32 1e-05, %v504_v20  ;;  %v501_v24 = vsub.f32 %v477_v13, %v491_v21  ;;  %v502_v25 = vsub.f32 %v478_v7, %v493_v22 }
 0x2ef   : > { %3485 = vrsqrt.f32 %v508_v23  ;;  %v505_v26 = vmax.f32 %v501_v24, 0.0  ;;  %v506_v27 = vmax.f32 %v502_v25, 0.0 }
 0x2f0   : > { %v495_v30 = vpop.permute.xlu1 %494 }
 0x2f1   : > { %v509_v32 = vadd.f32 1e-05, %v505_v26  ;;  %v510_v34 = vadd.f32 1e-05, %v506_v27  ;;  %v503_v35 = vsub.f32 %v3856_v14, %v495_v30 }
 0x2f3   : > { %3487 = vrsqrt.f32 %v509_v32  ;;  %v507_v36 = vmax.f32 %v503_v35, 0.0 }
 0x2f4   : > { %3489 = vrsqrt.f32 %v510_v34 }
 0x2f5   : > { %v511_v37 = vadd.f32 1e-05, %v507_v36 }
 0x2f7   : > { %3491 = vrsqrt.f32 %v511_v37 }
 0x2f9   : > { %v3486_v38 = vpop.eup %3485 }
 0x2fa   : > { %520 = vrot.lane.b32.xlu0 %v3486_v38, %s3714_s26 }
 0x2fd   : > { %v3488_v39 = vpop.eup %3487 }
 0x2fe   : > { %v3490_v40 = vpop.eup %3489  ;;  %522 = vrot.lane.b32.xlu1 %v3488_v39, %s3714_s26 }
 0x2ff   : > { %524 = vrot.lane.b32.xlu0 %v3490_v40, %s3714_s26 }
 0x301   : > { %v3492_v41 = vpop.eup %3491 }
 0x302   : > { %526 = vrot.lane.b32.xlu1 %v3492_v41, %s3714_s26 }
 0x36c   : > { %v521_v45 = vpop.permute.xlu0 %520 }
 0x36d   : > { %v532_v46 = vmul.f32 %v521_v45, %v347_v44 }
 0x36f   : > { %v536_v47 = vmul.f32 %v532_v46, %v476_v5  ;;  %v559_v53 = vrot.slane %v532_v46, %v3815_v11 }
 0x370   : > { %v523_v48 = vpop.permute.xlu1 %522 }
 0x371   : > { %v544_v50 = vrot.slane %v536_v47, 7  ;;  %v533_v51 = vmul.f32 %v523_v48, %v347_v44  ;;  %v525_v52 = vpop.permute.xlu0 %524  ;;  %v572_v63 = vmul.f32 %v559_v53, %v3825_v29 }
 0x372   : > { %v534_v54 = vmul.f32 %v525_v52, %v347_v44 }
 0x373   : > { %v552_v55 = vsub.f32 %v347_v44, %v544_v50  ;;  %v537_v56 = vmul.f32 %v533_v51, %v477_v13  ;;  %v563_v61 = vrot.slane %v533_v51, %v3815_v11 }
 0x374   : > { %v538_v57 = vmul.f32 %v534_v54, %v478_v7  ;;  %v527_v58 = vpop.permute.xlu1 %526  ;;  %v567_v1 = vrot.slane %v534_v54, %v3815_v11 }
 0x375   : > { %v579_v59 = vrot.slane %v552_v55, %v3872_v49  ;;  %v545_v60 = vrot.slane %v537_v56, 7  ;;  %v535_v62 = vmul.f32 %v527_v58, %v347_v44  ;;  %v573_v6 = vmul.f32 %v563_v61, %v3834_v33 }
 0x376   : > { %v546_v0 = vrot.slane %v538_v57, 7  ;;  %v574_v12 = vmul.f32 %v3823_v28, %v567_v1 }
 0x377   : > { %v553_v2 = vsub.f32 %v347_v44, %v545_v60  ;;  %v539_v3 = vmul.f32 %v535_v62, %v3856_v14  ;;  %v592_v4 = vadd.f32 %v579_v59, %v572_v63  ;;  %v571_v9 = vrot.slane %v535_v62, %v3815_v11 }
 0x378   : > { %v554_v5 = vsub.f32 %v347_v44, %v546_v0 }
 0x379   : > { %v583_v7 = vrot.slane %v553_v2, %v3872_v49  ;;  %v547_v8 = vrot.slane %v539_v3, 7  ;;  %3493 = vtanh.f32 %v592_v4  ;;  %v575_v14 = vmul.f32 %v3829_v31, %v571_v9 }
 0x37a   : > { %v587_v13 = vrot.slane %v554_v5, %v3872_v49 }
 0x37b   : > { %v593_v29 = vadd.f32 %v583_v7, %v573_v6  ;;  %v555_v15 = vsub.f32 %v347_v44, %v547_v8 }
 0x37c   : > { %v594_v16 = vadd.f32 %v587_v13, %v574_v12 }
 0x37d   : > { %3495 = vtanh.f32 %v593_v29  ;;  %v591_v17 = vrot.slane %v555_v15, %v3872_v49 }
 0x37e   : > { %3497 = vtanh.f32 %v594_v16 }
 0x37f   : > { %v595_v18 = vadd.f32 %v591_v17, %v575_v14 }
 0x381   : > { %3499 = vtanh.f32 %v595_v18 }
 0x383   : > { %v3494_v33 = vpop.eup %3493 }
 0x387   : > { %v3496_v19 = vpop.eup %3495 }
 0x388   : > { %v602_v20 = vpack.c.bf16 %v3496_v19, %v3494_v33  ;;  %v3498_v21 = vpop.eup %3497 }
 0x38a   : > { %3353 = vmatprep.mubr.msk.bf16.mxu0 %vm366_vm1, %v602_v20 }
 0x38b   : > { %v3500_v28 = vpop.eup %3499 }
 0x38c   : > { %v603_v22 = vpack.c.bf16 %v3500_v28, %v3498_v21 }
 0x38e   : > { %3354 = vmatmul.mubr.msk.bf16.vlgmr.msra.gmra.mrb[4].mxu0 %vm366_vm1, %v603_v22 }
 0x461   : > { %v3889_v23 = vpop.f32.mrb[4].mxu0 }
 0x462   : > { %v3891_v24 = vpop.f32.mrb[5].mxu0  ;;  %v678_v30 = vmul.f32 %v3889_v23, %v3889_v23 }
 0x463   : > { %v676_v31 = vmul.f32 %v3891_v24, %v3891_v24  ;;  %v3895_v25 = vpop.f32.mrb[6].mxu0 }
 0x464   : > { %v3897_v26 = vpop.f32.mrb[7].mxu0  ;;  %v679_v32 = vmul.f32 %v3895_v25, %v3895_v25 }
 0x465   : > { %v677_v27 = vmul.f32 %v3897_v26, %v3897_v26  ;;  %684 = vrot.lane.b32.xlu0 %v676_v31, %s3713_s25 }
 0x467   : > { %686 = vrot.lane.b32.xlu1 %v677_v27, %s3713_s25 }
 0x469   : > { %688 = vrot.lane.b32.xlu0 %v678_v30, %s3713_s25 }
 0x46b   : > { %690 = vrot.lane.b32.xlu1 %v679_v32, %s3713_s25 }
 0x4d7   : > { %v685_v34 = vpop.permute.xlu0 %684 }
 0x4d8   : > { %v696_v35 = vsel %vm366_vm1, %v3891_v24, %v685_v34 }
 0x4d9   : > { %v700_v36 = vsel %vm446_vm2, %v696_v35, 0.0  ;;  %v687_v37 = vpop.permute.xlu1 %686 }
 0x4da   : > { %v701_v38 = vrot.slane %v700_v36, 4  ;;  %v697_v39 = vsel %vm366_vm1, %v3897_v26, %v687_v37 }
 0x4db   : > { %v707_v40 = vsel %vm446_vm2, %v697_v39, 0.0  ;;  %v689_v41 = vpop.permute.xlu0 %688 }
 0x4dc   : > { %v702_v42 = vadd.f32 %v701_v38, %v700_v36  ;;  %v708_v43 = vrot.slane %v707_v40, 4  ;;  %v698_v44 = vsel %vm366_vm1, %v3889_v23, %v689_v41  ;;  %v3459_v41 = vld [vmem:[#allocation2 + $0x20] sm:$0xff]  }
 0x4dd   : > { %v714_v45 = vsel %vm446_vm2, %v698_v44, 0.0  ;;  %v691_v46 = vpop.permute.xlu1 %690  ;;  %3357 = vmatprep.subr.bf16.mxu1 %v3459_v41 }
 0x4de   : > { %v703_v47 = vrot.slane %v702_v42, 2  ;;  %v709_v48 = vadd.f32 %v708_v43, %v707_v40  ;;  %v715_v50 = vrot.slane %v714_v45, 4  ;;  %v699_v51 = vsel %vm366_vm1, %v3895_v25, %v691_v46  ;;  %3358 = vmatpush3.bf16.msra.mxu1 %v3459_v41  ;;  %v3231_v43 = vld [vmem:[%s4471_s3 + $0x2] sm:$0x3] }
 0x4df   : > { %v721_v52 = vsel %vm446_vm2, %v699_v51, 0.0 }
 0x4e0   : > { %v704_v53 = vadd.f32 %v703_v47, %v702_v42  ;;  %v710_v54 = vrot.slane %v709_v48, 2  ;;  %v716_v55 = vadd.f32 %v715_v50, %v714_v45  ;;  %v722_v56 = vrot.slane %v721_v52, 4  ;;  %v3460_v42 = vld [vmem:[#allocation2 + $0x28] sm:$0xff]  }
 0x4e1   : > { %3359 = vmatprep.subr.bf16.mxu1 %v3460_v42 }
 0x4e2   : > { %v705_v57 = vrot.slane %v704_v53, 1  ;;  %v711_v58 = vadd.f32 %v710_v54, %v709_v48  ;;  %v717_v59 = vrot.slane %v716_v55, 2  ;;  %v723_v60 = vadd.f32 %v722_v56, %v721_v52  ;;  %3360 = vmatpush3.bf16.msra.mxu1 %v3460_v42 }
 0x4e4   : > { %v706_v61 = vadd.f32 %v705_v57, %v704_v53  ;;  %v712_v62 = vrot.slane %v711_v58, 1  ;;  %v718_v63 = vadd.f32 %v717_v59, %v716_v55  ;;  %v724_v0 = vrot.slane %v723_v60, 2 }
 0x4e6   : > { %v728_v1 = vmul.f32 0.125, %v706_v61  ;;  %v713_v2 = vadd.f32 %v712_v62, %v711_v58  ;;  %v719_v3 = vrot.slane %v718_v63, 1  ;;  %v725_v4 = vadd.f32 %v724_v0, %v723_v60 }
 0x4e8   : > { %v729_v5 = vmul.f32 0.125, %v713_v2  ;;  %v720_v6 = vadd.f32 %v719_v3, %v718_v63  ;;  %v726_v7 = vrot.slane %v725_v4, 1  ;;  %v732_v8 = vmul.f32 %v728_v1, %v728_v1 }
 0x4ea   : > { %v730_v9 = vmul.f32 0.125, %v720_v6  ;;  %v727_v12 = vadd.f32 %v726_v7, %v725_v4  ;;  %740 = vrot.lane.b32.xlu0 %v732_v8, %s3713_s25  ;;  %v733_v13 = vmul.f32 %v729_v5, %v729_v5 }
 0x4ec   : > { %v731_v29 = vmul.f32 0.125, %v727_v12  ;;  %742 = vrot.lane.b32.xlu1 %v733_v13, %s3713_s25  ;;  %v734_v15 = vmul.f32 %v730_v9, %v730_v9 }
 0x4ee   : > { %744 = vrot.lane.b32.xlu0 %v734_v15, %s3713_s25  ;;  %v735_v16 = vmul.f32 %v731_v29, %v731_v29 }
 0x4f0   : > { %746 = vrot.lane.b32.xlu1 %v735_v16, %s3713_s25 }
 0x55c   : > { %v741_v14 = vpop.permute.xlu0 %740 }
 0x55d   : > { %v752_v17 = vsub.f32 %v728_v1, %v741_v14 }
 0x55e   : > { %v743_v18 = vpop.permute.xlu1 %742 }
 0x55f   : > { %v756_v33 = vmax.f32 %v752_v17, 0.0  ;;  %v753_v19 = vsub.f32 %v729_v5, %v743_v18 }
 0x560   : > { %v745_v20 = vpop.permute.xlu0 %744 }
 0x561   : > { %v760_v21 = vadd.f32 1e-05, %v756_v33  ;;  %v757_v28 = vmax.f32 %v753_v19, 0.0  ;;  %v754_v22 = vsub.f32 %v730_v9, %v745_v20 }
 0x562   : > { %v747_v31 = vpop.permute.xlu1 %746 }
 0x563   : > { %3501 = vrsqrt.f32 %v760_v21  ;;  %v761_v27 = vadd.f32 1e-05, %v757_v28  ;;  %v758_v30 = vmax.f32 %v754_v22, 0.0  ;;  %v755_v32 = vsub.f32 %v731_v29, %v747_v31 }
 0x565   : > { %3503 = vrsqrt.f32 %v761_v27  ;;  %v762_v34 = vadd.f32 1e-05, %v758_v30  ;;  %v759_v35 = vmax.f32 %v755_v32, 0.0 }
 0x567   : > { %3505 = vrsqrt.f32 %v762_v34  ;;  %v763_v36 = vadd.f32 1e-05, %v759_v35 }
 0x569   : > { %3507 = vrsqrt.f32 %v763_v36 }
 0x56d   : > { %v3502_v37 = vpop.eup %3501 }
 0x56e   : > { %772 = vrot.lane.b32.xlu0 %v3502_v37, %s3714_s26 }
 0x56f   : > { %v3504_v38 = vpop.eup %3503 }
 0x570   : > { %774 = vrot.lane.b32.xlu1 %v3504_v38, %s3714_s26 }
 0x571   : > { %v3506_v39 = vpop.eup %3505 }
 0x572   : > { %776 = vrot.lane.b32.xlu0 %v3506_v39, %s3714_s26 }
 0x573   : > { %v3508_v40 = vpop.eup %3507 }
 0x574   : > { %778 = vrot.lane.b32.xlu1 %v3508_v40, %s3714_s26 }
 0x5e0   : > { %v773_v44 = vpop.permute.xlu0 %772 }
 0x5e1   : > { %v784_v45 = vmul.f32 %v3231_v43, %v773_v44 }
 0x5e2   : > { %v775_v46 = vpop.permute.xlu1 %774 }
 0x5e3   : > { %v788_v47 = vmul.f32 %v784_v45, %v728_v1  ;;  %v785_v48 = vmul.f32 %v3231_v43, %v775_v46  ;;  %v811_v52 = vrot.slane %v784_v45, %v3815_v11 }
 0x5e4   : > { %v777_v50 = vpop.permute.xlu0 %776 }
 0x5e5   : > { %v796_v51 = vrot.slane %v788_v47, 7  ;;  %v789_v53 = vmul.f32 %v785_v48, %v729_v5  ;;  %v815_v54 = vrot.slane %v785_v48, %v3815_v11  ;;  %v786_v55 = vmul.f32 %v3231_v43, %v777_v50 }
 0x5e6   : > { %v779_v56 = vpop.permute.xlu1 %778  ;;  %v824_v61 = vmul.f32 %v811_v52, %v3891_v24 }
 0x5e7   : > { %v804_v57 = vsub.f32 %v3231_v43, %v796_v51  ;;  %v797_v58 = vrot.slane %v789_v53, 7  ;;  %v787_v59 = vmul.f32 %v3231_v43, %v779_v56  ;;  %v790_v60 = vmul.f32 %v786_v55, %v730_v9 }
 0x5e8   : > { %v825_v1 = vmul.f32 %v815_v54, %v3897_v26  ;;  %v819_v3 = vrot.slane %v786_v55, %v3815_v11 }
 0x5e9   : > { %v831_v62 = vrot.slane %v804_v57, %v3872_v49  ;;  %v805_v63 = vsub.f32 %v3231_v43, %v797_v58  ;;  %v791_v0 = vmul.f32 %v787_v59, %v731_v29  ;;  %v798_v2 = vrot.slane %v790_v60, 7 }
 0x5ea   : > { %v823_v7 = vrot.slane %v787_v59, %v3815_v11  ;;  %v826_v24 = vmul.f32 %v3889_v23, %v819_v3 }
 0x5eb   : > { %v844_v4 = vadd.f32 %v831_v62, %v824_v61  ;;  %v835_v5 = vrot.slane %v805_v63, %v3872_v49  ;;  %v799_v6 = vrot.slane %v791_v0, 7  ;;  %v806_v8 = vsub.f32 %v3231_v43, %v798_v2 }
 0x5ec   : > { %v827_v26 = vmul.f32 %v3895_v25, %v823_v7 }
 0x5ed   : > { %v845_v12 = vadd.f32 %v835_v5, %v825_v1  ;;  %v807_v9 = vsub.f32 %v3231_v43, %v799_v6  ;;  %3509 = vtanh.f32 %v844_v4  ;;  %v839_v13 = vrot.slane %v806_v8, %v3872_v49 }
 0x5ef   : > { %3511 = vtanh.f32 %v845_v12  ;;  %v843_v29 = vrot.slane %v807_v9, %v3872_v49  ;;  %v846_v15 = vadd.f32 %v839_v13, %v826_v24 }
 0x5f1   : > { %v847_v16 = vadd.f32 %v843_v29, %v827_v26  ;;  %3513 = vtanh.f32 %v846_v15 }
 0x5f3   : > { %3515 = vtanh.f32 %v847_v16 }
 0x5f7   : > { %v3510_v14 = vpop.eup %3509 }
 0x5f9   : > { %v3512_v17 = vpop.eup %3511 }
 0x5fa   : > { %v854_v18 = vpack.c.bf16 %v3512_v17, %v3510_v14 }
 0x5fb   : > { %v3514_v33 = vpop.eup %3513 }
 0x5fc   : > { %3361 = vmatprep.mubr.msk.bf16.mxu1 %vm366_vm1, %v854_v18 }
 0x5fd   : > { %v3516_v19 = vpop.eup %3515 }
 0x5fe   : > { %v855_v20 = vpack.c.bf16 %v3516_v19, %v3514_v33 }
 0x600   : > { %3362 = vmatmul.mubr.msk.bf16.vlgmr.msra.gmra.mrb[4].mxu1 %vm366_vm1, %v855_v20 }
 0x6d3   : > { %v3946_v23 = vpop.f32.mrb[4].mxu1 }
 0x6d4   : > { %v3948_v21 = vpop.f32.mrb[5].mxu1  ;;  %v930_v27 = vmul.f32 %v3946_v23, %v3946_v23 }
 0x6d5   : > { %v928_v25 = vmul.f32 %v3948_v21, %v3948_v21  ;;  %v3952_v28 = vpop.f32.mrb[6].mxu1 }
 0x6d6   : > { %v3954_v22 = vpop.f32.mrb[7].mxu1  ;;  %v931_v30 = vmul.f32 %v3952_v28, %v3952_v28 }
 0x6d7   : > { %v929_v31 = vmul.f32 %v3954_v22, %v3954_v22  ;;  %936 = vrot.lane.b32.xlu0 %v928_v25, %s3713_s25 }
 0x6d9   : > { %938 = vrot.lane.b32.xlu1 %v929_v31, %s3713_s25 }
 0x6db   : > { %940 = vrot.lane.b32.xlu0 %v930_v27, %s3713_s25 }
 0x6dd   : > { %942 = vrot.lane.b32.xlu1 %v931_v30, %s3713_s25 }
 0x749   : > { %v937_v32 = vpop.permute.xlu0 %936 }
 0x74a   : > { %v948_v34 = vsel %vm366_vm1, %v3948_v21, %v937_v32 }
 0x74b   : > { %v952_v35 = vsel %vm446_vm2, %v948_v34, 0.0  ;;  %v939_v36 = vpop.permute.xlu1 %938 }
 0x74c   : > { %v953_v37 = vrot.slane %v952_v35, 4  ;;  %v949_v38 = vsel %vm366_vm1, %v3954_v22, %v939_v36 }
 0x74d   : > { %v959_v39 = vsel %vm446_vm2, %v949_v38, 0.0  ;;  %v941_v40 = vpop.permute.xlu0 %940 }
 0x74e   : > { %v954_v41 = vadd.f32 %v953_v37, %v952_v35  ;;  %v960_v42 = vrot.slane %v959_v39, 4  ;;  %v950_v43 = vsel %vm366_vm1, %v3946_v23, %v941_v40  ;;  %v3461_v40 = vld [vmem:[#allocation2 + $0x30] sm:$0xff]  }
 0x74f   : > { %v966_v44 = vsel %vm446_vm2, %v950_v43, 0.0  ;;  %v943_v45 = vpop.permute.xlu1 %942  ;;  %3365 = vmatprep.subr.bf16.mxu0 %v3461_v40 }
 0x750   : > { %v955_v46 = vrot.slane %v954_v41, 2  ;;  %v961_v47 = vadd.f32 %v960_v42, %v959_v39  ;;  %v967_v48 = vrot.slane %v966_v44, 4  ;;  %v951_v50 = vsel %vm366_vm1, %v3952_v28, %v943_v45  ;;  %3366 = vmatpush3.bf16.msra.mxu0 %v3461_v40  ;;  %v3236_v42 = vld [vmem:[%s4471_s3 + $0x4] sm:$0x3] }
 0x751   : > { %v973_v51 = vsel %vm446_vm2, %v951_v50, 0.0 }
 0x752   : > { %v956_v52 = vadd.f32 %v955_v46, %v954_v41  ;;  %v962_v53 = vrot.slane %v961_v47, 2  ;;  %v968_v54 = vadd.f32 %v967_v48, %v966_v44  ;;  %v974_v55 = vrot.slane %v973_v51, 4  ;;  %v3462_v41 = vld [vmem:[#allocation2 + $0x38] sm:$0xff]  }
 0x753   : > { %3367 = vmatprep.subr.bf16.mxu0 %v3462_v41 }
 0x754   : > { %v957_v56 = vrot.slane %v956_v52, 1  ;;  %v963_v57 = vadd.f32 %v962_v53, %v961_v47  ;;  %v969_v58 = vrot.slane %v968_v54, 2  ;;  %v975_v59 = vadd.f32 %v974_v55, %v973_v51  ;;  %3368 = vmatpush3.bf16.msra.mxu0 %v3462_v41 }
 0x756   : > { %v958_v60 = vadd.f32 %v957_v56, %v956_v52  ;;  %v964_v61 = vrot.slane %v963_v57, 1  ;;  %v970_v62 = vadd.f32 %v969_v58, %v968_v54  ;;  %v976_v63 = vrot.slane %v975_v59, 2 }
 0x758   : > { %v980_v0 = vmul.f32 0.125, %v958_v60  ;;  %v965_v1 = vadd.f32 %v964_v61, %v963_v57  ;;  %v971_v2 = vrot.slane %v970_v62, 1  ;;  %v977_v3 = vadd.f32 %v976_v63, %v975_v59 }
 0x75a   : > { %v981_v4 = vmul.f32 0.125, %v965_v1  ;;  %v972_v5 = vadd.f32 %v971_v2, %v970_v62  ;;  %v978_v6 = vrot.slane %v977_v3, 1  ;;  %v984_v7 = vmul.f32 %v980_v0, %v980_v0 }
 0x75c   : > { %v982_v8 = vmul.f32 0.125, %v972_v5  ;;  %v979_v12 = vadd.f32 %v978_v6, %v977_v3  ;;  %992 = vrot.lane.b32.xlu0 %v984_v7, %s3713_s25  ;;  %v985_v9 = vmul.f32 %v981_v4, %v981_v4 }
 0x75e   : > { %v983_v24 = vmul.f32 0.125, %v979_v12  ;;  %994 = vrot.lane.b32.xlu1 %v985_v9, %s3713_s25  ;;  %v986_v13 = vmul.f32 %v982_v8, %v982_v8 }
 0x760   : > { %996 = vrot.lane.b32.xlu0 %v986_v13, %s3713_s25  ;;  %v987_v26 = vmul.f32 %v983_v24, %v983_v24 }
 0x762   : > { %998 = vrot.lane.b32.xlu1 %v987_v26, %s3713_s25 }
 0x7ce   : > { %v993_v29 = vpop.permute.xlu0 %992 }
 0x7cf   : > { %v1004_v15 = vsub.f32 %v980_v0, %v993_v29 }
 0x7d0   : > { %v995_v16 = vpop.permute.xlu1 %994 }
 0x7d1   : > { %v1008_v14 = vmax.f32 %v1004_v15, 0.0  ;;  %v1005_v17 = vsub.f32 %v981_v4, %v995_v16 }
 0x7d2   : > { %v997_v18 = vpop.permute.xlu0 %996 }
 0x7d3   : > { %v1012_v33 = vadd.f32 1e-05, %v1008_v14  ;;  %v1009_v19 = vmax.f32 %v1005_v17, 0.0  ;;  %v1006_v20 = vsub.f32 %v982_v8, %v997_v18 }
 0x7d4   : > { %v999_v25 = vpop.permute.xlu1 %998 }
 0x7d5   : > { %3517 = vrsqrt.f32 %v1012_v33  ;;  %v1013_v31 = vadd.f32 1e-05, %v1009_v19  ;;  %v1010_v27 = vmax.f32 %v1006_v20, 0.0  ;;  %v1007_v30 = vsub.f32 %v983_v24, %v999_v25 }
 0x7d7   : > { %3519 = vrsqrt.f32 %v1013_v31  ;;  %v1014_v32 = vadd.f32 1e-05, %v1010_v27  ;;  %v1011_v34 = vmax.f32 %v1007_v30, 0.0 }
 0x7d9   : > { %3521 = vrsqrt.f32 %v1014_v32  ;;  %v1015_v35 = vadd.f32 1e-05, %v1011_v34 }
 0x7db   : > { %3523 = vrsqrt.f32 %v1015_v35 }
 0x7df   : > { %v3518_v36 = vpop.eup %3517 }
 0x7e0   : > { %1024 = vrot.lane.b32.xlu0 %v3518_v36, %s3714_s26 }
 0x7e1   : > { %v3520_v37 = vpop.eup %3519 }
 0x7e2   : > { %1026 = vrot.lane.b32.xlu1 %v3520_v37, %s3714_s26 }
 0x7e3   : > { %v3522_v38 = vpop.eup %3521 }
 0x7e4   : > { %1028 = vrot.lane.b32.xlu0 %v3522_v38, %s3714_s26 }
 0x7e5   : > { %v3524_v39 = vpop.eup %3523 }
 0x7e6   : > { %1030 = vrot.lane.b32.xlu1 %v3524_v39, %s3714_s26 }
 0x852   : > { %v1025_v43 = vpop.permute.xlu0 %1024 }
 0x853   : > { %v1036_v44 = vmul.f32 %v3236_v42, %v1025_v43 }
 0x854   : > { %v1027_v45 = vpop.permute.xlu1 %1026 }
 0x855   : > { %v1040_v46 = vmul.f32 %v1036_v44, %v980_v0  ;;  %v1037_v47 = vmul.f32 %v3236_v42, %v1027_v45  ;;  %v1063_v51 = vrot.slane %v1036_v44, %v3815_v11 }
 0x856   : > { %v1029_v48 = vpop.permute.xlu0 %1028 }
 0x857   : > { %v1048_v50 = vrot.slane %v1040_v46, 7  ;;  %v1041_v52 = vmul.f32 %v1037_v47, %v981_v4  ;;  %v1067_v53 = vrot.slane %v1037_v47, %v3815_v11  ;;  %v1038_v54 = vmul.f32 %v3236_v42, %v1029_v48 }
 0x858   : > { %v1031_v55 = vpop.permute.xlu1 %1030  ;;  %v1076_v60 = vmul.f32 %v1063_v51, %v3948_v21 }
 0x859   : > { %v1056_v56 = vsub.f32 %v3236_v42, %v1048_v50  ;;  %v1049_v57 = vrot.slane %v1041_v52, 7  ;;  %v1039_v58 = vmul.f32 %v3236_v42, %v1031_v55  ;;  %v1042_v59 = vmul.f32 %v1038_v54, %v982_v8 }
 0x85a   : > { %v1077_v0 = vmul.f32 %v1067_v53, %v3954_v22  ;;  %v1071_v2 = vrot.slane %v1038_v54, %v3815_v11 }
 0x85b   : > { %v1083_v61 = vrot.slane %v1056_v56, %v3872_v49  ;;  %v1057_v62 = vsub.f32 %v3236_v42, %v1049_v57  ;;  %v1043_v63 = vmul.f32 %v1039_v58, %v983_v24  ;;  %v1050_v1 = vrot.slane %v1042_v59, 7 }
 0x85c   : > { %v1075_v6 = vrot.slane %v1039_v58, %v3815_v11  ;;  %v1078_v21 = vmul.f32 %v3946_v23, %v1071_v2 }
 0x85d   : > { %v1096_v3 = vadd.f32 %v1083_v61, %v1076_v60  ;;  %v1087_v4 = vrot.slane %v1057_v62, %v3872_v49  ;;  %v1051_v5 = vrot.slane %v1043_v63, 7  ;;  %v1058_v7 = vsub.f32 %v3236_v42, %v1050_v1 }
 0x85e   : > { %v1079_v22 = vmul.f32 %v3952_v28, %v1075_v6 }
 0x85f   : > { %v1097_v12 = vadd.f32 %v1087_v4, %v1077_v0  ;;  %v1059_v8 = vsub.f32 %v3236_v42, %v1051_v5  ;;  %3525 = vtanh.f32 %v1096_v3  ;;  %v1091_v9 = vrot.slane %v1058_v7, %v3872_v49 }
 0x861   : > { %3527 = vtanh.f32 %v1097_v12  ;;  %v1095_v24 = vrot.slane %v1059_v8, %v3872_v49  ;;  %v1098_v13 = vadd.f32 %v1091_v9, %v1078_v21 }
 0x863   : > { %v1099_v26 = vadd.f32 %v1095_v24, %v1079_v22  ;;  %3529 = vtanh.f32 %v1098_v13 }
 0x865   : > { %3531 = vtanh.f32 %v1099_v26 }
 0x869   : > { %v3526_v29 = vpop.eup %3525 }
 0x86b   : > { %v3528_v15 = vpop.eup %3527 }
 0x86c   : > { %v1106_v16 = vpack.c.bf16 %v3528_v15, %v3526_v29 }
 0x86d   : > { %v3530_v14 = vpop.eup %3529 }
 0x86e   : > { %3369 = vmatprep.mubr.msk.bf16.mxu0 %vm366_vm1, %v1106_v16 }
 0x86f   : > { %v3532_v17 = vpop.eup %3531 }
 0x870   : > { %v1107_v18 = vpack.c.bf16 %v3532_v17, %v3530_v14 }
 0x872   : > { %3370 = vmatmul.mubr.msk.bf16.vlgmr.msra.gmra.mrb[8].mxu0 %vm366_vm1, %v1107_v18 }
 0x945   : > { %v4003_v23 = vpop.f32.mrb[8].mxu0 }
 0x946   : > { %v4005_v33 = vpop.f32.mrb[9].mxu0  ;;  %v1182_v31 = vmul.f32 %v4003_v23, %v4003_v23 }
 0x947   : > { %v1180_v28 = vmul.f32 %v4005_v33, %v4005_v33  ;;  %v4009_v19 = vpop.f32.mrb[10].mxu0 }
 0x948   : > { %v4011_v20 = vpop.f32.mrb[11].mxu0  ;;  %v1183_v27 = vmul.f32 %v4009_v19, %v4009_v19 }
 0x949   : > { %v1181_v25 = vmul.f32 %v4011_v20, %v4011_v20  ;;  %1188 = vrot.lane.b32.xlu0 %v1180_v28, %s3713_s25 }
 0x94b   : > { %1190 = vrot.lane.b32.xlu1 %v1181_v25, %s3713_s25 }
 0x94d   : > { %1192 = vrot.lane.b32.xlu0 %v1182_v31, %s3713_s25 }
 0x94f   : > { %1194 = vrot.lane.b32.xlu1 %v1183_v27, %s3713_s25 }
 0x9bb   : > { %v1189_v30 = vpop.permute.xlu0 %1188 }
 0x9bc   : > { %v1200_v32 = vsel %vm366_vm1, %v4005_v33, %v1189_v30 }
 0x9bd   : > { %v1204_v34 = vsel %vm446_vm2, %v1200_v32, 0.0  ;;  %v1191_v35 = vpop.permute.xlu1 %1190 }
 0x9be   : > { %v1205_v36 = vrot.slane %v1204_v34, 4  ;;  %v1201_v37 = vsel %vm366_vm1, %v4011_v20, %v1191_v35 }
 0x9bf   : > { %v1211_v38 = vsel %vm446_vm2, %v1201_v37, 0.0  ;;  %v1193_v39 = vpop.permute.xlu0 %1192 }
 0x9c0   : > { %v1206_v40 = vadd.f32 %v1205_v36, %v1204_v34  ;;  %v1212_v41 = vrot.slane %v1211_v38, 4  ;;  %v1202_v42 = vsel %vm366_vm1, %v4003_v23, %v1193_v39  ;;  %v3463_v39 = vld [vmem:[#allocation2 + $0x40] sm:$0xff]  }
 0x9c1   : > { %v1218_v43 = vsel %vm446_vm2, %v1202_v42, 0.0  ;;  %v1195_v44 = vpop.permute.xlu1 %1194  ;;  %3373 = vmatprep.subr.bf16.mxu1 %v3463_v39 }
 0x9c2   : > { %v1207_v45 = vrot.slane %v1206_v40, 2  ;;  %v1213_v46 = vadd.f32 %v1212_v41, %v1211_v38  ;;  %v1219_v47 = vrot.slane %v1218_v43, 4  ;;  %v1203_v48 = vsel %vm366_vm1, %v4009_v19, %v1195_v44  ;;  %3374 = vmatpush3.bf16.msra.mxu1 %v3463_v39  ;;  %v3241_v41 = vld [vmem:[%s4471_s3 + $0x6] sm:$0x3] }
 0x9c3   : > { %v1225_v50 = vsel %vm446_vm2, %v1203_v48, 0.0 }
 0x9c4   : > { %v1208_v51 = vadd.f32 %v1207_v45, %v1206_v40  ;;  %v1214_v52 = vrot.slane %v1213_v46, 2  ;;  %v1220_v53 = vadd.f32 %v1219_v47, %v1218_v43  ;;  %v1226_v54 = vrot.slane %v1225_v50, 4  ;;  %v3464_v40 = vld [vmem:[#allocation2 + $0x48] sm:$0xff]  }
 0x9c5   : > { %3375 = vmatprep.subr.bf16.mxu1 %v3464_v40 }
 0x9c6   : > { %v1209_v55 = vrot.slane %v1208_v51, 1  ;;  %v1215_v56 = vadd.f32 %v1214_v52, %v1213_v46  ;;  %v1221_v57 = vrot.slane %v1220_v53, 2  ;;  %v1227_v58 = vadd.f32 %v1226_v54, %v1225_v50  ;;  %3376 = vmatpush3.bf16.msra.mxu1 %v3464_v40 }
 0x9c8   : > { %v1210_v59 = vadd.f32 %v1209_v55, %v1208_v51  ;;  %v1216_v60 = vrot.slane %v1215_v56, 1  ;;  %v1222_v61 = vadd.f32 %v1221_v57, %v1220_v53  ;;  %v1228_v62 = vrot.slane %v1227_v58, 2 }
 0x9ca   : > { %v1232_v63 = vmul.f32 0.125, %v1210_v59  ;;  %v1217_v0 = vadd.f32 %v1216_v60, %v1215_v56  ;;  %v1223_v1 = vrot.slane %v1222_v61, 1  ;;  %v1229_v2 = vadd.f32 %v1228_v62, %v1227_v58 }
 0x9cc   : > { %v1233_v3 = vmul.f32 0.125, %v1217_v0  ;;  %v1224_v4 = vadd.f32 %v1223_v1, %v1222_v61  ;;  %v1230_v5 = vrot.slane %v1229_v2, 1  ;;  %v1236_v6 = vmul.f32 %v1232_v63, %v1232_v63 }
 0x9ce   : > { %v1234_v7 = vmul.f32 0.125, %v1224_v4  ;;  %v1231_v12 = vadd.f32 %v1230_v5, %v1229_v2  ;;  %1244 = vrot.lane.b32.xlu0 %v1236_v6, %s3713_s25  ;;  %v1237_v8 = vmul.f32 %v1233_v3, %v1233_v3 }
 0x9d0   : > { %v1235_v21 = vmul.f32 0.125, %v1231_v12  ;;  %1246 = vrot.lane.b32.xlu1 %v1237_v8, %s3713_s25  ;;  %v1238_v9 = vmul.f32 %v1234_v7, %v1234_v7 }
 0x9d2   : > { %1248 = vrot.lane.b32.xlu0 %v1238_v9, %s3713_s25  ;;  %v1239_v22 = vmul.f32 %v1235_v21, %v1235_v21 }
 0x9d4   : > { %1250 = vrot.lane.b32.xlu1 %v1239_v22, %s3713_s25 }
 0xa40   : > { %v1245_v24 = vpop.permute.xlu0 %1244 }
 0xa41   : > { %v1256_v13 = vsub.f32 %v1232_v63, %v1245_v24 }
 0xa42   : > { %v1247_v26 = vpop.permute.xlu1 %1246 }
 0xa43   : > { %v1260_v29 = vmax.f32 %v1256_v13, 0.0  ;;  %v1257_v15 = vsub.f32 %v1233_v3, %v1247_v26 }
 0xa44   : > { %v1249_v16 = vpop.permute.xlu0 %1248 }
 0xa45   : > { %v1264_v14 = vadd.f32 1e-05, %v1260_v29  ;;  %v1261_v17 = vmax.f32 %v1257_v15, 0.0  ;;  %v1258_v18 = vsub.f32 %v1234_v7, %v1249_v16 }
 0xa46   : > { %v1251_v28 = vpop.permute.xlu1 %1250 }
 0xa47   : > { %3533 = vrsqrt.f32 %v1264_v14  ;;  %v1265_v25 = vadd.f32 1e-05, %v1261_v17  ;;  %v1262_v31 = vmax.f32 %v1258_v18, 0.0  ;;  %v1259_v27 = vsub.f32 %v1235_v21, %v1251_v28 }
 0xa49   : > { %3535 = vrsqrt.f32 %v1265_v25  ;;  %v1266_v30 = vadd.f32 1e-05, %v1262_v31  ;;  %v1263_v32 = vmax.f32 %v1259_v27, 0.0 }
 0xa4b   : > { %3537 = vrsqrt.f32 %v1266_v30  ;;  %v1267_v34 = vadd.f32 1e-05, %v1263_v32 }
 0xa4d   : > { %3539 = vrsqrt.f32 %v1267_v34 }
 0xa51   : > { %v3534_v35 = vpop.eup %3533 }
 0xa52   : > { %1276 = vrot.lane.b32.xlu0 %v3534_v35, %s3714_s26 }
 0xa53   : > { %v3536_v36 = vpop.eup %3535 }
 0xa54   : > { %1278 = vrot.lane.b32.xlu1 %v3536_v36, %s3714_s26 }
 0xa55   : > { %v3538_v37 = vpop.eup %3537 }
 0xa56   : > { %1280 = vrot.lane.b32.xlu0 %v3538_v37, %s3714_s26 }
 0xa57   : > { %v3540_v38 = vpop.eup %3539 }
 0xa58   : > { %1282 = vrot.lane.b32.xlu1 %v3540_v38, %s3714_s26 }
 0xac4   : > { %v1277_v42 = vpop.permute.xlu0 %1276 }
 0xac5   : > { %v1288_v43 = vmul.f32 %v3241_v41, %v1277_v42 }
 0xac6   : > { %v1279_v44 = vpop.permute.xlu1 %1278 }
 0xac7   : > { %v1292_v45 = vmul.f32 %v1288_v43, %v1232_v63  ;;  %v1289_v46 = vmul.f32 %v3241_v41, %v1279_v44  ;;  %v1315_v50 = vrot.slane %v1288_v43, %v3815_v11 }
 0xac8   : > { %v1281_v47 = vpop.permute.xlu0 %1280 }
 0xac9   : > { %v1300_v48 = vrot.slane %v1292_v45, 7  ;;  %v1293_v51 = vmul.f32 %v1289_v46, %v1233_v3  ;;  %v1319_v52 = vrot.slane %v1289_v46, %v3815_v11  ;;  %v1290_v53 = vmul.f32 %v3241_v41, %v1281_v47 }
 0xaca   : > { %v1283_v54 = vpop.permute.xlu1 %1282  ;;  %v1328_v59 = vmul.f32 %v1315_v50, %v4005_v33 }
 0xacb   : > { %v1308_v55 = vsub.f32 %v3241_v41, %v1300_v48  ;;  %v1301_v56 = vrot.slane %v1293_v51, 7  ;;  %v1291_v57 = vmul.f32 %v3241_v41, %v1283_v54  ;;  %v1294_v58 = vmul.f32 %v1290_v53, %v1234_v7 }
 0xacc   : > { %v1329_v63 = vmul.f32 %v1319_v52, %v4011_v20  ;;  %v1323_v1 = vrot.slane %v1290_v53, %v3815_v11 }
 0xacd   : > { %v1335_v60 = vrot.slane %v1308_v55, %v3872_v49  ;;  %v1309_v61 = vsub.f32 %v3241_v41, %v1301_v56  ;;  %v1295_v62 = vmul.f32 %v1291_v57, %v1235_v21  ;;  %v1302_v0 = vrot.slane %v1294_v58, 7 }
 0xace   : > { %v1327_v5 = vrot.slane %v1291_v57, %v3815_v11  ;;  %v1330_v33 = vmul.f32 %v4003_v23, %v1323_v1 }
 0xacf   : > { %v1348_v2 = vadd.f32 %v1335_v60, %v1328_v59  ;;  %v1339_v3 = vrot.slane %v1309_v61, %v3872_v49  ;;  %v1303_v4 = vrot.slane %v1295_v62, 7  ;;  %v1310_v6 = vsub.f32 %v3241_v41, %v1302_v0 }
 0xad0   : > { %v1331_v20 = vmul.f32 %v4009_v19, %v1327_v5 }
 0xad1   : > { %v1349_v12 = vadd.f32 %v1339_v3, %v1329_v63  ;;  %v1311_v7 = vsub.f32 %v3241_v41, %v1303_v4  ;;  %3541 = vtanh.f32 %v1348_v2  ;;  %v1343_v8 = vrot.slane %v1310_v6, %v3872_v49 }
 0xad3   : > { %3543 = vtanh.f32 %v1349_v12  ;;  %v1347_v21 = vrot.slane %v1311_v7, %v3872_v49  ;;  %v1350_v9 = vadd.f32 %v1343_v8, %v1330_v33 }
 0xad5   : > { %v1351_v22 = vadd.f32 %v1347_v21, %v1331_v20  ;;  %3545 = vtanh.f32 %v1350_v9 }
 0xad7   : > { %3547 = vtanh.f32 %v1351_v22 }
 0xadb   : > { %v3542_v24 = vpop.eup %3541 }
 0xadd   : > { %v3544_v13 = vpop.eup %3543 }
 0xade   : > { %v1358_v26 = vpack.c.bf16 %v3544_v13, %v3542_v24 }
 0xadf   : > { %v3546_v29 = vpop.eup %3545 }
 0xae0   : > { %3377 = vmatprep.mubr.msk.bf16.mxu1 %vm366_vm1, %v1358_v26 }
 0xae1   : > { %v3548_v15 = vpop.eup %3547 }
 0xae2   : > { %v1359_v16 = vpack.c.bf16 %v3548_v15, %v3546_v29 }
 0xae4   : > { %3378 = vmatmul.mubr.msk.bf16.vlgmr.msra.gmra.mrb[8].mxu1 %vm366_vm1, %v1359_v16 }
 0xbb7   : > { %v4060_v23 = vpop.f32.mrb[8].mxu1 }
 0xbb8   : > { %v4062_v14 = vpop.f32.mrb[9].mxu1  ;;  %v1434_v25 = vmul.f32 %v4060_v23, %v4060_v23 }
 0xbb9   : > { %v1432_v19 = vmul.f32 %v4062_v14, %v4062_v14  ;;  %v4066_v17 = vpop.f32.mrb[10].mxu1 }
 0xbba   : > { %v4068_v18 = vpop.f32.mrb[11].mxu1  ;;  %v1435_v31 = vmul.f32 %v4066_v17, %v4066_v17 }
 0xbbb   : > { %v1433_v28 = vmul.f32 %v4068_v18, %v4068_v18  ;;  %1440 = vrot.lane.b32.xlu0 %v1432_v19, %s3713_s25 }
 0xbbd   : > { %1442 = vrot.lane.b32.xlu1 %v1433_v28, %s3713_s25 }
 0xbbf   : > { %1444 = vrot.lane.b32.xlu0 %v1434_v25, %s3713_s25 }
 0xbc1   : > { %1446 = vrot.lane.b32.xlu1 %v1435_v31, %s3713_s25 }
 0xc2d   : > { %v1441_v27 = vpop.permute.xlu0 %1440 }
 0xc2e   : > { %v1452_v30 = vsel %vm366_vm1, %v4062_v14, %v1441_v27 }
 0xc2f   : > { %v1456_v32 = vsel %vm446_vm2, %v1452_v30, 0.0  ;;  %v1443_v34 = vpop.permute.xlu1 %1442 }
 0xc30   : > { %v1457_v35 = vrot.slane %v1456_v32, 4  ;;  %v1453_v36 = vsel %vm366_vm1, %v4068_v18, %v1443_v34 }
 0xc31   : > { %v1463_v37 = vsel %vm446_vm2, %v1453_v36, 0.0  ;;  %v1445_v38 = vpop.permute.xlu0 %1444 }
 0xc32   : > { %v1458_v39 = vadd.f32 %v1457_v35, %v1456_v32  ;;  %v1464_v40 = vrot.slane %v1463_v37, 4  ;;  %v1454_v41 = vsel %vm366_vm1, %v4060_v23, %v1445_v38  ;;  %v3465_v38 = vld [vmem:[#allocation2 + $0x50] sm:$0xff]  }
 0xc33   : > { %v1470_v42 = vsel %vm446_vm2, %v1454_v41, 0.0  ;;  %v1447_v43 = vpop.permute.xlu1 %1446  ;;  %3381 = vmatprep.subr.bf16.mxu0 %v3465_v38 }
 0xc34   : > { %v1459_v44 = vrot.slane %v1458_v39, 2  ;;  %v1465_v45 = vadd.f32 %v1464_v40, %v1463_v37  ;;  %v1471_v46 = vrot.slane %v1470_v42, 4  ;;  %v1455_v47 = vsel %vm366_vm1, %v4066_v17, %v1447_v43  ;;  %3382 = vmatpush3.bf16.msra.mxu0 %v3465_v38  ;;  %v3246_v40 = vld [vmem:[%s4471_s3 + $0x8] sm:$0x3] }
 0xc35   : > { %v1477_v48 = vsel %vm446_vm2, %v1455_v47, 0.0 }
 0xc36   : > { %v1460_v50 = vadd.f32 %v1459_v44, %v1458_v39  ;;  %v1466_v51 = vrot.slane %v1465_v45, 2  ;;  %v1472_v52 = vadd.f32 %v1471_v46, %v1470_v42  ;;  %v1478_v53 = vrot.slane %v1477_v48, 4  ;;  %v3466_v39 = vld [vmem:[#allocation2 + $0x58] sm:$0xff]  }
 0xc37   : > { %3383 = vmatprep.subr.bf16.mxu0 %v3466_v39 }
 0xc38   : > { %v1461_v54 = vrot.slane %v1460_v50, 1  ;;  %v1467_v55 = vadd.f32 %v1466_v51, %v1465_v45  ;;  %v1473_v56 = vrot.slane %v1472_v52, 2  ;;  %v1479_v57 = vadd.f32 %v1478_v53, %v1477_v48  ;;  %3384 = vmatpush3.bf16.msra.mxu0 %v3466_v39 }
 0xc3a   : > { %v1462_v58 = vadd.f32 %v1461_v54, %v1460_v50  ;;  %v1468_v59 = vrot.slane %v1467_v55, 1  ;;  %v1474_v60 = vadd.f32 %v1473_v56, %v1472_v52  ;;  %v1480_v61 = vrot.slane %v1479_v57, 2 }
 0xc3c   : > { %v1484_v62 = vmul.f32 0.125, %v1462_v58  ;;  %v1469_v63 = vadd.f32 %v1468_v59, %v1467_v55  ;;  %v1475_v0 = vrot.slane %v1474_v60, 1  ;;  %v1481_v1 = vadd.f32 %v1480_v61, %v1479_v57 }
 0xc3e   : > { %v1485_v2 = vmul.f32 0.125, %v1469_v63  ;;  %v1476_v3 = vadd.f32 %v1475_v0, %v1474_v60  ;;  %v1482_v4 = vrot.slane %v1481_v1, 1  ;;  %v1488_v5 = vmul.f32 %v1484_v62, %v1484_v62 }
 0xc40   : > { %v1486_v6 = vmul.f32 0.125, %v1476_v3  ;;  %v1483_v12 = vadd.f32 %v1482_v4, %v1481_v1  ;;  %1496 = vrot.lane.b32.xlu0 %v1488_v5, %s3713_s25  ;;  %v1489_v7 = vmul.f32 %v1485_v2, %v1485_v2 }
 0xc42   : > { %v1487_v33 = vmul.f32 0.125, %v1483_v12  ;;  %1498 = vrot.lane.b32.xlu1 %v1489_v7, %s3713_s25  ;;  %v1490_v8 = vmul.f32 %v1486_v6, %v1486_v6 }
 0xc44   : > { %1500 = vrot.lane.b32.xlu0 %v1490_v8, %s3713_s25  ;;  %v1491_v20 = vmul.f32 %v1487_v33, %v1487_v33 }
 0xc46   : > { %1502 = vrot.lane.b32.xlu1 %v1491_v20, %s3713_s25 }
 0xcb2   : > { %v1497_v21 = vpop.permute.xlu0 %1496 }
 0xcb3   : > { %v1508_v9 = vsub.f32 %v1484_v62, %v1497_v21 }
 0xcb4   : > { %v1499_v22 = vpop.permute.xlu1 %1498 }
 0xcb5   : > { %v1512_v24 = vmax.f32 %v1508_v9, 0.0  ;;  %v1509_v13 = vsub.f32 %v1485_v2, %v1499_v22 }
 0xcb6   : > { %v1501_v26 = vpop.permute.xlu0 %1500 }
 0xcb7   : > { %v1516_v29 = vadd.f32 1e-05, %v1512_v24  ;;  %v1513_v15 = vmax.f32 %v1509_v13, 0.0  ;;  %v1510_v16 = vsub.f32 %v1486_v6, %v1501_v26 }
 0xcb8   : > { %v1503_v19 = vpop.permute.xlu1 %1502 }
 0xcb9   : > { %3549 = vrsqrt.f32 %v1516_v29  ;;  %v1517_v28 = vadd.f32 1e-05, %v1513_v15  ;;  %v1514_v25 = vmax.f32 %v1510_v16, 0.0  ;;  %v1511_v31 = vsub.f32 %v1487_v33, %v1503_v19 }
 0xcbb   : > { %3551 = vrsqrt.f32 %v1517_v28  ;;  %v1518_v27 = vadd.f32 1e-05, %v1514_v25  ;;  %v1515_v30 = vmax.f32 %v1511_v31, 0.0 }
 0xcbd   : > { %3553 = vrsqrt.f32 %v1518_v27  ;;  %v1519_v32 = vadd.f32 1e-05, %v1515_v30 }
 0xcbf   : > { %3555 = vrsqrt.f32 %v1519_v32 }
 0xcc3   : > { %v3550_v34 = vpop.eup %3549 }
 0xcc4   : > { %1528 = vrot.lane.b32.xlu0 %v3550_v34, %s3714_s26 }
 0xcc5   : > { %v3552_v35 = vpop.eup %3551 }
 0xcc6   : > { %1530 = vrot.lane.b32.xlu1 %v3552_v35, %s3714_s26 }
 0xcc7   : > { %v3554_v36 = vpop.eup %3553 }
 0xcc8   : > { %1532 = vrot.lane.b32.xlu0 %v3554_v36, %s3714_s26 }
 0xcc9   : > { %v3556_v37 = vpop.eup %3555 }
 0xcca   : > { %1534 = vrot.lane.b32.xlu1 %v3556_v37, %s3714_s26 }
 0xd36   : > { %v1529_v41 = vpop.permute.xlu0 %1528 }
 0xd37   : > { %v1540_v42 = vmul.f32 %v3246_v40, %v1529_v41 }
 0xd38   : > { %v1531_v43 = vpop.permute.xlu1 %1530 }
 0xd39   : > { %v1544_v44 = vmul.f32 %v1540_v42, %v1484_v62  ;;  %v1541_v45 = vmul.f32 %v3246_v40, %v1531_v43  ;;  %v1567_v48 = vrot.slane %v1540_v42, %v3815_v11 }
 0xd3a   : > { %v1533_v46 = vpop.permute.xlu0 %1532 }
 0xd3b   : > { %v1552_v47 = vrot.slane %v1544_v44, 7  ;;  %v1545_v50 = vmul.f32 %v1541_v45, %v1485_v2  ;;  %v1571_v51 = vrot.slane %v1541_v45, %v3815_v11  ;;  %v1542_v52 = vmul.f32 %v3246_v40, %v1533_v46 }
 0xd3c   : > { %v1535_v53 = vpop.permute.xlu1 %1534  ;;  %v1580_v58 = vmul.f32 %v1567_v48, %v4062_v14 }
 0xd3d   : > { %v1560_v54 = vsub.f32 %v3246_v40, %v1552_v47  ;;  %v1553_v55 = vrot.slane %v1545_v50, 7  ;;  %v1543_v56 = vmul.f32 %v3246_v40, %v1535_v53  ;;  %v1546_v57 = vmul.f32 %v1542_v52, %v1486_v6 }
 0xd3e   : > { %v1581_v62 = vmul.f32 %v1571_v51, %v4068_v18  ;;  %v1575_v0 = vrot.slane %v1542_v52, %v3815_v11 }
 0xd3f   : > { %v1587_v59 = vrot.slane %v1560_v54, %v3872_v49  ;;  %v1561_v60 = vsub.f32 %v3246_v40, %v1553_v55  ;;  %v1547_v61 = vmul.f32 %v1543_v56, %v1487_v33  ;;  %v1554_v63 = vrot.slane %v1546_v57, 7 }
 0xd40   : > { %v1579_v4 = vrot.slane %v1543_v56, %v3815_v11  ;;  %v1582_v14 = vmul.f32 %v4060_v23, %v1575_v0 }
 0xd41   : > { %v1600_v1 = vadd.f32 %v1587_v59, %v1580_v58  ;;  %v1591_v2 = vrot.slane %v1561_v60, %v3872_v49  ;;  %v1555_v3 = vrot.slane %v1547_v61, 7  ;;  %v1562_v5 = vsub.f32 %v3246_v40, %v1554_v63 }
 0xd42   : > { %v1583_v18 = vmul.f32 %v4066_v17, %v1579_v4 }
 0xd43   : > { %v1601_v12 = vadd.f32 %v1591_v2, %v1581_v62  ;;  %v1563_v6 = vsub.f32 %v3246_v40, %v1555_v3  ;;  %3557 = vtanh.f32 %v1600_v1  ;;  %v1595_v7 = vrot.slane %v1562_v5, %v3872_v49 }
 0xd45   : > { %3559 = vtanh.f32 %v1601_v12  ;;  %v1599_v33 = vrot.slane %v1563_v6, %v3872_v49  ;;  %v1602_v8 = vadd.f32 %v1595_v7, %v1582_v14 }
 0xd47   : > { %v1603_v20 = vadd.f32 %v1599_v33, %v1583_v18  ;;  %3561 = vtanh.f32 %v1602_v8 }
 0xd49   : > { %3563 = vtanh.f32 %v1603_v20 }
 0xd4d   : > { %v3558_v21 = vpop.eup %3557 }
 0xd4f   : > { %v3560_v9 = vpop.eup %3559 }
 0xd50   : > { %v1610_v22 = vpack.c.bf16 %v3560_v9, %v3558_v21 }
 0xd51   : > { %v3562_v24 = vpop.eup %3561 }
 0xd52   : > { %3385 = vmatprep.mubr.msk.bf16.mxu0 %vm366_vm1, %v1610_v22 }
 0xd53   : > { %v3564_v13 = vpop.eup %3563 }
 0xd54   : > { %v1611_v26 = vpack.c.bf16 %v3564_v13, %v3562_v24 }
 0xd56   : > { %3386 = vmatmul.mubr.msk.bf16.vlgmr.msra.gmra.mrb[12].mxu0 %vm366_vm1, %v1611_v26 }
 0xe29   : > { %v4117_v23 = vpop.f32.mrb[12].mxu0 }
 0xe2a   : > { %v4119_v29 = vpop.f32.mrb[13].mxu0  ;;  %v1686_v28 = vmul.f32 %v4117_v23, %v4117_v23 }
 0xe2b   : > { %v1684_v17 = vmul.f32 %v4119_v29, %v4119_v29  ;;  %v4123_v15 = vpop.f32.mrb[14].mxu0 }
 0xe2c   : > { %v4125_v16 = vpop.f32.mrb[15].mxu0  ;;  %v1687_v25 = vmul.f32 %v4123_v15, %v4123_v15 }
 0xe2d   : > { %v1685_v19 = vmul.f32 %v4125_v16, %v4125_v16  ;;  %1692 = vrot.lane.b32.xlu0 %v1684_v17, %s3713_s25 }
 0xe2f   : > { %1694 = vrot.lane.b32.xlu1 %v1685_v19, %s3713_s25 }
 0xe31   : > { %1696 = vrot.lane.b32.xlu0 %v1686_v28, %s3713_s25 }
 0xe33   : > { %1698 = vrot.lane.b32.xlu1 %v1687_v25, %s3713_s25 }
 0xe9f   : > { %v1693_v31 = vpop.permute.xlu0 %1692 }
 0xea0   : > { %v1704_v27 = vsel %vm366_vm1, %v4119_v29, %v1693_v31 }
 0xea1   : > { %v1708_v30 = vsel %vm446_vm2, %v1704_v27, 0.0  ;;  %v1695_v32 = vpop.permute.xlu1 %1694 }
 0xea2   : > { %v1709_v34 = vrot.slane %v1708_v30, 4  ;;  %v1705_v35 = vsel %vm366_vm1, %v4125_v16, %v1695_v32 }
 0xea3   : > { %v1715_v36 = vsel %vm446_vm2, %v1705_v35, 0.0  ;;  %v1697_v37 = vpop.permute.xlu0 %1696 }
 0xea4   : > { %v1710_v38 = vadd.f32 %v1709_v34, %v1708_v30  ;;  %v1716_v39 = vrot.slane %v1715_v36, 4  ;;  %v1706_v40 = vsel %vm366_vm1, %v4117_v23, %v1697_v37  ;;  %v3467_v37 = vld [vmem:[#allocation2 + $0x60] sm:$0xff]  }
 0xea5   : > { %v1722_v41 = vsel %vm446_vm2, %v1706_v40, 0.0  ;;  %v1699_v42 = vpop.permute.xlu1 %1698  ;;  %3389 = vmatprep.subr.bf16.mxu1 %v3467_v37 }
 0xea6   : > { %v1711_v43 = vrot.slane %v1710_v38, 2  ;;  %v1717_v44 = vadd.f32 %v1716_v39, %v1715_v36  ;;  %v1723_v45 = vrot.slane %v1722_v41, 4  ;;  %v1707_v46 = vsel %vm366_vm1, %v4123_v15, %v1699_v42  ;;  %3390 = vmatpush3.bf16.msra.mxu1 %v3467_v37  ;;  %v3251_v39 = vld [vmem:[%s4471_s3 + $0xa] sm:$0x3] }
 0xea7   : > { %v1729_v47 = vsel %vm446_vm2, %v1707_v46, 0.0 }
 0xea8   : > { %v1712_v48 = vadd.f32 %v1711_v43, %v1710_v38  ;;  %v1718_v50 = vrot.slane %v1717_v44, 2  ;;  %v1724_v51 = vadd.f32 %v1723_v45, %v1722_v41  ;;  %v1730_v52 = vrot.slane %v1729_v47, 4  ;;  %v3468_v38 = vld [vmem:[#allocation2 + $0x68] sm:$0xff]  }
 0xea9   : > { %3391 = vmatprep.subr.bf16.mxu1 %v3468_v38 }
 0xeaa   : > { %v1713_v53 = vrot.slane %v1712_v48, 1  ;;  %v1719_v54 = vadd.f32 %v1718_v50, %v1717_v44  ;;  %v1725_v55 = vrot.slane %v1724_v51, 2  ;;  %v1731_v56 = vadd.f32 %v1730_v52, %v1729_v47  ;;  %3392 = vmatpush3.bf16.msra.mxu1 %v3468_v38 }
 0xeac   : > { %v1714_v57 = vadd.f32 %v1713_v53, %v1712_v48  ;;  %v1720_v58 = vrot.slane %v1719_v54, 1  ;;  %v1726_v59 = vadd.f32 %v1725_v55, %v1724_v51  ;;  %v1732_v60 = vrot.slane %v1731_v56, 2 }
 0xeae   : > { %v1736_v61 = vmul.f32 0.125, %v1714_v57  ;;  %v1721_v62 = vadd.f32 %v1720_v58, %v1719_v54  ;;  %v1727_v63 = vrot.slane %v1726_v59, 1  ;;  %v1733_v0 = vadd.f32 %v1732_v60, %v1731_v56 }
 0xeb0   : > { %v1737_v1 = vmul.f32 0.125, %v1721_v62  ;;  %v1728_v2 = vadd.f32 %v1727_v63, %v1726_v59  ;;  %v1734_v3 = vrot.slane %v1733_v0, 1  ;;  %v1740_v4 = vmul.f32 %v1736_v61, %v1736_v61 }
 0xeb2   : > { %v1738_v5 = vmul.f32 0.125, %v1728_v2  ;;  %v1735_v12 = vadd.f32 %v1734_v3, %v1733_v0  ;;  %1748 = vrot.lane.b32.xlu0 %v1740_v4, %s3713_s25  ;;  %v1741_v6 = vmul.f32 %v1737_v1, %v1737_v1 }
 0xeb4   : > { %v1739_v14 = vmul.f32 0.125, %v1735_v12  ;;  %1750 = vrot.lane.b32.xlu1 %v1741_v6, %s3713_s25  ;;  %v1742_v7 = vmul.f32 %v1738_v5, %v1738_v5 }
 0xeb6   : > { %1752 = vrot.lane.b32.xlu0 %v1742_v7, %s3713_s25  ;;  %v1743_v18 = vmul.f32 %v1739_v14, %v1739_v14 }
 0xeb8   : > { %1754 = vrot.lane.b32.xlu1 %v1743_v18, %s3713_s25 }
 0xf24   : > { %v1749_v33 = vpop.permute.xlu0 %1748 }
 0xf25   : > { %v1760_v8 = vsub.f32 %v1736_v61, %v1749_v33 }
 0xf26   : > { %v1751_v20 = vpop.permute.xlu1 %1750 }
 0xf27   : > { %v1764_v21 = vmax.f32 %v1760_v8, 0.0  ;;  %v1761_v9 = vsub.f32 %v1737_v1, %v1751_v20 }
 0xf28   : > { %v1753_v22 = vpop.permute.xlu0 %1752 }
 0xf29   : > { %v1768_v24 = vadd.f32 1e-05, %v1764_v21  ;;  %v1765_v13 = vmax.f32 %v1761_v9, 0.0  ;;  %v1762_v26 = vsub.f32 %v1738_v5, %v1753_v22 }
 0xf2a   : > { %v1755_v17 = vpop.permute.xlu1 %1754 }
 0xf2b   : > { %3565 = vrsqrt.f32 %v1768_v24  ;;  %v1769_v19 = vadd.f32 1e-05, %v1765_v13  ;;  %v1766_v28 = vmax.f32 %v1762_v26, 0.0  ;;  %v1763_v25 = vsub.f32 %v1739_v14, %v1755_v17 }
 0xf2d   : > { %3567 = vrsqrt.f32 %v1769_v19  ;;  %v1770_v31 = vadd.f32 1e-05, %v1766_v28  ;;  %v1767_v27 = vmax.f32 %v1763_v25, 0.0 }
 0xf2f   : > { %3569 = vrsqrt.f32 %v1770_v31  ;;  %v1771_v30 = vadd.f32 1e-05, %v1767_v27 }
 0xf31   : > { %3571 = vrsqrt.f32 %v1771_v30 }
 0xf35   : > { %v3566_v32 = vpop.eup %3565 }
 0xf36   : > { %1780 = vrot.lane.b32.xlu0 %v3566_v32, %s3714_s26 }
 0xf37   : > { %v3568_v34 = vpop.eup %3567 }
 0xf38   : > { %1782 = vrot.lane.b32.xlu1 %v3568_v34, %s3714_s26 }
 0xf39   : > { %v3570_v35 = vpop.eup %3569 }
 0xf3a   : > { %1784 = vrot.lane.b32.xlu0 %v3570_v35, %s3714_s26 }
 0xf3b   : > { %v3572_v36 = vpop.eup %3571 }
 0xf3c   : > { %1786 = vrot.lane.b32.xlu1 %v3572_v36, %s3714_s26 }
 0xfa8   : > { %v1781_v40 = vpop.permute.xlu0 %1780 }
 0xfa9   : > { %v1792_v41 = vmul.f32 %v3251_v39, %v1781_v40 }
 0xfaa   : > { %v1783_v42 = vpop.permute.xlu1 %1782 }
 0xfab   : > { %v1796_v43 = vmul.f32 %v1792_v41, %v1736_v61  ;;  %v1793_v44 = vmul.f32 %v3251_v39, %v1783_v42  ;;  %v1819_v47 = vrot.slane %v1792_v41, %v3815_v11 }
 0xfac   : > { %v1785_v45 = vpop.permute.xlu0 %1784 }
 0xfad   : > { %v1804_v46 = vrot.slane %v1796_v43, 7  ;;  %v1797_v48 = vmul.f32 %v1793_v44, %v1737_v1  ;;  %v1823_v50 = vrot.slane %v1793_v44, %v3815_v11  ;;  %v1794_v51 = vmul.f32 %v3251_v39, %v1785_v45 }
 0xfae   : > { %v1787_v52 = vpop.permute.xlu1 %1786  ;;  %v1832_v57 = vmul.f32 %v1819_v47, %v4119_v29 }
 0xfaf   : > { %v1812_v53 = vsub.f32 %v3251_v39, %v1804_v46  ;;  %v1805_v54 = vrot.slane %v1797_v48, 7  ;;  %v1795_v55 = vmul.f32 %v3251_v39, %v1787_v52  ;;  %v1798_v56 = vmul.f32 %v1794_v51, %v1738_v5 }
 0xfb0   : > { %v1833_v61 = vmul.f32 %v1823_v50, %v4125_v16  ;;  %v1827_v63 = vrot.slane %v1794_v51, %v3815_v11 }
 0xfb1   : > { %v1839_v58 = vrot.slane %v1812_v53, %v3872_v49  ;;  %v1813_v59 = vsub.f32 %v3251_v39, %v1805_v54  ;;  %v1799_v60 = vmul.f32 %v1795_v55, %v1739_v14  ;;  %v1806_v62 = vrot.slane %v1798_v56, 7 }
 0xfb2   : > { %v1831_v3 = vrot.slane %v1795_v55, %v3815_v11  ;;  %v1834_v29 = vmul.f32 %v4117_v23, %v1827_v63 }
 0xfb3   : > { %v1852_v0 = vadd.f32 %v1839_v58, %v1832_v57  ;;  %v1843_v1 = vrot.slane %v1813_v59, %v3872_v49  ;;  %v1807_v2 = vrot.slane %v1799_v60, 7  ;;  %v1814_v4 = vsub.f32 %v3251_v39, %v1806_v62 }
 0xfb4   : > { %v1835_v16 = vmul.f32 %v4123_v15, %v1831_v3 }
 0xfb5   : > { %v1853_v12 = vadd.f32 %v1843_v1, %v1833_v61  ;;  %v1815_v5 = vsub.f32 %v3251_v39, %v1807_v2  ;;  %3573 = vtanh.f32 %v1852_v0  ;;  %v1847_v6 = vrot.slane %v1814_v4, %v3872_v49 }
 0xfb7   : > { %3575 = vtanh.f32 %v1853_v12  ;;  %v1851_v14 = vrot.slane %v1815_v5, %v3872_v49  ;;  %v1854_v7 = vadd.f32 %v1847_v6, %v1834_v29 }
 0xfb9   : > { %v1855_v18 = vadd.f32 %v1851_v14, %v1835_v16  ;;  %3577 = vtanh.f32 %v1854_v7 }
 0xfbb   : > { %3579 = vtanh.f32 %v1855_v18 }
 0xfbf   : > { %v3574_v33 = vpop.eup %3573 }
 0xfc1   : > { %v3576_v8 = vpop.eup %3575 }
 0xfc2   : > { %v1862_v20 = vpack.c.bf16 %v3576_v8, %v3574_v33 }
 0xfc3   : > { %v3578_v21 = vpop.eup %3577 }
 0xfc4   : > { %3393 = vmatprep.mubr.msk.bf16.mxu1 %vm366_vm1, %v1862_v20 }
 0xfc5   : > { %v3580_v9 = vpop.eup %3579 }
 0xfc6   : > { %v1863_v22 = vpack.c.bf16 %v3580_v9, %v3578_v21 }
 0xfc8   : > { %3394 = vmatmul.mubr.msk.bf16.vlgmr.msra.gmra.mrb[12].mxu1 %vm366_vm1, %v1863_v22 }
0x109b   : > { %v4174_v23 = vpop.f32.mrb[12].mxu1 }
0x109c   : > { %v4176_v24 = vpop.f32.mrb[13].mxu1  ;;  %v1938_v19 = vmul.f32 %v4174_v23, %v4174_v23 }
0x109d   : > { %v1936_v15 = vmul.f32 %v4176_v24, %v4176_v24  ;;  %v4180_v13 = vpop.f32.mrb[14].mxu1 }
0x109e   : > { %v4182_v26 = vpop.f32.mrb[15].mxu1  ;;  %v1939_v28 = vmul.f32 %v4180_v13, %v4180_v13 }
0x109f   : > { %v1937_v17 = vmul.f32 %v4182_v26, %v4182_v26  ;;  %1944 = vrot.lane.b32.xlu0 %v1936_v15, %s3713_s25 }
0x10a1   : > { %1946 = vrot.lane.b32.xlu1 %v1937_v17, %s3713_s25 }
0x10a3   : > { %1948 = vrot.lane.b32.xlu0 %v1938_v19, %s3713_s25 }
0x10a5   : > { %1950 = vrot.lane.b32.xlu1 %v1939_v28, %s3713_s25 }
0x1111   : > { %v1945_v25 = vpop.permute.xlu0 %1944 }
0x1112   : > { %v1956_v31 = vsel %vm366_vm1, %v4176_v24, %v1945_v25 }
0x1113   : > { %v1960_v27 = vsel %vm446_vm2, %v1956_v31, 0.0  ;;  %v1947_v30 = vpop.permute.xlu1 %1946 }
0x1114   : > { %v1961_v32 = vrot.slane %v1960_v27, 4  ;;  %v1957_v34 = vsel %vm366_vm1, %v4182_v26, %v1947_v30 }
0x1115   : > { %v1967_v35 = vsel %vm446_vm2, %v1957_v34, 0.0  ;;  %v1949_v36 = vpop.permute.xlu0 %1948 }
0x1116   : > { %v1962_v37 = vadd.f32 %v1961_v32, %v1960_v27  ;;  %v1968_v38 = vrot.slane %v1967_v35, 4  ;;  %v1958_v39 = vsel %vm366_vm1, %v4174_v23, %v1949_v36  ;;  %v3469_v36 = vld [vmem:[#allocation2 + $0x70] sm:$0xff]  }
0x1117   : > { %v1974_v40 = vsel %vm446_vm2, %v1958_v39, 0.0  ;;  %v1951_v41 = vpop.permute.xlu1 %1950  ;;  %3397 = vmatprep.subr.bf16.mxu0 %v3469_v36 }
0x1118   : > { %v1963_v42 = vrot.slane %v1962_v37, 2  ;;  %v1969_v43 = vadd.f32 %v1968_v38, %v1967_v35  ;;  %v1975_v44 = vrot.slane %v1974_v40, 4  ;;  %v1959_v45 = vsel %vm366_vm1, %v4180_v13, %v1951_v41  ;;  %3398 = vmatpush3.bf16.msra.mxu0 %v3469_v36  ;;  %v3256_v38 = vld [vmem:[%s4471_s3 + $0xc] sm:$0x3] }
0x1119   : > { %v1981_v46 = vsel %vm446_vm2, %v1959_v45, 0.0 }
0x111a   : > { %v1964_v47 = vadd.f32 %v1963_v42, %v1962_v37  ;;  %v1970_v48 = vrot.slane %v1969_v43, 2  ;;  %v1976_v50 = vadd.f32 %v1975_v44, %v1974_v40  ;;  %v1982_v51 = vrot.slane %v1981_v46, 4  ;;  %v3470_v37 = vld [vmem:[#allocation2 + $0x78] sm:$0xff]  }
0x111b   : > { %3399 = vmatprep.subr.bf16.mxu0 %v3470_v37 }
0x111c   : > { %v1965_v52 = vrot.slane %v1964_v47, 1  ;;  %v1971_v53 = vadd.f32 %v1970_v48, %v1969_v43  ;;  %v1977_v54 = vrot.slane %v1976_v50, 2  ;;  %v1983_v55 = vadd.f32 %v1982_v51, %v1981_v46  ;;  %3400 = vmatpush3.bf16.msra.mxu0 %v3470_v37 }
0x111e   : > { %v1966_v56 = vadd.f32 %v1965_v52, %v1964_v47  ;;  %v1972_v57 = vrot.slane %v1971_v53, 1  ;;  %v1978_v58 = vadd.f32 %v1977_v54, %v1976_v50  ;;  %v1984_v59 = vrot.slane %v1983_v55, 2 }
0x1120   : > { %v1988_v60 = vmul.f32 0.125, %v1966_v56  ;;  %v1973_v61 = vadd.f32 %v1972_v57, %v1971_v53  ;;  %v1979_v62 = vrot.slane %v1978_v58, 1  ;;  %v1985_v63 = vadd.f32 %v1984_v59, %v1983_v55 }
0x1122   : > { %v1989_v0 = vmul.f32 0.125, %v1973_v61  ;;  %v1980_v1 = vadd.f32 %v1979_v62, %v1978_v58  ;;  %v1986_v2 = vrot.slane %v1985_v63, 1  ;;  %v1992_v3 = vmul.f32 %v1988_v60, %v1988_v60 }
0x1124   : > { %v1990_v4 = vmul.f32 0.125, %v1980_v1  ;;  %v1987_v12 = vadd.f32 %v1986_v2, %v1985_v63  ;;  %2000 = vrot.lane.b32.xlu0 %v1992_v3, %s3713_s25  ;;  %v1993_v5 = vmul.f32 %v1989_v0, %v1989_v0 }
0x1126   : > { %v1991_v29 = vmul.f32 0.125, %v1987_v12  ;;  %2002 = vrot.lane.b32.xlu1 %v1993_v5, %s3713_s25  ;;  %v1994_v6 = vmul.f32 %v1990_v4, %v1990_v4 }
0x1128   : > { %2004 = vrot.lane.b32.xlu0 %v1994_v6, %s3713_s25  ;;  %v1995_v16 = vmul.f32 %v1991_v29, %v1991_v29 }
0x112a   : > { %2006 = vrot.lane.b32.xlu1 %v1995_v16, %s3713_s25 }
0x1196   : > { %v2001_v14 = vpop.permute.xlu0 %2000 }
0x1197   : > { %v2012_v7 = vsub.f32 %v1988_v60, %v2001_v14 }
0x1198   : > { %v2003_v18 = vpop.permute.xlu1 %2002 }
0x1199   : > { %v2016_v33 = vmax.f32 %v2012_v7, 0.0  ;;  %v2013_v8 = vsub.f32 %v1989_v0, %v2003_v18 }
0x119a   : > { %v2005_v20 = vpop.permute.xlu0 %2004 }
0x119b   : > { %v2020_v21 = vadd.f32 1e-05, %v2016_v33  ;;  %v2017_v9 = vmax.f32 %v2013_v8, 0.0  ;;  %v2014_v22 = vsub.f32 %v1990_v4, %v2005_v20 }
0x119c   : > { %v2007_v15 = vpop.permute.xlu1 %2006 }
0x119d   : > { %3581 = vrsqrt.f32 %v2020_v21  ;;  %v2021_v17 = vadd.f32 1e-05, %v2017_v9  ;;  %v2018_v19 = vmax.f32 %v2014_v22, 0.0  ;;  %v2015_v28 = vsub.f32 %v1991_v29, %v2007_v15 }
0x119f   : > { %3583 = vrsqrt.f32 %v2021_v17  ;;  %v2022_v25 = vadd.f32 1e-05, %v2018_v19  ;;  %v2019_v31 = vmax.f32 %v2015_v28, 0.0 }
0x11a1   : > { %3585 = vrsqrt.f32 %v2022_v25  ;;  %v2023_v27 = vadd.f32 1e-05, %v2019_v31 }
0x11a3   : > { %3587 = vrsqrt.f32 %v2023_v27 }
0x11a7   : > { %v3582_v30 = vpop.eup %3581 }
0x11a8   : > { %2032 = vrot.lane.b32.xlu0 %v3582_v30, %s3714_s26 }
0x11a9   : > { %v3584_v32 = vpop.eup %3583 }
0x11aa   : > { %2034 = vrot.lane.b32.xlu1 %v3584_v32, %s3714_s26 }
0x11ab   : > { %v3586_v34 = vpop.eup %3585 }
0x11ac   : > { %2036 = vrot.lane.b32.xlu0 %v3586_v34, %s3714_s26 }
0x11ad   : > { %v3588_v35 = vpop.eup %3587 }
0x11ae   : > { %2038 = vrot.lane.b32.xlu1 %v3588_v35, %s3714_s26 }
0x121a   : > { %v2033_v39 = vpop.permute.xlu0 %2032 }
0x121b   : > { %v2044_v40 = vmul.f32 %v3256_v38, %v2033_v39 }
0x121c   : > { %v2035_v41 = vpop.permute.xlu1 %2034 }
0x121d   : > { %v2048_v42 = vmul.f32 %v2044_v40, %v1988_v60  ;;  %v2045_v43 = vmul.f32 %v3256_v38, %v2035_v41  ;;  %v2071_v46 = vrot.slane %v2044_v40, %v3815_v11 }
0x121e   : > { %v2037_v44 = vpop.permute.xlu0 %2036 }
0x121f   : > { %v2056_v45 = vrot.slane %v2048_v42, 7  ;;  %v2049_v47 = vmul.f32 %v2045_v43, %v1989_v0  ;;  %v2075_v48 = vrot.slane %v2045_v43, %v3815_v11  ;;  %v2046_v50 = vmul.f32 %v3256_v38, %v2037_v44 }
0x1220   : > { %v2039_v51 = vpop.permute.xlu1 %2038  ;;  %v2084_v56 = vmul.f32 %v2071_v46, %v4176_v24 }
0x1221   : > { %v2064_v52 = vsub.f32 %v3256_v38, %v2056_v45  ;;  %v2057_v53 = vrot.slane %v2049_v47, 7  ;;  %v2047_v54 = vmul.f32 %v3256_v38, %v2039_v51  ;;  %v2050_v55 = vmul.f32 %v2046_v50, %v1990_v4 }
0x1222   : > { %v2085_v60 = vmul.f32 %v2075_v48, %v4182_v26  ;;  %v2079_v62 = vrot.slane %v2046_v50, %v3815_v11 }
0x1223   : > { %v2091_v57 = vrot.slane %v2064_v52, %v3872_v49  ;;  %v2065_v58 = vsub.f32 %v3256_v38, %v2057_v53  ;;  %v2051_v59 = vmul.f32 %v2047_v54, %v1991_v29  ;;  %v2058_v61 = vrot.slane %v2050_v55, 7 }
0x1224   : > { %v2083_v2 = vrot.slane %v2047_v54, %v3815_v11  ;;  %v2086_v24 = vmul.f32 %v4174_v23, %v2079_v62 }
0x1225   : > { %v2104_v63 = vadd.f32 %v2091_v57, %v2084_v56  ;;  %v2095_v0 = vrot.slane %v2065_v58, %v3872_v49  ;;  %v2059_v1 = vrot.slane %v2051_v59, 7  ;;  %v2066_v3 = vsub.f32 %v3256_v38, %v2058_v61 }
0x1226   : > { %v2087_v26 = vmul.f32 %v4180_v13, %v2083_v2 }
0x1227   : > { %v2105_v12 = vadd.f32 %v2095_v0, %v2085_v60  ;;  %v2067_v4 = vsub.f32 %v3256_v38, %v2059_v1  ;;  %3589 = vtanh.f32 %v2104_v63  ;;  %v2099_v5 = vrot.slane %v2066_v3, %v3872_v49 }
0x1229   : > { %3591 = vtanh.f32 %v2105_v12  ;;  %v2103_v29 = vrot.slane %v2067_v4, %v3872_v49  ;;  %v2106_v6 = vadd.f32 %v2099_v5, %v2086_v24 }
0x122b   : > { %v2107_v16 = vadd.f32 %v2103_v29, %v2087_v26  ;;  %3593 = vtanh.f32 %v2106_v6 }
0x122d   : > { %3595 = vtanh.f32 %v2107_v16 }
0x1231   : > { %v3590_v14 = vpop.eup %3589 }
0x1233   : > { %v3592_v7 = vpop.eup %3591 }
0x1234   : > { %v2114_v18 = vpack.c.bf16 %v3592_v7, %v3590_v14 }
0x1235   : > { %v3594_v33 = vpop.eup %3593 }
0x1236   : > { %3401 = vmatprep.mubr.msk.bf16.mxu0 %vm366_vm1, %v2114_v18 }
0x1237   : > { %v3596_v8 = vpop.eup %3595 }
0x1238   : > { %v2115_v20 = vpack.c.bf16 %v3596_v8, %v3594_v33 }
0x123a   : > { %3402 = vmatmul.mubr.msk.bf16.vlgmr.msra.gmra.mrb[16].mxu0 %vm366_vm1, %v2115_v20 }
0x130d   : > { %v4231_v23 = vpop.f32.mrb[16].mxu0 }
0x130e   : > { %v4233_v21 = vpop.f32.mrb[17].mxu0  ;;  %v2190_v17 = vmul.f32 %v4231_v23, %v4231_v23 }
0x130f   : > { %v2188_v13 = vmul.f32 %v4233_v21, %v4233_v21  ;;  %v4237_v9 = vpop.f32.mrb[18].mxu0 }
0x1310   : > { %v4239_v22 = vpop.f32.mrb[19].mxu0  ;;  %v2191_v19 = vmul.f32 %v4237_v9, %v4237_v9 }
0x1311   : > { %v2189_v15 = vmul.f32 %v4239_v22, %v4239_v22  ;;  %2196 = vrot.lane.b32.xlu0 %v2188_v13, %s3713_s25 }
0x1313   : > { %2198 = vrot.lane.b32.xlu1 %v2189_v15, %s3713_s25 }
0x1315   : > { %2200 = vrot.lane.b32.xlu0 %v2190_v17, %s3713_s25 }
0x1317   : > { %2202 = vrot.lane.b32.xlu1 %v2191_v19, %s3713_s25 }
0x1383   : > { %v2197_v28 = vpop.permute.xlu0 %2196 }
0x1384   : > { %v2208_v25 = vsel %vm366_vm1, %v4233_v21, %v2197_v28 }
0x1385   : > { %v2212_v31 = vsel %vm446_vm2, %v2208_v25, 0.0  ;;  %v2199_v27 = vpop.permute.xlu1 %2198 }
0x1386   : > { %v2213_v30 = vrot.slane %v2212_v31, 4  ;;  %v2209_v32 = vsel %vm366_vm1, %v4239_v22, %v2199_v27 }
0x1387   : > { %v2219_v34 = vsel %vm446_vm2, %v2209_v32, 0.0  ;;  %v2201_v35 = vpop.permute.xlu0 %2200 }
0x1388   : > { %v2214_v36 = vadd.f32 %v2213_v30, %v2212_v31  ;;  %v2220_v37 = vrot.slane %v2219_v34, 4  ;;  %v2210_v38 = vsel %vm366_vm1, %v4231_v23, %v2201_v35  ;;  %v3471_v35 = vld [vmem:[#allocation2 + $0x80] sm:$0xff]  }
0x1389   : > { %v2226_v39 = vsel %vm446_vm2, %v2210_v38, 0.0  ;;  %v2203_v40 = vpop.permute.xlu1 %2202  ;;  %3405 = vmatprep.subr.bf16.mxu1 %v3471_v35 }
0x138a   : > { %v2215_v41 = vrot.slane %v2214_v36, 2  ;;  %v2221_v42 = vadd.f32 %v2220_v37, %v2219_v34  ;;  %v2227_v43 = vrot.slane %v2226_v39, 4  ;;  %v2211_v44 = vsel %vm366_vm1, %v4237_v9, %v2203_v40  ;;  %3406 = vmatpush3.bf16.msra.mxu1 %v3471_v35  ;;  %v3261_v37 = vld [vmem:[%s4471_s3 + $0xe] sm:$0x3] }
0x138b   : > { %v2233_v45 = vsel %vm446_vm2, %v2211_v44, 0.0 }
0x138c   : > { %v2216_v46 = vadd.f32 %v2215_v41, %v2214_v36  ;;  %v2222_v47 = vrot.slane %v2221_v42, 2  ;;  %v2228_v48 = vadd.f32 %v2227_v43, %v2226_v39  ;;  %v2234_v50 = vrot.slane %v2233_v45, 4  ;;  %v3472_v36 = vld [vmem:[#allocation2 + $0x88] sm:$0xff]  }
0x138d   : > { %3407 = vmatprep.subr.bf16.mxu1 %v3472_v36 }
0x138e   : > { %v2217_v51 = vrot.slane %v2216_v46, 1  ;;  %v2223_v52 = vadd.f32 %v2222_v47, %v2221_v42  ;;  %v2229_v53 = vrot.slane %v2228_v48, 2  ;;  %v2235_v54 = vadd.f32 %v2234_v50, %v2233_v45  ;;  %3408 = vmatpush3.bf16.msra.mxu1 %v3472_v36 }
0x1390   : > { %v2218_v55 = vadd.f32 %v2217_v51, %v2216_v46  ;;  %v2224_v56 = vrot.slane %v2223_v52, 1  ;;  %v2230_v57 = vadd.f32 %v2229_v53, %v2228_v48  ;;  %v2236_v58 = vrot.slane %v2235_v54, 2 }
0x1392   : > { %v2240_v59 = vmul.f32 0.125, %v2218_v55  ;;  %v2225_v60 = vadd.f32 %v2224_v56, %v2223_v52  ;;  %v2231_v61 = vrot.slane %v2230_v57, 1  ;;  %v2237_v62 = vadd.f32 %v2236_v58, %v2235_v54 }
0x1394   : > { %v2241_v63 = vmul.f32 0.125, %v2225_v60  ;;  %v2232_v0 = vadd.f32 %v2231_v61, %v2230_v57  ;;  %v2238_v1 = vrot.slane %v2237_v62, 1  ;;  %v2244_v2 = vmul.f32 %v2240_v59, %v2240_v59 }
0x1396   : > { %v2242_v3 = vmul.f32 0.125, %v2232_v0  ;;  %v2239_v12 = vadd.f32 %v2238_v1, %v2237_v62  ;;  %2252 = vrot.lane.b32.xlu0 %v2244_v2, %s3713_s25  ;;  %v2245_v4 = vmul.f32 %v2241_v63, %v2241_v63 }
0x1398   : > { %v2243_v24 = vmul.f32 0.125, %v2239_v12  ;;  %2254 = vrot.lane.b32.xlu1 %v2245_v4, %s3713_s25  ;;  %v2246_v5 = vmul.f32 %v2242_v3, %v2242_v3 }
0x139a   : > { %2256 = vrot.lane.b32.xlu0 %v2246_v5, %s3713_s25  ;;  %v2247_v26 = vmul.f32 %v2243_v24, %v2243_v24 }
0x139c   : > { %2258 = vrot.lane.b32.xlu1 %v2247_v26, %s3713_s25 }
0x1408   : > { %v2253_v29 = vpop.permute.xlu0 %2252 }
0x1409   : > { %v2264_v6 = vsub.f32 %v2240_v59, %v2253_v29 }
0x140a   : > { %v2255_v16 = vpop.permute.xlu1 %2254 }
0x140b   : > { %v2268_v14 = vmax.f32 %v2264_v6, 0.0  ;;  %v2265_v7 = vsub.f32 %v2241_v63, %v2255_v16 }
0x140c   : > { %v2257_v18 = vpop.permute.xlu0 %2256 }
0x140d   : > { %v2272_v33 = vadd.f32 1e-05, %v2268_v14  ;;  %v2269_v8 = vmax.f32 %v2265_v7, 0.0  ;;  %v2266_v20 = vsub.f32 %v2242_v3, %v2257_v18 }
0x140e   : > { %v2259_v13 = vpop.permute.xlu1 %2258 }
0x140f   : > { %3597 = vrsqrt.f32 %v2272_v33  ;;  %v2273_v15 = vadd.f32 1e-05, %v2269_v8  ;;  %v2270_v17 = vmax.f32 %v2266_v20, 0.0  ;;  %v2267_v19 = vsub.f32 %v2243_v24, %v2259_v13 }
0x1411   : > { %3599 = vrsqrt.f32 %v2273_v15  ;;  %v2274_v28 = vadd.f32 1e-05, %v2270_v17  ;;  %v2271_v25 = vmax.f32 %v2267_v19, 0.0 }
0x1413   : > { %3601 = vrsqrt.f32 %v2274_v28  ;;  %v2275_v31 = vadd.f32 1e-05, %v2271_v25 }
0x1415   : > { %3603 = vrsqrt.f32 %v2275_v31 }
0x1419   : > { %v3598_v27 = vpop.eup %3597 }
0x141a   : > { %2284 = vrot.lane.b32.xlu0 %v3598_v27, %s3714_s26 }
0x141b   : > { %v3600_v30 = vpop.eup %3599 }
0x141c   : > { %2286 = vrot.lane.b32.xlu1 %v3600_v30, %s3714_s26 }
0x141d   : > { %v3602_v32 = vpop.eup %3601 }
0x141e   : > { %2288 = vrot.lane.b32.xlu0 %v3602_v32, %s3714_s26 }
0x141f   : > { %v3604_v34 = vpop.eup %3603 }
0x1420   : > { %2290 = vrot.lane.b32.xlu1 %v3604_v34, %s3714_s26 }
0x148c   : > { %v2285_v38 = vpop.permute.xlu0 %2284 }
0x148d   : > { %v2296_v39 = vmul.f32 %v3261_v37, %v2285_v38 }
0x148e   : > { %v2287_v40 = vpop.permute.xlu1 %2286 }
0x148f   : > { %v2300_v41 = vmul.f32 %v2296_v39, %v2240_v59  ;;  %v2297_v42 = vmul.f32 %v3261_v37, %v2287_v40  ;;  %v2323_v45 = vrot.slane %v2296_v39, %v3815_v11 }
0x1490   : > { %v2289_v43 = vpop.permute.xlu0 %2288 }
0x1491   : > { %v2308_v44 = vrot.slane %v2300_v41, 7  ;;  %v2301_v46 = vmul.f32 %v2297_v42, %v2241_v63  ;;  %v2327_v47 = vrot.slane %v2297_v42, %v3815_v11  ;;  %v2298_v48 = vmul.f32 %v3261_v37, %v2289_v43 }
0x1492   : > { %v2291_v50 = vpop.permute.xlu1 %2290  ;;  %v2336_v55 = vmul.f32 %v2323_v45, %v4233_v21 }
0x1493   : > { %v2316_v51 = vsub.f32 %v3261_v37, %v2308_v44  ;;  %v2309_v52 = vrot.slane %v2301_v46, 7  ;;  %v2299_v53 = vmul.f32 %v3261_v37, %v2291_v50  ;;  %v2302_v54 = vmul.f32 %v2298_v48, %v2242_v3 }
0x1494   : > { %v2337_v59 = vmul.f32 %v2327_v47, %v4239_v22  ;;  %v2331_v61 = vrot.slane %v2298_v48, %v3815_v11 }
0x1495   : > { %v2343_v56 = vrot.slane %v2316_v51, %v3872_v49  ;;  %v2317_v57 = vsub.f32 %v3261_v37, %v2309_v52  ;;  %v2303_v58 = vmul.f32 %v2299_v53, %v2243_v24  ;;  %v2310_v60 = vrot.slane %v2302_v54, 7 }
0x1496   : > { %v2335_v1 = vrot.slane %v2299_v53, %v3815_v11  ;;  %v2338_v21 = vmul.f32 %v4231_v23, %v2331_v61 }
0x1497   : > { %v2356_v62 = vadd.f32 %v2343_v56, %v2336_v55  ;;  %v2347_v63 = vrot.slane %v2317_v57, %v3872_v49  ;;  %v2311_v0 = vrot.slane %v2303_v58, 7  ;;  %v2318_v2 = vsub.f32 %v3261_v37, %v2310_v60 }
0x1498   : > { %v2339_v22 = vmul.f32 %v4237_v9, %v2335_v1 }
0x1499   : > { %v2357_v12 = vadd.f32 %v2347_v63, %v2337_v59  ;;  %v2319_v3 = vsub.f32 %v3261_v37, %v2311_v0  ;;  %3605 = vtanh.f32 %v2356_v62  ;;  %v2351_v4 = vrot.slane %v2318_v2, %v3872_v49 }
0x149b   : > { %3607 = vtanh.f32 %v2357_v12  ;;  %v2355_v24 = vrot.slane %v2319_v3, %v3872_v49  ;;  %v2358_v5 = vadd.f32 %v2351_v4, %v2338_v21 }
0x149d   : > { %v2359_v26 = vadd.f32 %v2355_v24, %v2339_v22  ;;  %3609 = vtanh.f32 %v2358_v5 }
0x149f   : > { %3611 = vtanh.f32 %v2359_v26 }
0x14a3   : > { %v3606_v29 = vpop.eup %3605 }
0x14a5   : > { %v3608_v6 = vpop.eup %3607 }
0x14a6   : > { %v2366_v16 = vpack.c.bf16 %v3608_v6, %v3606_v29 }
0x14a7   : > { %v3610_v14 = vpop.eup %3609 }
0x14a8   : > { %3409 = vmatprep.mubr.msk.bf16.mxu1 %vm366_vm1, %v2366_v16 }
0x14a9   : > { %v3612_v7 = vpop.eup %3611 }
0x14aa   : > { %v2367_v18 = vpack.c.bf16 %v3612_v7, %v3610_v14 }
0x14ac   : > { %3410 = vmatmul.mubr.msk.bf16.vlgmr.msra.gmra.mrb[16].mxu1 %vm366_vm1, %v2367_v18 }
0x157f   : > { %v4288_v23 = vpop.f32.mrb[16].mxu1 }
0x1580   : > { %v4290_v33 = vpop.f32.mrb[17].mxu1  ;;  %v2442_v15 = vmul.f32 %v4288_v23, %v4288_v23 }
0x1581   : > { %v2440_v9 = vmul.f32 %v4290_v33, %v4290_v33  ;;  %v4294_v8 = vpop.f32.mrb[18].mxu1 }
0x1582   : > { %v4296_v20 = vpop.f32.mrb[19].mxu1  ;;  %v2443_v17 = vmul.f32 %v4294_v8, %v4294_v8 }
0x1583   : > { %v2441_v13 = vmul.f32 %v4296_v20, %v4296_v20  ;;  %2448 = vrot.lane.b32.xlu0 %v2440_v9, %s3713_s25 }
0x1585   : > { %2450 = vrot.lane.b32.xlu1 %v2441_v13, %s3713_s25 }
0x1587   : > { %2452 = vrot.lane.b32.xlu0 %v2442_v15, %s3713_s25 }
0x1589   : > { %2454 = vrot.lane.b32.xlu1 %v2443_v17, %s3713_s25 }
0x15f5   : > { %v2449_v19 = vpop.permute.xlu0 %2448 }
0x15f6   : > { %v2460_v28 = vsel %vm366_vm1, %v4290_v33, %v2449_v19 }
0x15f7   : > { %v2464_v25 = vsel %vm446_vm2, %v2460_v28, 0.0  ;;  %v2451_v31 = vpop.permute.xlu1 %2450 }
0x15f8   : > { %v2465_v27 = vrot.slane %v2464_v25, 4  ;;  %v2461_v30 = vsel %vm366_vm1, %v4296_v20, %v2451_v31 }
0x15f9   : > { %v2471_v32 = vsel %vm446_vm2, %v2461_v30, 0.0  ;;  %v2453_v34 = vpop.permute.xlu0 %2452 }
0x15fa   : > { %v2466_v35 = vadd.f32 %v2465_v27, %v2464_v25  ;;  %v2472_v36 = vrot.slane %v2471_v32, 4  ;;  %v2462_v37 = vsel %vm366_vm1, %v4288_v23, %v2453_v34  ;;  %v3473_v34 = vld [vmem:[#allocation2 + $0x90] sm:$0xff]  }
0x15fb   : > { %v2478_v38 = vsel %vm446_vm2, %v2462_v37, 0.0  ;;  %v2455_v39 = vpop.permute.xlu1 %2454  ;;  %3413 = vmatprep.subr.bf16.mxu0 %v3473_v34 }
0x15fc   : > { %v2467_v40 = vrot.slane %v2466_v35, 2  ;;  %v2473_v41 = vadd.f32 %v2472_v36, %v2471_v32  ;;  %v2479_v42 = vrot.slane %v2478_v38, 4  ;;  %v2463_v43 = vsel %vm366_vm1, %v4294_v8, %v2455_v39  ;;  %3414 = vmatpush3.bf16.msra.mxu0 %v3473_v34  ;;  %v3266_v36 = vld [vmem:[%s4471_s3 + $0x10] sm:$0x3] }
0x15fd   : > { %v2485_v44 = vsel %vm446_vm2, %v2463_v43, 0.0 }
0x15fe   : > { %v2468_v45 = vadd.f32 %v2467_v40, %v2466_v35  ;;  %v2474_v46 = vrot.slane %v2473_v41, 2  ;;  %v2480_v47 = vadd.f32 %v2479_v42, %v2478_v38  ;;  %v2486_v48 = vrot.slane %v2485_v44, 4  ;;  %v3474_v35 = vld [vmem:[#allocation2 + $0x98] sm:$0xff]  }
0x15ff   : > { %3415 = vmatprep.subr.bf16.mxu0 %v3474_v35 }
0x1600   : > { %v2469_v50 = vrot.slane %v2468_v45, 1  ;;  %v2475_v51 = vadd.f32 %v2474_v46, %v2473_v41  ;;  %v2481_v52 = vrot.slane %v2480_v47, 2  ;;  %v2487_v53 = vadd.f32 %v2486_v48, %v2485_v44  ;;  %3416 = vmatpush3.bf16.msra.mxu0 %v3474_v35 }
0x1602   : > { %v2470_v54 = vadd.f32 %v2469_v50, %v2468_v45  ;;  %v2476_v55 = vrot.slane %v2475_v51, 1  ;;  %v2482_v56 = vadd.f32 %v2481_v52, %v2480_v47  ;;  %v2488_v57 = vrot.slane %v2487_v53, 2 }
0x1604   : > { %v2492_v58 = vmul.f32 0.125, %v2470_v54  ;;  %v2477_v59 = vadd.f32 %v2476_v55, %v2475_v51  ;;  %v2483_v60 = vrot.slane %v2482_v56, 1  ;;  %v2489_v61 = vadd.f32 %v2488_v57, %v2487_v53 }
0x1606   : > { %v2493_v62 = vmul.f32 0.125, %v2477_v59  ;;  %v2484_v63 = vadd.f32 %v2483_v60, %v2482_v56  ;;  %v2490_v0 = vrot.slane %v2489_v61, 1  ;;  %v2496_v1 = vmul.f32 %v2492_v58, %v2492_v58 }
0x1608   : > { %v2494_v2 = vmul.f32 0.125, %v2484_v63  ;;  %v2491_v12 = vadd.f32 %v2490_v0, %v2489_v61  ;;  %2504 = vrot.lane.b32.xlu0 %v2496_v1, %s3713_s25  ;;  %v2497_v3 = vmul.f32 %v2493_v62, %v2493_v62 }
0x160a   : > { %v2495_v21 = vmul.f32 0.125, %v2491_v12  ;;  %2506 = vrot.lane.b32.xlu1 %v2497_v3, %s3713_s25  ;;  %v2498_v4 = vmul.f32 %v2494_v2, %v2494_v2 }
0x160c   : > { %2508 = vrot.lane.b32.xlu0 %v2498_v4, %s3713_s25  ;;  %v2499_v22 = vmul.f32 %v2495_v21, %v2495_v21 }
0x160e   : > { %2510 = vrot.lane.b32.xlu1 %v2499_v22, %s3713_s25 }
0x167a   : > { %v2505_v24 = vpop.permute.xlu0 %2504 }
0x167b   : > { %v2516_v5 = vsub.f32 %v2492_v58, %v2505_v24 }
0x167c   : > { %v2507_v26 = vpop.permute.xlu1 %2506 }
0x167d   : > { %v2520_v29 = vmax.f32 %v2516_v5, 0.0  ;;  %v2517_v6 = vsub.f32 %v2493_v62, %v2507_v26 }
0x167e   : > { %v2509_v16 = vpop.permute.xlu0 %2508 }
0x167f   : > { %v2524_v14 = vadd.f32 1e-05, %v2520_v29  ;;  %v2521_v7 = vmax.f32 %v2517_v6, 0.0  ;;  %v2518_v18 = vsub.f32 %v2494_v2, %v2509_v16 }
0x1680   : > { %v2511_v9 = vpop.permute.xlu1 %2510 }
0x1681   : > { %3613 = vrsqrt.f32 %v2524_v14  ;;  %v2525_v13 = vadd.f32 1e-05, %v2521_v7  ;;  %v2522_v15 = vmax.f32 %v2518_v18, 0.0  ;;  %v2519_v17 = vsub.f32 %v2495_v21, %v2511_v9 }
0x1683   : > { %3615 = vrsqrt.f32 %v2525_v13  ;;  %v2526_v19 = vadd.f32 1e-05, %v2522_v15  ;;  %v2523_v28 = vmax.f32 %v2519_v17, 0.0 }
0x1685   : > { %3617 = vrsqrt.f32 %v2526_v19  ;;  %v2527_v25 = vadd.f32 1e-05, %v2523_v28 }
0x1687   : > { %3619 = vrsqrt.f32 %v2527_v25 }
0x168b   : > { %v3614_v31 = vpop.eup %3613 }
0x168c   : > { %2536 = vrot.lane.b32.xlu0 %v3614_v31, %s3714_s26 }
0x168d   : > { %v3616_v27 = vpop.eup %3615 }
0x168e   : > { %2538 = vrot.lane.b32.xlu1 %v3616_v27, %s3714_s26 }
0x168f   : > { %v3618_v30 = vpop.eup %3617 }
0x1690   : > { %2540 = vrot.lane.b32.xlu0 %v3618_v30, %s3714_s26 }
0x1691   : > { %v3620_v32 = vpop.eup %3619 }
0x1692   : > { %2542 = vrot.lane.b32.xlu1 %v3620_v32, %s3714_s26 }
0x16fe   : > { %v2537_v37 = vpop.permute.xlu0 %2536 }
0x16ff   : > { %v2548_v38 = vmul.f32 %v3266_v36, %v2537_v37 }
0x1700   : > { %v2539_v39 = vpop.permute.xlu1 %2538 }
0x1701   : > { %v2552_v40 = vmul.f32 %v2548_v38, %v2492_v58  ;;  %v2549_v41 = vmul.f32 %v3266_v36, %v2539_v39  ;;  %v2575_v44 = vrot.slane %v2548_v38, %v3815_v11 }
0x1702   : > { %v2541_v42 = vpop.permute.xlu0 %2540 }
0x1703   : > { %v2560_v43 = vrot.slane %v2552_v40, 7  ;;  %v2553_v45 = vmul.f32 %v2549_v41, %v2493_v62  ;;  %v2579_v46 = vrot.slane %v2549_v41, %v3815_v11  ;;  %v2550_v47 = vmul.f32 %v3266_v36, %v2541_v42 }
0x1704   : > { %v2543_v48 = vpop.permute.xlu1 %2542  ;;  %v2588_v54 = vmul.f32 %v2575_v44, %v4290_v33 }
0x1705   : > { %v2568_v50 = vsub.f32 %v3266_v36, %v2560_v43  ;;  %v2561_v51 = vrot.slane %v2553_v45, 7  ;;  %v2551_v52 = vmul.f32 %v3266_v36, %v2543_v48  ;;  %v2554_v53 = vmul.f32 %v2550_v47, %v2494_v2 }
0x1706   : > { %v2589_v58 = vmul.f32 %v2579_v46, %v4296_v20  ;;  %v2583_v60 = vrot.slane %v2550_v47, %v3815_v11 }
0x1707   : > { %v2595_v55 = vrot.slane %v2568_v50, %v3872_v49  ;;  %v2569_v56 = vsub.f32 %v3266_v36, %v2561_v51  ;;  %v2555_v57 = vmul.f32 %v2551_v52, %v2495_v21  ;;  %v2562_v59 = vrot.slane %v2554_v53, 7 }
0x1708   : > { %v2587_v0 = vrot.slane %v2551_v52, %v3815_v11  ;;  %v2590_v33 = vmul.f32 %v4288_v23, %v2583_v60 }
0x1709   : > { %v2608_v61 = vadd.f32 %v2595_v55, %v2588_v54  ;;  %v2599_v62 = vrot.slane %v2569_v56, %v3872_v49  ;;  %v2563_v63 = vrot.slane %v2555_v57, 7  ;;  %v2570_v1 = vsub.f32 %v3266_v36, %v2562_v59 }
0x170a   : > { %v2591_v20 = vmul.f32 %v4294_v8, %v2587_v0 }
0x170b   : > { %v2609_v12 = vadd.f32 %v2599_v62, %v2589_v58  ;;  %v2571_v2 = vsub.f32 %v3266_v36, %v2563_v63  ;;  %3621 = vtanh.f32 %v2608_v61  ;;  %v2603_v3 = vrot.slane %v2570_v1, %v3872_v49 }
0x170d   : > { %3623 = vtanh.f32 %v2609_v12  ;;  %v2607_v21 = vrot.slane %v2571_v2, %v3872_v49  ;;  %v2610_v4 = vadd.f32 %v2603_v3, %v2590_v33 }
0x170f   : > { %v2611_v22 = vadd.f32 %v2607_v21, %v2591_v20  ;;  %3625 = vtanh.f32 %v2610_v4 }
0x1711   : > { %3627 = vtanh.f32 %v2611_v22 }
0x1715   : > { %v3622_v24 = vpop.eup %3621 }
0x1717   : > { %v3624_v5 = vpop.eup %3623 }
0x1718   : > { %v2618_v26 = vpack.c.bf16 %v3624_v5, %v3622_v24 }
0x1719   : > { %v3626_v29 = vpop.eup %3625 }
0x171a   : > { %3417 = vmatprep.mubr.msk.bf16.mxu0 %vm366_vm1, %v2618_v26 }
0x171b   : > { %v3628_v6 = vpop.eup %3627 }
0x171c   : > { %v2619_v16 = vpack.c.bf16 %v3628_v6, %v3626_v29 }
0x171e   : > { %3418 = vmatmul.mubr.msk.bf16.vlgmr.msra.gmra.mrb[20].mxu0 %vm366_vm1, %v2619_v16 }
0x17f1   : > { %v4345_v23 = vpop.f32.mrb[20].mxu0 }
0x17f2   : > { %v4347_v14 = vpop.f32.mrb[21].mxu0  ;;  %v2694_v13 = vmul.f32 %v4345_v23, %v4345_v23 }
0x17f3   : > { %v2692_v8 = vmul.f32 %v4347_v14, %v4347_v14  ;;  %v4351_v7 = vpop.f32.mrb[22].mxu0 }
0x17f4   : > { %v4353_v18 = vpop.f32.mrb[23].mxu0  ;;  %v2695_v15 = vmul.f32 %v4351_v7, %v4351_v7 }
0x17f5   : > { %v2693_v9 = vmul.f32 %v4353_v18, %v4353_v18  ;;  %2700 = vrot.lane.b32.xlu0 %v2692_v8, %s3713_s25 }
0x17f7   : > { %2702 = vrot.lane.b32.xlu1 %v2693_v9, %s3713_s25 }
0x17f9   : > { %2704 = vrot.lane.b32.xlu0 %v2694_v13, %s3713_s25 }
0x17fb   : > { %2706 = vrot.lane.b32.xlu1 %v2695_v15, %s3713_s25 }
0x1867   : > { %v2701_v17 = vpop.permute.xlu0 %2700 }
0x1868   : > { %v2712_v19 = vsel %vm366_vm1, %v4347_v14, %v2701_v17 }
0x1869   : > { %v2716_v28 = vsel %vm446_vm2, %v2712_v19, 0.0  ;;  %v2703_v25 = vpop.permute.xlu1 %2702 }
0x186a   : > { %v2717_v31 = vrot.slane %v2716_v28, 4  ;;  %v2713_v27 = vsel %vm366_vm1, %v4353_v18, %v2703_v25 }
0x186b   : > { %v2723_v30 = vsel %vm446_vm2, %v2713_v27, 0.0  ;;  %v2705_v32 = vpop.permute.xlu0 %2704 }
0x186c   : > { %v2718_v34 = vadd.f32 %v2717_v31, %v2716_v28  ;;  %v2724_v35 = vrot.slane %v2723_v30, 4  ;;  %v2714_v36 = vsel %vm366_vm1, %v4345_v23, %v2705_v32  ;;  %v3475_v32 = vld [vmem:[%s4472_s4] sm:$0xff]  }
0x186d   : > { %v2730_v37 = vsel %vm446_vm2, %v2714_v36, 0.0  ;;  %v2707_v38 = vpop.permute.xlu1 %2706  ;;  %3421 = vmatprep.subr.bf16.mxu1 %v3475_v32 }
0x186e   : > { %v2719_v39 = vrot.slane %v2718_v34, 2  ;;  %v2725_v40 = vadd.f32 %v2724_v35, %v2723_v30  ;;  %v2731_v41 = vrot.slane %v2730_v37, 4  ;;  %v2715_v42 = vsel %vm366_vm1, %v4351_v7, %v2707_v38  ;;  %3422 = vmatpush3.bf16.msra.mxu1 %v3475_v32  ;;  %v3271_v35 = vld [vmem:[%s4471_s3 + $0x12] sm:$0x3] }
0x186f   : > { %v2737_v43 = vsel %vm446_vm2, %v2715_v42, 0.0 }
0x1870   : > { %v2720_v44 = vadd.f32 %v2719_v39, %v2718_v34  ;;  %v2726_v45 = vrot.slane %v2725_v40, 2  ;;  %v2732_v46 = vadd.f32 %v2731_v41, %v2730_v37  ;;  %v2738_v47 = vrot.slane %v2737_v43, 4  ;;  %v3476_v34 = vld [vmem:[%s4472_s4 + $0x8] sm:$0xff]  }
0x1871   : > { %3423 = vmatprep.subr.bf16.mxu1 %v3476_v34 }
0x1872   : > { %v2721_v48 = vrot.slane %v2720_v44, 1  ;;  %v2727_v50 = vadd.f32 %v2726_v45, %v2725_v40  ;;  %v2733_v51 = vrot.slane %v2732_v46, 2  ;;  %v2739_v52 = vadd.f32 %v2738_v47, %v2737_v43  ;;  %3424 = vmatpush3.bf16.msra.mxu1 %v3476_v34 }
0x1874   : > { %v2722_v53 = vadd.f32 %v2721_v48, %v2720_v44  ;;  %v2728_v54 = vrot.slane %v2727_v50, 1  ;;  %v2734_v55 = vadd.f32 %v2733_v51, %v2732_v46  ;;  %v2740_v56 = vrot.slane %v2739_v52, 2 }
0x1876   : > { %v2744_v57 = vmul.f32 0.125, %v2722_v53  ;;  %v2729_v58 = vadd.f32 %v2728_v54, %v2727_v50  ;;  %v2735_v59 = vrot.slane %v2734_v55, 1  ;;  %v2741_v60 = vadd.f32 %v2740_v56, %v2739_v52 }
0x1878   : > { %v2745_v61 = vmul.f32 0.125, %v2729_v58  ;;  %v2736_v62 = vadd.f32 %v2735_v59, %v2734_v55  ;;  %v2742_v63 = vrot.slane %v2741_v60, 1  ;;  %v2748_v0 = vmul.f32 %v2744_v57, %v2744_v57 }
0x187a   : > { %v2746_v1 = vmul.f32 0.125, %v2736_v62  ;;  %v2743_v12 = vadd.f32 %v2742_v63, %v2741_v60  ;;  %2756 = vrot.lane.b32.xlu0 %v2748_v0, %s3713_s25  ;;  %v2749_v2 = vmul.f32 %v2745_v61, %v2745_v61 }
0x187c   : > { %v2747_v33 = vmul.f32 0.125, %v2743_v12  ;;  %2758 = vrot.lane.b32.xlu1 %v2749_v2, %s3713_s25  ;;  %v2750_v3 = vmul.f32 %v2746_v1, %v2746_v1 }
0x187e   : > { %2760 = vrot.lane.b32.xlu0 %v2750_v3, %s3713_s25  ;;  %v2751_v20 = vmul.f32 %v2747_v33, %v2747_v33 }
0x1880   : > { %2762 = vrot.lane.b32.xlu1 %v2751_v20, %s3713_s25 }
0x18ec   : > { %v2757_v21 = vpop.permute.xlu0 %2756 }
0x18ed   : > { %v2768_v4 = vsub.f32 %v2744_v57, %v2757_v21 }
0x18ee   : > { %v2759_v22 = vpop.permute.xlu1 %2758 }
0x18ef   : > { %v2772_v24 = vmax.f32 %v2768_v4, 0.0  ;;  %v2769_v5 = vsub.f32 %v2745_v61, %v2759_v22 }
0x18f0   : > { %v2761_v26 = vpop.permute.xlu0 %2760 }
0x18f1   : > { %v2776_v29 = vadd.f32 1e-05, %v2772_v24  ;;  %v2773_v6 = vmax.f32 %v2769_v5, 0.0  ;;  %v2770_v16 = vsub.f32 %v2746_v1, %v2761_v26 }
0x18f2   : > { %v2763_v8 = vpop.permute.xlu1 %2762 }
0x18f3   : > { %3629 = vrsqrt.f32 %v2776_v29  ;;  %v2777_v9 = vadd.f32 1e-05, %v2773_v6  ;;  %v2774_v13 = vmax.f32 %v2770_v16, 0.0  ;;  %v2771_v15 = vsub.f32 %v2747_v33, %v2763_v8 }
0x18f5   : > { %3631 = vrsqrt.f32 %v2777_v9  ;;  %v2778_v17 = vadd.f32 1e-05, %v2774_v13  ;;  %v2775_v19 = vmax.f32 %v2771_v15, 0.0 }
0x18f7   : > { %3633 = vrsqrt.f32 %v2778_v17  ;;  %v2779_v28 = vadd.f32 1e-05, %v2775_v19 }
0x18f9   : > { %3635 = vrsqrt.f32 %v2779_v28 }
0x18fd   : > { %v3630_v25 = vpop.eup %3629 }
0x18fe   : > { %2788 = vrot.lane.b32.xlu0 %v3630_v25, %s3714_s26 }
0x18ff   : > { %v3632_v31 = vpop.eup %3631 }
0x1900   : > { %2790 = vrot.lane.b32.xlu1 %v3632_v31, %s3714_s26 }
0x1901   : > { %v3634_v27 = vpop.eup %3633 }
0x1902   : > { %2792 = vrot.lane.b32.xlu0 %v3634_v27, %s3714_s26 }
0x1903   : > { %v3636_v30 = vpop.eup %3635 }
0x1904   : > { %2794 = vrot.lane.b32.xlu1 %v3636_v30, %s3714_s26  ;;  %s3715_s26 = smov 8  }
0x1970   : > { %v2789_v36 = vpop.permute.xlu0 %2788 }
0x1971   : > { %v2800_v37 = vmul.f32 %v3271_v35, %v2789_v36 }
0x1972   : > { %v2791_v38 = vpop.permute.xlu1 %2790 }
0x1973   : > { %v2804_v39 = vmul.f32 %v2800_v37, %v2744_v57  ;;  %v2801_v40 = vmul.f32 %v3271_v35, %v2791_v38  ;;  %v2827_v43 = vrot.slane %v2800_v37, %v3815_v11 }
0x1974   : > { %v2793_v41 = vpop.permute.xlu0 %2792 }
0x1975   : > { %v2812_v42 = vrot.slane %v2804_v39, 7  ;;  %v2805_v44 = vmul.f32 %v2801_v40, %v2745_v61  ;;  %v2831_v45 = vrot.slane %v2801_v40, %v3815_v11  ;;  %v2802_v46 = vmul.f32 %v3271_v35, %v2793_v41 }
0x1976   : > { %v2795_v47 = vpop.permute.xlu1 %2794  ;;  %v2840_v53 = vmul.f32 %v2827_v43, %v4347_v14 }
0x1977   : > { %v2820_v48 = vsub.f32 %v3271_v35, %v2812_v42  ;;  %v2813_v50 = vrot.slane %v2805_v44, 7  ;;  %v2803_v51 = vmul.f32 %v3271_v35, %v2795_v47  ;;  %v2806_v52 = vmul.f32 %v2802_v46, %v2746_v1 }
0x1978   : > { %v2841_v57 = vmul.f32 %v2831_v45, %v4353_v18  ;;  %v2835_v59 = vrot.slane %v2802_v46, %v3815_v11 }
0x1979   : > { %v2847_v54 = vrot.slane %v2820_v48, %v3872_v49  ;;  %v2821_v55 = vsub.f32 %v3271_v35, %v2813_v50  ;;  %v2807_v56 = vmul.f32 %v2803_v51, %v2747_v33  ;;  %v2814_v58 = vrot.slane %v2806_v52, 7 }
0x197a   : > { %v2839_v63 = vrot.slane %v2803_v51, %v3815_v11  ;;  %v2842_v14 = vmul.f32 %v4345_v23, %v2835_v59 }
0x197b   : > { %v2860_v60 = vadd.f32 %v2847_v54, %v2840_v53  ;;  %v2851_v61 = vrot.slane %v2821_v55, %v3872_v49  ;;  %v2815_v62 = vrot.slane %v2807_v56, 7  ;;  %v2822_v0 = vsub.f32 %v3271_v35, %v2814_v58 }
0x197c   : > { %v2843_v18 = vmul.f32 %v4351_v7, %v2839_v63 }
0x197d   : > { %v2861_v12 = vadd.f32 %v2851_v61, %v2841_v57  ;;  %v2823_v1 = vsub.f32 %v3271_v35, %v2815_v62  ;;  %3637 = vtanh.f32 %v2860_v60  ;;  %v2855_v2 = vrot.slane %v2822_v0, %v3872_v49 }
0x197f   : > { %3639 = vtanh.f32 %v2861_v12  ;;  %v2859_v33 = vrot.slane %v2823_v1, %v3872_v49  ;;  %v2862_v3 = vadd.f32 %v2855_v2, %v2842_v14 }
0x1981   : > { %v2863_v20 = vadd.f32 %v2859_v33, %v2843_v18  ;;  %3641 = vtanh.f32 %v2862_v3 }
0x1983   : > { %3643 = vtanh.f32 %v2863_v20 }
0x1987   : > { %v3638_v21 = vpop.eup %3637 }
0x1989   : > { %v3640_v4 = vpop.eup %3639 }
0x198a   : > { %v2868_v11 = vpack.c.bf16 %v3640_v4, %v3638_v21 }
0x198b   : > { %v3642_v22 = vpop.eup %3641 }
0x198c   : > { %3425 = vmatprep.mubr.msk.bf16.mxu1 %vm366_vm1, %v2868_v11 }
0x198d   : > { %v3644_v24 = vpop.eup %3643 }
0x198e   : > { %v2869_v5 = vpack.c.bf16 %v3644_v24, %v3642_v22 }
0x1990   : > { %3426 = vmatmul.mubr.msk.bf16.vlgmr.msra.gmra.mrb[20].mxu1 %vm366_vm1, %v2869_v5 }
0x1a63   : > { %v4408_v23 = vpop.f32.mrb[20].mxu1 }
0x1a64   : > { %v4410_v26 = vpop.f32.mrb[21].mxu1  ;;  %v2943_v8 = vmul.f32 %v4408_v23, %v4408_v23 }
0x1a65   : > { %v2941_v7 = vmul.f32 %v4410_v26, %v4410_v26  ;;  %v4414_v29 = vpop.f32.mrb[22].mxu1 }
0x1a66   : > { %v4416_v6 = vpop.f32.mrb[23].mxu1  ;;  %v2944_v9 = vmul.f32 %v4414_v29, %v4414_v29 }
0x1a67   : > { %v2942_v16 = vmul.f32 %v4416_v6, %v4416_v6  ;;  %2949 = vrot.lane.b32.xlu0 %v2941_v7, %s3715_s26 }
0x1a69   : > { %2951 = vrot.lane.b32.xlu1 %v2942_v16, %s3715_s26 }
0x1a6b   : > { %2953 = vrot.lane.b32.xlu0 %v2943_v8, %s3715_s26 }
0x1a6d   : > { %2955 = vrot.lane.b32.xlu1 %v2944_v9, %s3715_s26 }
0x1ad9   : > { %v2950_v13 = vpop.permute.xlu0 %2949 }
0x1ada   : > { %v2962_v15 = vsel %vm2961_vm3, %v4410_v26, %v2950_v13 }
0x1adb   : > { %v2966_v17 = vsel %vm287_vm0, %v2962_v15, 0.0  ;;  %v2952_v19 = vpop.permute.xlu1 %2951 }
0x1adc   : > { %v2967_v28 = vrot.slane %v2966_v17, 4  ;;  %v2963_v25 = vsel %vm2961_vm3, %v4416_v6, %v2952_v19 }
0x1add   : > { %v2973_v31 = vsel %vm287_vm0, %v2963_v25, 0.0  ;;  %v2954_v27 = vpop.permute.xlu0 %2953 }
0x1ade   : > { %v2968_v30 = vadd.f32 %v2967_v28, %v2966_v17  ;;  %v2974_v32 = vrot.slane %v2973_v31, 4  ;;  %v2964_v34 = vsel %vm2961_vm3, %v4408_v23, %v2954_v27 }
0x1adf   : > { %v2980_v35 = vsel %vm287_vm0, %v2964_v34, 0.0  ;;  %v2956_v36 = vpop.permute.xlu1 %2955 }
0x1ae0   : > { %v2969_v37 = vrot.slane %v2968_v30, 2  ;;  %v2975_v38 = vadd.f32 %v2974_v32, %v2973_v31  ;;  %v2981_v39 = vrot.slane %v2980_v35, 4  ;;  %v2965_v40 = vsel %vm2961_vm3, %v4414_v29, %v2956_v36 }
0x1ae1   : > { %v2987_v41 = vsel %vm287_vm0, %v2965_v40, 0.0 }
0x1ae2   : > { %v2970_v42 = vadd.f32 %v2969_v37, %v2968_v30  ;;  %v2976_v43 = vrot.slane %v2975_v38, 2  ;;  %v2982_v44 = vadd.f32 %v2981_v39, %v2980_v35  ;;  %v2988_v45 = vrot.slane %v2987_v41, 4  ;;  %v3669_v35 = vld [vmem:[%s4473_s5] sm:$0x7] }
0x1ae4   : > { %v2971_v46 = vrot.slane %v2970_v42, 1  ;;  %v2977_v47 = vadd.f32 %v2976_v43, %v2975_v38  ;;  %v2983_v48 = vrot.slane %v2982_v44, 2  ;;  %v2989_v50 = vadd.f32 %v2988_v45, %v2987_v41 }
0x1ae5   : > { %v3100_v41 = vsub.s32 2, %v3812_v10 }
0x1ae6   : > { %v2972_v51 = vadd.f32 %v2971_v46, %v2970_v42  ;;  %v2978_v52 = vrot.slane %v2977_v47, 1  ;;  %v2984_v53 = vadd.f32 %v2983_v48, %v2982_v44  ;;  %v2990_v54 = vrot.slane %v2989_v50, 2 }
0x1ae8   : > { %v2994_v55 = vmul.f32 0.125, %v2972_v51  ;;  %v2979_v56 = vadd.f32 %v2978_v52, %v2977_v47  ;;  %v2985_v57 = vrot.slane %v2984_v53, 1  ;;  %v2991_v58 = vadd.f32 %v2990_v54, %v2989_v50 }
0x1aea   : > { %v2995_v59 = vmul.f32 0.125, %v2979_v56  ;;  %v2986_v60 = vadd.f32 %v2985_v57, %v2984_v53  ;;  %v2992_v61 = vrot.slane %v2991_v58, 1  ;;  %v2998_v62 = vmul.f32 %v2994_v55, %v2994_v55 }
0x1aec   : > { %v2996_v63 = vmul.f32 0.125, %v2986_v60  ;;  %v2993_v0 = vadd.f32 %v2992_v61, %v2991_v58  ;;  %3006 = vrot.lane.b32.xlu0 %v2998_v62, %s3715_s26  ;;  %v2999_v12 = vmul.f32 %v2995_v59, %v2995_v59 }
0x1aee   : > { %v2997_v1 = vmul.f32 0.125, %v2993_v0  ;;  %3008 = vrot.lane.b32.xlu1 %v2999_v12, %s3715_s26  ;;  %v3000_v14 = vmul.f32 %v2996_v63, %v2996_v63 }
0x1af0   : > { %3010 = vrot.lane.b32.xlu0 %v3000_v14, %s3715_s26  ;;  %v3001_v2 = vmul.f32 %v2997_v1, %v2997_v1 }
0x1af2   : > { %3012 = vrot.lane.b32.xlu1 %v3001_v2, %s3715_s26 }
0x1b5e   : > { %v3007_v18 = vpop.permute.xlu0 %3006 }
0x1b5f   : > { %v3018_v33 = vsub.f32 %v2994_v55, %v3007_v18 }
0x1b60   : > { %v3009_v3 = vpop.permute.xlu1 %3008 }
0x1b61   : > { %v3022_v20 = vmax.f32 %v3018_v33, 0.0  ;;  %v3019_v21 = vsub.f32 %v2995_v59, %v3009_v3 }
0x1b62   : > { %v3011_v4 = vpop.permute.xlu0 %3010 }
0x1b63   : > { %v3026_v11 = vadd.f32 1e-05, %v3022_v20  ;;  %v3023_v22 = vmax.f32 %v3019_v21, 0.0  ;;  %v3020_v24 = vsub.f32 %v2996_v63, %v3011_v4 }
0x1b64   : > { %v3013_v5 = vpop.permute.xlu1 %3012 }
0x1b65   : > { %3645 = vrsqrt.f32 %v3026_v11  ;;  %v3027_v7 = vadd.f32 1e-05, %v3023_v22  ;;  %v3024_v16 = vmax.f32 %v3020_v24, 0.0  ;;  %v3021_v8 = vsub.f32 %v2997_v1, %v3013_v5 }
0x1b67   : > { %3647 = vrsqrt.f32 %v3027_v7  ;;  %v3028_v9 = vadd.f32 1e-05, %v3024_v16  ;;  %v3025_v13 = vmax.f32 %v3021_v8, 0.0 }
0x1b69   : > { %3649 = vrsqrt.f32 %v3028_v9  ;;  %v3029_v15 = vadd.f32 1e-05, %v3025_v13 }
0x1b6b   : > { %3651 = vrsqrt.f32 %v3029_v15 }
0x1b6f   : > { %v3646_v17 = vpop.eup %3645 }
0x1b70   : > { %v3038_v19 = vrot.slane %v3646_v17, 7 }
0x1b71   : > { %v3648_v28 = vpop.eup %3647 }
0x1b72   : > { %v3039_v25 = vrot.slane %v3648_v28, 7  ;;  %3042 = vrot.lane.b32.xlu0 %v3038_v19, %s3716_s7 }
0x1b73   : > { %v3650_v31 = vpop.eup %3649 }
0x1b74   : > { %v3040_v27 = vrot.slane %v3650_v31, 7  ;;  %3044 = vrot.lane.b32.xlu1 %v3039_v25, %s3716_s7 }
0x1b75   : > { %v3652_v30 = vpop.eup %3651 }
0x1b76   : > { %v3041_v32 = vrot.slane %v3652_v30, 7  ;;  %3046 = vrot.lane.b32.xlu0 %v3040_v27, %s3716_s7 }
0x1b78   : > { %3048 = vrot.lane.b32.xlu1 %v3041_v32, %s3716_s7 }
0x1be4   : > { %v3043_v34 = vpop.permute.xlu0 %3042 }
0x1be5   : > { %v3054_v36 = vmul.f32 %v3669_v35, %v3043_v34 }
0x1be6   : > { %v3045_v37 = vpop.permute.xlu1 %3044 }
0x1be7   : > { %v3058_v38 = vmul.f32 %v3054_v36, %v2994_v55  ;;  %v3055_v39 = vmul.f32 %v3669_v35, %v3045_v37  ;;  %v3081_v43 = vrot.slane %v3054_v36, %v3872_v49 }
0x1be8   : > { %v3047_v40 = vpop.permute.xlu0 %3046 }
0x1be9   : > { %v3066_v42 = vrot.slane %v3058_v38, 7  ;;  %v3059_v44 = vmul.f32 %v3055_v39, %v2995_v59  ;;  %v3085_v45 = vrot.slane %v3055_v39, %v3872_v49  ;;  %v3056_v46 = vmul.f32 %v3669_v35, %v3047_v40 }
0x1bea   : > { %v3049_v47 = vpop.permute.xlu1 %3048  ;;  %v3094_v53 = vmul.f32 %v3081_v43, %v4410_v26 }
0x1beb   : > { %v3074_v48 = vsub.f32 %v3669_v35, %v3066_v42  ;;  %v3067_v50 = vrot.slane %v3059_v44, 7  ;;  %v3057_v51 = vmul.f32 %v3669_v35, %v3049_v47  ;;  %v3060_v52 = vmul.f32 %v3056_v46, %v2996_v63 }
0x1bec   : > { %v3095_v57 = vmul.f32 %v3085_v45, %v4416_v6  ;;  %v3089_v58 = vrot.slane %v3056_v46, %v3872_v49 }
0x1bed   : > { %v3101_v54 = vrot.slane %v3074_v48, %v3100_v41  ;;  %v3075_v55 = vsub.f32 %v3669_v35, %v3067_v50  ;;  %v3061_v56 = vmul.f32 %v3057_v51, %v2997_v1  ;;  %v3068_v10 = vrot.slane %v3060_v52, 7 }
0x1bee   : > { %v3093_v62 = vrot.slane %v3057_v51, %v3872_v49  ;;  %v3096_v63 = vmul.f32 %v4408_v23, %v3089_v58 }
0x1bef   : > { %v3114_v60 = vadd.f32 %v3101_v54, %v3094_v53  ;;  %v3105_v59 = vrot.slane %v3075_v55, %v3100_v41  ;;  %v3069_v61 = vrot.slane %v3061_v56, 7  ;;  %v3076_v0 = vsub.f32 %v3669_v35, %v3068_v10 }
0x1bf0   : > { %v3097_v1 = vmul.f32 %v4414_v29, %v3093_v62 }
0x1bf1   : > { %v3280_v12 = vmul.f32 -1.442695, %v3114_v60  ;;  %v3115_v14 = vadd.f32 %v3105_v59, %v3095_v57  ;;  %v3077_v2 = vsub.f32 %v3669_v35, %v3069_v61  ;;  %v3109_v26 = vrot.slane %v3076_v0, %v3100_v41 }
0x1bf3   : > { %3653 = vpow2.f32 %v3280_v12  ;;  %v3281_v18 = vmul.f32 -1.442695, %v3115_v14  ;;  %v3113_v6 = vrot.slane %v3077_v2, %v3100_v41  ;;  %v3116_v33 = vadd.f32 %v3109_v26, %v3096_v63 }
0x1bf5   : > { %3655 = vpow2.f32 %v3281_v18  ;;  %v3117_v3 = vadd.f32 %v3113_v6, %v3097_v1  ;;  %v3282_v20 = vmul.f32 -1.442695, %v3116_v33 }
0x1bf7   : > { %v3283_v21 = vmul.f32 -1.442695, %v3117_v3  ;;  %3657 = vpow2.f32 %v3282_v20 }
0x1bf9   : > { %3659 = vpow2.f32 %v3283_v21 }
0x1bfd   : > { %v3654_v49 = vpop.eup %3653 }
0x1bfe   : > { %v3130_v4 = vadd.f32 1.0, %v3654_v49 }
0x1bff   : > { %v3656_v11 = vpop.eup %3655 }
0x1c00   : > { %3661 = vrcp.f32 %v3130_v4  ;;  %v3131_v22 = vadd.f32 1.0, %v3656_v11 }
0x1c01   : > { %v3658_v23 = vpop.eup %3657 }
0x1c02   : > { %3663 = vrcp.f32 %v3131_v22  ;;  %v3132_v5 = vadd.f32 1.0, %v3658_v23 }
0x1c03   : > { %v3660_v24 = vpop.eup %3659 }
0x1c04   : > { %v3133_v7 = vadd.f32 1.0, %v3660_v24  ;;  %3665 = vrcp.f32 %v3132_v5 }
0x1c06   : > { %3667 = vrcp.f32 %v3133_v7 }
0x1c0a   : > { %v3662_v29 = vpop.eup %3661 }
0x1c0b   : > { %3142 = vst.msk [vmem:[%s266_s12] sm:$0xff] %vm2961_vm3, %v3662_v29 }
0x1c0c   : > { %v3664_v16 = vpop.eup %3663 }
0x1c0d   : > { %3143 = vst.msk [vmem:[%s266_s12 + $0x8] sm:$0xff] %vm2961_vm3, %v3664_v16 }
0x1c0e   : > { %v3666_v8 = vpop.eup %3665 }
0x1c0f   : > { %3144 = vst.msk [vmem:[%s266_s12 + $0x10] sm:$0xff] %vm2961_vm3, %v3666_v8 }
0x1c10   : > { %v3668_v9 = vpop.eup %3667 }
0x1c11   : > { %3145 = vst.msk [vmem:[%s266_s12 + $0x18] sm:$0xff] %vm2961_vm3, %v3668_v9 }
0x1c12 PF: > { %s17_s21 = sadd.s32 1, %s3708_s21  }
0x1c13   : > { %p14_p3 = scmp.ge.s32.totalorder %s17_s21, 4  }
0x1c15   :  { %16 = sbr.rel (!%p14_p3) target bundleno = 1 (0x1), region = 97 }
0x1c1c   :  { %3167 = vsyncpa [#allocation3], 1 }
0x1c1d   :  { %3169 = vsyncpa [#allocation3 + $0x1], 1 }

</bundles_post_ra>
